<compile_context>
chip_gen: v6e
topology: v6e:2x2x1
jax: 0.10.0
libtpu: 0.0.40
codegen_flags: <defaults>
</compile_context>

<pallas_src>
import functools

import jax
import jax.numpy as jnp
from jax.experimental import pallas as pl
from jax.experimental.pallas import tpu as pltpu


def _round_up(x, m):
    return ((x + m - 1) // m) * m


# ----------------------------------------------------------------------------
# Pallas kernels
# ----------------------------------------------------------------------------
def _matmul_bias_act_kernel(a_ref, b_ref, bias_ref, o_ref, *, act):
    # bf16 x bf16 -> f32 on the MXU; bias + activation in f32; cast at store.
    acc = jnp.dot(a_ref[...], b_ref[...], preferred_element_type=jnp.float32)
    acc = acc + bias_ref[...]                 # bias is (1, Np), broadcasts
    if act == "tanh":
        acc = jnp.tanh(acc)
    elif act == "sigmoid":
        acc = jax.nn.sigmoid(acc)
    o_ref[...] = acc.astype(o_ref.dtype)


def _encoder_head_kernel(a_ref, w_ref, bias_ref, u_ref,
                         z_ref, mu_ref, sigma_ref, *, zp):
    # One matmul drives both heads: cols [0:zp) = mu head, [zp:2*zp) = sigma.
    acc = jnp.dot(a_ref[...], w_ref[...], preferred_element_type=jnp.float32)
    acc = acc + bias_ref[...]
    mu = jnp.tanh(acc[:, :zp])
    sigma = jnp.exp(0.5 * jax.nn.sigmoid(acc[:, zp:]))     # EUP ops (cheap)
    mu_ref[...] = mu
    sigma_ref[...] = sigma
    z_ref[...] = mu + sigma * u_ref[...]                   # reparam fused in


# ----------------------------------------------------------------------------
# Fused matmul wrapper: pad to lane-dense shapes, tile M, bf16 operands
# ----------------------------------------------------------------------------
_TM = 256   # M tile (multiple of 16 for bf16 sublane packing)


def fused_matmul(a, w, bias, act="none", out_dtype=jnp.bfloat16):
    """(M,K) @ (K,Nout) + bias + activation.  K, Nout padded to 128; M tiled."""
    M, K = a.shape
    K2, Nout = w.shape
    assert K == K2
    Kp = _round_up(K, 128)
    Np = _round_up(Nout, 128)
    if M <= _TM:
        Mp = _round_up(M, 16)
        tm = Mp
    else:
        Mp = _round_up(M, _TM)
        tm = _TM

    a_p = jnp.pad(a.astype(jnp.bfloat16), ((0, Mp - M), (0, Kp - K)))
    w_p = jnp.pad(w.astype(jnp.bfloat16), ((0, Kp - K), (0, Np - Nout)))
    b_p = jnp.pad(bias.astype(jnp.float32), (0, Np - Nout)).reshape(1, Np)

    out = pl.pallas_call(
        functools.partial(_matmul_bias_act_kernel, act=act),
        out_shape=jax.ShapeDtypeStruct((Mp, Np), out_dtype),
        grid=(Mp // tm,),
        in_specs=[
            pl.BlockSpec((tm, Kp), lambda i: (i, 0)),
            pl.BlockSpec((Kp, Np), lambda i: (0, 0)),   # weights stay resident
            pl.BlockSpec((1, Np), lambda i: (0, 0)),
        ],
        out_specs=pl.BlockSpec((tm, Np), lambda i: (i, 0)),
        compiler_params=pltpu.CompilerParams(
            dimension_semantics=("parallel",)),
    )(a_p, w_p, b_p)
    return out[:M, :Nout]


# ----------------------------------------------------------------------------
# Fused mu / sigma / reparameterization head (single pallas_call)
# ----------------------------------------------------------------------------
_ZP = 128   # per-head padded width (z_dim <= 128)


def encoder_head(flat, mu_w, mu_b, sigma_w, sigma_b, u):
    """mu = tanh(W_mu x + b), s = sigmoid(W_s x + b), sigma = exp(0.5 s),
    z = mu + sigma * u  — all in one kernel.  mu_w/sigma_w: (z_dim, K)."""
    N, K = flat.shape
    z_dim = mu_w.shape[0]
    Kp = _round_up(K, 128)

    w = jnp.zeros((Kp, 2 * _ZP), jnp.bfloat16)
    w = w.at[:K, :z_dim].set(mu_w.T.astype(jnp.bfloat16))
    w = w.at[:K, _ZP:_ZP + z_dim].set(sigma_w.T.astype(jnp.bfloat16))
    b = jnp.zeros((1, 2 * _ZP), jnp.float32)
    b = b.at[0, :z_dim].set(mu_b.astype(jnp.float32))
    b = b.at[0, _ZP:_ZP + z_dim].set(sigma_b.astype(jnp.float32))

    a_p = jnp.pad(flat.astype(jnp.bfloat16), ((0, 0), (0, Kp - K)))
    u_p = jnp.pad(u.astype(jnp.float32), ((0, 0), (0, _ZP - z_dim)))

    def full(r, c):
        return pl.BlockSpec((r, c), lambda i: (0, 0))

    z, mu, sigma = pl.pallas_call(
        functools.partial(_encoder_head_kernel, zp=_ZP),
        out_shape=(jax.ShapeDtypeStruct((N, _ZP), jnp.float32),) * 3,
        grid=(1,),
        in_specs=[full(N, Kp), full(Kp, 2 * _ZP), full(1, 2 * _ZP), full(N, _ZP)],
        out_specs=(full(N, _ZP),) * 3,
    )(a_p, w, b, u_p)
    return z[:, :z_dim], mu[:, :z_dim], sigma[:, :z_dim]


# ----------------------------------------------------------------------------
# Plain-JAX glue: channels-last im2col, conv wrappers, transposed-conv lowering
# ----------------------------------------------------------------------------
def _im2col_nhwc(x, kh, kw, stride):
    """x: (N,H,W,C) -> (N*OH*OW, kh*kw*C); K ordered (i, j, c)."""
    N, H, W, C = x.shape
    OH = (H - kh) // stride + 1
    OW = (W - kw) // stride + 1
    cols = []
    for i in range(kh):
        for j in range(kw):
            cols.append(x[:, i:i + stride * OH:stride,
                          j:j + stride * OW:stride, :])
    p = jnp.stack(cols, axis=3)                     # (N, OH, OW, kh*kw, C)
    return p.reshape(N * OH * OW, kh * kw * C), OH, OW


def conv2d_nhwc(x, w, b, stride, act, out_dtype=jnp.bfloat16):
    """x: (N,H,W,Cin); w: PyTorch (Cout,Cin,KH,KW).  Returns (N,OH,OW,Cout)."""
    Cout, Cin, KH, KW = w.shape
    N = x.shape[0]
    a, OH, OW = _im2col_nhwc(x, KH, KW, stride)
    wm = jnp.transpose(w, (2, 3, 1, 0)).reshape(KH * KW * Cin, Cout)  # (i,j,c)
    out = fused_matmul(a, wm, b, act=act, out_dtype=out_dtype)
    return out.reshape(N, OH, OW, Cout)


def conv_transpose2d_nhwc(x, w, b, stride, act, out_dtype=jnp.bfloat16):
    """x: (N,H,W,Cin); w: PyTorch ConvTranspose2d (Cin,Cout,KH,KW), padding=0."""
    Cin, Cout, KH, KW = w.shape
    N, H, W, _ = x.shape
    if stride == 1:
        xd = x
    else:
        Hd = (H - 1) * stride + 1
        Wd = (W - 1) * stride + 1
        xd = jnp.zeros((N, Hd, Wd, Cin), x.dtype)
        xd = xd.at[:, ::stride, ::stride, :].set(x)
    xp = jnp.pad(xd, ((0, 0), (KH - 1, KH - 1), (KW - 1, KW - 1), (0, 0)))
    # equivalent forward conv: spatially flipped, channel-swapped kernel
    w_eq = jnp.flip(w, axis=(2, 3)).transpose(1, 0, 2, 3)   # (Cout,Cin,KH,KW)
    # TODO(synk): sub-pixel (stride-phase) decomposition would skip the ~75%
    # structural-zero MACs introduced by the dilation on the stride=2 layers.
    return conv2d_nhwc(xp, w_eq, b, 1, act, out_dtype=out_dtype)


# ----------------------------------------------------------------------------
# Parameter init (deterministic, PyTorch-default-style uniform bounds)
# ----------------------------------------------------------------------------
def init_params(key, image_channel=1, z_dim=20, classes=10):
    keys = jax.random.split(key, 16)

    def u(k, shape, fan_in):
        bound = 1.0 / (fan_in ** 0.5)
        return jax.random.uniform(k, shape, jnp.float32, -bound, bound)

    p = {}
    p["conv1_w"] = u(keys[0], (16, image_channel, 5, 5), image_channel * 25)
    p["conv1_b"] = u(keys[1], (16,), image_channel * 25)
    p["conv2_w"] = u(keys[2], (32, 16, 5, 5), 16 * 25)
    p["conv2_b"] = u(keys[3], (32,), 16 * 25)
    p["mu_w"] = u(keys[4], (z_dim, 512), 512)
    p["mu_b"] = u(keys[5], (z_dim,), 512)
    p["sigma_w"] = u(keys[6], (z_dim, 512), 512)
    p["sigma_b"] = u(keys[7], (z_dim,), 512)
    p["dlin_w"] = u(keys[8], (512, z_dim + classes), z_dim + classes)
    p["dlin_b"] = u(keys[9], (512,), z_dim + classes)
    p["ct1_w"] = u(keys[10], (32, 16, 5, 5), 16 * 25)
    p["ct1_b"] = u(keys[11], (16,), 16 * 25)
    p["ct2_w"] = u(keys[12], (16, image_channel, 5, 5), image_channel * 25)
    p["ct2_b"] = u(keys[13], (image_channel,), image_channel * 25)
    p["ct3_w"] = u(keys[14], (image_channel, image_channel, 4, 4), image_channel * 16)
    p["ct3_b"] = u(keys[15], (image_channel,), image_channel * 16)
    return p


# ----------------------------------------------------------------------------
# Full forward pass (matches CVAE.forward semantics)
# ----------------------------------------------------------------------------
def cvae_forward(params, x, y, rng):
    N = x.shape[0]
    z_dim = params["mu_w"].shape[0]

    # --- encoder (channels-last throughout) ---
    xh = jnp.transpose(x, (0, 2, 3, 1))                                     # (N,28,28,C)
    h = conv2d_nhwc(xh, params["conv1_w"], params["conv1_b"], 2, "tanh")    # (N,12,12,16)
    h = conv2d_nhwc(h, params["conv2_w"], params["conv2_b"], 2, "tanh")     # (N,4,4,32)
    flat = h.reshape(N, -1)                                                 # (N,512) NHWC order

    # Permute mu/sigma weight columns so they consume the NHWC flatten while
    # reproducing PyTorch's NCHW-flatten semantics exactly.
    def _to_nhwc_cols(w):
        return w.reshape(z_dim, 32, 4, 4).transpose(0, 2, 3, 1).reshape(z_dim, -1)

    mu_w = _to_nhwc_cols(params["mu_w"])
    sg_w = _to_nhwc_cols(params["sigma_w"])

    # reparameterization noise: torch.rand_like -> U[0,1)
    u = jax.random.uniform(rng, (N, z_dim), jnp.float32)
    z, mu, sigma = encoder_head(flat, mu_w, params["mu_b"],
                                sg_w, params["sigma_b"], u)

    # --- decoder ---
    zy = jnp.concatenate([z, y.astype(jnp.float32)], axis=1)                # (N, z+classes)
    # Permute d_lin output rows so the unflatten is NHWC (same NCHW semantics).
    dw = params["dlin_w"].reshape(32, 4, 4, -1).transpose(1, 2, 0, 3).reshape(512, -1)
    db = params["dlin_b"].reshape(32, 4, 4).transpose(1, 2, 0).reshape(512)
    d = fused_matmul(zy, dw.T, db, act="tanh")                              # (N,512)
    d = d.reshape(N, 4, 4, 32)
    d = conv_transpose2d_nhwc(d, params["ct1_w"], params["ct1_b"], 2, "tanh")   # (N,11,11,16)
    d = conv_transpose2d_nhwc(d, params["ct2_w"], params["ct2_b"], 2, "tanh")   # (N,25,25,C)
    d = conv_transpose2d_nhwc(d, params["ct3_w"], params["ct3_b"], 1, "sigmoid",
                              out_dtype=jnp.float32)                            # (N,28,28,C)
    out = jnp.transpose(d, (0, 3, 1, 2))                                    # back to NCHW
    return out, mu, sigma


if __name__ == "__main__":
    image_channel, z_dim, classes = 1, 20, 10
    batch = 2

    key = jax.random.PRNGKey(0)
    k_param, k_x, k_y, k_noise = jax.random.split(key, 4)

    params = init_params(k_param, image_channel, z_dim, classes)
    # architecture implies 28x28 inputs (MNIST-like) so the flatten is 512
    x = jax.random.normal(k_x, (batch, image_channel, 28, 28), jnp.float32)
    labels = jax.random.randint(k_y, (batch,), 0, classes)
    y = jax.nn.one_hot(labels, classes, dtype=jnp.float32)

    fwd = jax.jit(cvae_forward)
    out, mu, sigma = fwd(params, x, y, k_noise)
    jax.block_until_ready((out, mu, sigma))

    assert out.shape == (batch, image_channel, 28, 28)
    assert mu.shape == (batch, z_dim)
    assert sigma.shape == (batch, z_dim)
    assert bool(jnp.all(jnp.isfinite(out)))
    assert bool(jnp.all((out >= 0.0) & (out <= 1.0)))   # sigmoid output range
    print("KERNEL_OK")
</pallas_src>

<mosaic_0001>
module attributes {stable_mosaic.version = 11 : i64} {
  func.func @_matmul_bias_act_kernel(%arg0: i32, %arg1: memref<256x128xbf16, #tpu.memory_space<vmem>>, %arg2: memref<128x128xbf16, #tpu.memory_space<vmem>>, %arg3: memref<1x128xf32, #tpu.memory_space<vmem>>, %arg4: memref<256x128xbf16, #tpu.memory_space<vmem>>) attributes {dimension_semantics = [#tpu.dimension_semantics<parallel>], iteration_bounds = array<i64: 2>, scalar_prefetch = 0 : i64, scratch_operands = 0 : i64, tpu.core_type = #tpu.core_type<tc>, window_params = [{transform_indices = @transform_0, window_bounds = array<i64: 256, 128>}, {pipeline_mode = #tpu.pipeline_mode<synchronous>, transform_indices = @transform_1, window_bounds = array<i64: 128, 128>}, {pipeline_mode = #tpu.pipeline_mode<synchronous>, transform_indices = @transform_2, window_bounds = array<i64: 1, 128>}, {transform_indices = @transform_3, window_bounds = array<i64: 256, 128>}]} {
    %c0 = arith.constant 0 : index
    %c0_0 = arith.constant 0 : index
    %0 = vector.load %arg1[%c0, %c0_0] : memref<256x128xbf16, #tpu.memory_space<vmem>>, vector<256x128xbf16>
    %c0_1 = arith.constant 0 : index
    %c0_2 = arith.constant 0 : index
    %1 = vector.load %arg2[%c0_1, %c0_2] : memref<128x128xbf16, #tpu.memory_space<vmem>>, vector<128x128xbf16>
    %cst = arith.constant dense<0.000000e+00> : vector<256x128xf32>
    %2 = tpu.matmul %0, %1, %cst {dimension_numbers = #tpu.dot_dimension_numbers<[1], [0], [0], [1], [0, 0, 1, 1], [], []>} : vector<256x128xbf16>, vector<128x128xbf16>, vector<256x128xf32> -> vector<256x128xf32>
    %c0_3 = arith.constant 0 : index
    %c0_4 = arith.constant 0 : index
    %3 = vector.load %arg3[%c0_3, %c0_4] : memref<1x128xf32, #tpu.memory_space<vmem>>, vector<1x128xf32>
    %4 = vector.broadcast %3 : vector<1x128xf32> to vector<256x128xf32>
    %5 = arith.addf %2, %4 : vector<256x128xf32>
    %6 = math.tanh %5 : vector<256x128xf32>
    %7 = arith.truncf %6 : vector<256x128xf32> to vector<256x128xbf16>
    %c0_5 = arith.constant 0 : index
    %c0_6 = arith.constant 0 : index
    %8 = vector.load %arg4[%c0_5, %c0_6] : memref<256x128xbf16, #tpu.memory_space<vmem>>, vector<256x128xbf16>
    tpu.vector_store %arg4[%c0_5, %c0_6], %7 {strides = array<i32>} : memref<256x128xbf16, #tpu.memory_space<vmem>>, vector<256x128xbf16>,
    return
  }
  func.func @transform_0(%arg0: i32) -> (i32, i32) {
    %c0_i32 = arith.constant 0 : i32
    %c0_i32_0 = arith.constant 0 : i32
    return %arg0, %c0_i32 : i32, i32
  }
  func.func @transform_1(%arg0: i32) -> (i32, i32) {
    %c0_i32 = arith.constant 0 : i32
    %c0_i32_0 = arith.constant 0 : i32
    %c0_i32_1 = arith.constant 0 : i32
    return %c0_i32, %c0_i32_0 : i32, i32
  }
  func.func @transform_2(%arg0: i32) -> (i32, i32) {
    %c0_i32 = arith.constant 0 : i32
    %c0_i32_0 = arith.constant 0 : i32
    %c0_i32_1 = arith.constant 0 : i32
    return %c0_i32, %c0_i32_0 : i32, i32
  }
  func.func @transform_3(%arg0: i32) -> (i32, i32) {
    %c0_i32 = arith.constant 0 : i32
    %c0_i32_0 = arith.constant 0 : i32
    return %arg0, %c0_i32 : i32, i32
  }
}

module attributes {stable_mosaic.version = 11 : i64} {
  func.func @_matmul_bias_act_kernel(%arg0: i32, %arg1: memref<32x512xbf16, #tpu.memory_space<vmem>>, %arg2: memref<512x128xbf16, #tpu.memory_space<vmem>>, %arg3: memref<1x128xf32, #tpu.memory_space<vmem>>, %arg4: memref<32x128xbf16, #tpu.memory_space<vmem>>) attributes {dimension_semantics = [#tpu.dimension_semantics<parallel>], iteration_bounds = array<i64: 1>, scalar_prefetch = 0 : i64, scratch_operands = 0 : i64, tpu.core_type = #tpu.core_type<tc>, window_params = [{transform_indices = @transform_0, window_bounds = array<i64: 32, 512>}, {pipeline_mode = #tpu.pipeline_mode<synchronous>, transform_indices = @transform_1, window_bounds = array<i64: 512, 128>}, {pipeline_mode = #tpu.pipeline_mode<synchronous>, transform_indices = @transform_2, window_bounds = array<i64: 1, 128>}, {transform_indices = @transform_3, window_bounds = array<i64: 32, 128>}]} {
    %c0 = arith.constant 0 : index
    %c0_0 = arith.constant 0 : index
    %0 = vector.load %arg1[%c0, %c0_0] : memref<32x512xbf16, #tpu.memory_space<vmem>>, vector<32x512xbf16>
    %c0_1 = arith.constant 0 : index
    %c0_2 = arith.constant 0 : index
    %1 = vector.load %arg2[%c0_1, %c0_2] : memref<512x128xbf16, #tpu.memory_space<vmem>>, vector<512x128xbf16>
    %cst = arith.constant dense<0.000000e+00> : vector<32x128xf32>
    %2 = tpu.matmul %0, %1, %cst {dimension_numbers = #tpu.dot_dimension_numbers<[1], [0], [0], [1], [0, 0, 1, 1], [], []>} : vector<32x512xbf16>, vector<512x128xbf16>, vector<32x128xf32> -> vector<32x128xf32>
    %c0_3 = arith.constant 0 : index
    %c0_4 = arith.constant 0 : index
    %3 = vector.load %arg3[%c0_3, %c0_4] : memref<1x128xf32, #tpu.memory_space<vmem>>, vector<1x128xf32>
    %4 = vector.broadcast %3 : vector<1x128xf32> to vector<32x128xf32>
    %5 = arith.addf %2, %4 : vector<32x128xf32>
    %6 = math.tanh %5 : vector<32x128xf32>
    %7 = arith.truncf %6 : vector<32x128xf32> to vector<32x128xbf16>
    %c0_5 = arith.constant 0 : index
    %c0_6 = arith.constant 0 : index
    %8 = vector.load %arg4[%c0_5, %c0_6] : memref<32x128xbf16, #tpu.memory_space<vmem>>, vector<32x128xbf16>
    tpu.vector_store %arg4[%c0_5, %c0_6], %7 {strides = array<i32>} : memref<32x128xbf16, #tpu.memory_space<vmem>>, vector<32x128xbf16>,
    return
  }
  func.func @transform_0(%arg0: i32) -> (i32, i32) {
    %c0_i32 = arith.constant 0 : i32
    %c0_i32_0 = arith.constant 0 : i32
    return %arg0, %c0_i32 : i32, i32
  }
  func.func @transform_1(%arg0: i32) -> (i32, i32) {
    %c0_i32 = arith.constant 0 : i32
    %c0_i32_0 = arith.constant 0 : i32
    %c0_i32_1 = arith.constant 0 : i32
    return %c0_i32, %c0_i32_0 : i32, i32
  }
  func.func @transform_2(%arg0: i32) -> (i32, i32) {
    %c0_i32 = arith.constant 0 : i32
    %c0_i32_0 = arith.constant 0 : i32
    %c0_i32_1 = arith.constant 0 : i32
    return %c0_i32, %c0_i32_0 : i32, i32
  }
  func.func @transform_3(%arg0: i32) -> (i32, i32) {
    %c0_i32 = arith.constant 0 : i32
    %c0_i32_0 = arith.constant 0 : i32
    return %arg0, %c0_i32 : i32, i32
  }
}

module attributes {stable_mosaic.version = 11 : i64} {
  func.func @_encoder_head_kernel(%arg0: i32, %arg1: memref<2x512xbf16, #tpu.memory_space<vmem>>, %arg2: memref<512x256xbf16, #tpu.memory_space<vmem>>, %arg3: memref<1x256xf32, #tpu.memory_space<vmem>>, %arg4: memref<2x128xf32, #tpu.memory_space<vmem>>, %arg5: memref<2x128xf32, #tpu.memory_space<vmem>>, %arg6: memref<2x128xf32, #tpu.memory_space<vmem>>, %arg7: memref<2x128xf32, #tpu.memory_space<vmem>>) attributes {dimension_semantics = [#tpu.dimension_semantics<arbitrary>], iteration_bounds = array<i64: 1>, scalar_prefetch = 0 : i64, scratch_operands = 0 : i64, tpu.core_type = #tpu.core_type<tc>, window_params = [{pipeline_mode = #tpu.pipeline_mode<synchronous>, transform_indices = @transform_0, window_bounds = array<i64: 2, 512>}, {pipeline_mode = #tpu.pipeline_mode<synchronous>, transform_indices = @transform_1, window_bounds = array<i64: 512, 256>}, {pipeline_mode = #tpu.pipeline_mode<synchronous>, transform_indices = @transform_2, window_bounds = array<i64: 1, 256>}, {pipeline_mode = #tpu.pipeline_mode<synchronous>, transform_indices = @transform_3, window_bounds = array<i64: 2, 128>}, {pipeline_mode = #tpu.pipeline_mode<synchronous>, transform_indices = @transform_4, window_bounds = array<i64: 2, 128>}, {pipeline_mode = #tpu.pipeline_mode<synchronous>, transform_indices = @transform_5, window_bounds = array<i64: 2, 128>}, {pipeline_mode = #tpu.pipeline_mode<synchronous>, transform_indices = @transform_6, window_bounds = array<i64: 2, 128>}]} {
    %c0 = arith.constant 0 : index
    %c0_0 = arith.constant 0 : index
    %0 = vector.load %arg1[%c0, %c0_0] : memref<2x512xbf16, #tpu.memory_space<vmem>>, vector<2x512xbf16>
    %c0_1 = arith.constant 0 : index
    %c0_2 = arith.constant 0 : index
    %1 = vector.load %arg2[%c0_1, %c0_2] : memref<512x256xbf16, #tpu.memory_space<vmem>>, vector<512x256xbf16>
    %cst = arith.constant dense<0.000000e+00> : vector<2x256xf32>
    %2 = tpu.matmul %0, %1, %cst {dimension_numbers = #tpu.dot_dimension_numbers<[1], [0], [0], [1], [0, 0, 1, 1], [], []>} : vector<2x512xbf16>, vector<512x256xbf16>, vector<2x256xf32> -> vector<2x256xf32>
    %c0_3 = arith.constant 0 : index
    %c0_4 = arith.constant 0 : index
    %3 = vector.load %arg3[%c0_3, %c0_4] : memref<1x256xf32, #tpu.memory_space<vmem>>, vector<1x256xf32>
    %4 = vector.broadcast %3 : vector<1x256xf32> to vector<2x256xf32>
    %5 = arith.addf %2, %4 : vector<2x256xf32>
    %6 = vector.extract_strided_slice %5 {offsets = [0, 0], sizes = [2, 128], strides = [1, 1]} : vector<2x256xf32> to vector<2x128xf32>
    %7 = math.tanh %6 : vector<2x128xf32>
    %8 = vector.extract_strided_slice %5 {offsets = [0, 128], sizes = [2, 128], strides = [1, 1]} : vector<2x256xf32> to vector<2x128xf32>
    %9 = arith.negf %8 : vector<2x128xf32>
    %10 = math.exp %9 : vector<2x128xf32>
    %cst_5 = arith.constant 1.000000e+00 : f32
    %11 = vector.broadcast %cst_5 : f32 to vector<2x128xf32>
    %12 = arith.addf %11, %10 : vector<2x128xf32>
    %13 = arith.divf %11, %12 : vector<2x128xf32>
    %cst_6 = arith.constant 5.000000e-01 : f32
    %14 = vector.broadcast %cst_6 : f32 to vector<2x128xf32>
    %15 = arith.mulf %14, %13 : vector<2x128xf32>
    %16 = math.exp %15 : vector<2x128xf32>
    %c0_7 = arith.constant 0 : index
    %c0_8 = arith.constant 0 : index
    %17 = vector.load %arg6[%c0_7, %c0_8] : memref<2x128xf32, #tpu.memory_space<vmem>>, vector<2x128xf32>
    tpu.vector_store %arg6[%c0_7, %c0_8], %7 {strides = array<i32>} : memref<2x128xf32, #tpu.memory_space<vmem>>, vector<2x128xf32>,
    %c0_9 = arith.constant 0 : index
    %c0_10 = arith.constant 0 : index
    %18 = vector.load %arg7[%c0_9, %c0_10] : memref<2x128xf32, #tpu.memory_space<vmem>>, vector<2x128xf32>
    tpu.vector_store %arg7[%c0_9, %c0_10], %16 {strides = array<i32>} : memref<2x128xf32, #tpu.memory_space<vmem>>, vector<2x128xf32>,
    %c0_11 = arith.constant 0 : index
    %c0_12 = arith.constant 0 : index
    %19 = vector.load %arg4[%c0_11, %c0_12] : memref<2x128xf32, #tpu.memory_space<vmem>>, vector<2x128xf32>
    %20 = arith.mulf %16, %19 : vector<2x128xf32>
    %21 = arith.addf %7, %20 : vector<2x128xf32>
    %c0_13 = arith.constant 0 : index
    %c0_14 = arith.constant 0 : index
    %22 = vector.load %arg5[%c0_13, %c0_14] : memref<2x128xf32, #tpu.memory_space<vmem>>, vector<2x128xf32>
    tpu.vector_store %arg5[%c0_13, %c0_14], %21 {strides = array<i32>} : memref<2x128xf32, #tpu.memory_space<vmem>>, vector<2x128xf32>,
    return
  }
  func.func @transform_0(%arg0: i32) -> (i32, i32) {
    %c0_i32 = arith.constant 0 : i32
    %c0_i32_0 = arith.constant 0 : i32
    %c0_i32_1 = arith.constant 0 : i32
    return %c0_i32, %c0_i32_0 : i32, i32
  }
  func.func @transform_1(%arg0: i32) -> (i32, i32) {
    %c0_i32 = arith.constant 0 : i32
    %c0_i32_0 = arith.constant 0 : i32
    %c0_i32_1 = arith.constant 0 : i32
    return %c0_i32, %c0_i32_0 : i32, i32
  }
  func.func @transform_2(%arg0: i32) -> (i32, i32) {
    %c0_i32 = arith.constant 0 : i32
    %c0_i32_0 = arith.constant 0 : i32
    %c0_i32_1 = arith.constant 0 : i32
    return %c0_i32, %c0_i32_0 : i32, i32
  }
  func.func @transform_3(%arg0: i32) -> (i32, i32) {
    %c0_i32 = arith.constant 0 : i32
    %c0_i32_0 = arith.constant 0 : i32
    %c0_i32_1 = arith.constant 0 : i32
    return %c0_i32, %c0_i32_0 : i32, i32
  }
  func.func @transform_4(%arg0: i32) -> (i32, i32) {
    %c0_i32 = arith.constant 0 : i32
    %c0_i32_0 = arith.constant 0 : i32
    %c0_i32_1 = arith.constant 0 : i32
    return %c0_i32, %c0_i32_0 : i32, i32
  }
  func.func @transform_5(%arg0: i32) -> (i32, i32) {
    %c0_i32 = arith.constant 0 : i32
    %c0_i32_0 = arith.constant 0 : i32
    %c0_i32_1 = arith.constant 0 : i32
    return %c0_i32, %c0_i32_0 : i32, i32
  }
  func.func @transform_6(%arg0: i32) -> (i32, i32) {
    %c0_i32 = arith.constant 0 : i32
    %c0_i32_0 = arith.constant 0 : i32
    %c0_i32_1 = arith.constant 0 : i32
    return %c0_i32, %c0_i32_0 : i32, i32
  }
}

module attributes {stable_mosaic.version = 11 : i64} {
  func.func @_matmul_bias_act_kernel(%arg0: i32, %arg1: memref<16x128xbf16, #tpu.memory_space<vmem>>, %arg2: memref<128x512xbf16, #tpu.memory_space<vmem>>, %arg3: memref<1x512xf32, #tpu.memory_space<vmem>>, %arg4: memref<16x512xbf16, #tpu.memory_space<vmem>>) attributes {dimension_semantics = [#tpu.dimension_semantics<parallel>], iteration_bounds = array<i64: 1>, scalar_prefetch = 0 : i64, scratch_operands = 0 : i64, tpu.core_type = #tpu.core_type<tc>, window_params = [{transform_indices = @transform_0, window_bounds = array<i64: 16, 128>}, {pipeline_mode = #tpu.pipeline_mode<synchronous>, transform_indices = @transform_1, window_bounds = array<i64: 128, 512>}, {pipeline_mode = #tpu.pipeline_mode<synchronous>, transform_indices = @transform_2, window_bounds = array<i64: 1, 512>}, {transform_indices = @transform_3, window_bounds = array<i64: 16, 512>}]} {
    %c0 = arith.constant 0 : index
    %c0_0 = arith.constant 0 : index
    %0 = vector.load %arg1[%c0, %c0_0] : memref<16x128xbf16, #tpu.memory_space<vmem>>, vector<16x128xbf16>
    %c0_1 = arith.constant 0 : index
    %c0_2 = arith.constant 0 : index
    %1 = vector.load %arg2[%c0_1, %c0_2] : memref<128x512xbf16, #tpu.memory_space<vmem>>, vector<128x512xbf16>
    %cst = arith.constant dense<0.000000e+00> : vector<16x512xf32>
    %2 = tpu.matmul %0, %1, %cst {dimension_numbers = #tpu.dot_dimension_numbers<[1], [0], [0], [1], [0, 0, 1, 1], [], []>} : vector<16x128xbf16>, vector<128x512xbf16>, vector<16x512xf32> -> vector<16x512xf32>
    %c0_3 = arith.constant 0 : index
    %c0_4 = arith.constant 0 : index
    %3 = vector.load %arg3[%c0_3, %c0_4] : memref<1x512xf32, #tpu.memory_space<vmem>>, vector<1x512xf32>
    %4 = vector.broadcast %3 : vector<1x512xf32> to vector<16x512xf32>
    %5 = arith.addf %2, %4 : vector<16x512xf32>
    %6 = math.tanh %5 : vector<16x512xf32>
    %7 = arith.truncf %6 : vector<16x512xf32> to vector<16x512xbf16>
    %c0_5 = arith.constant 0 : index
    %c0_6 = arith.constant 0 : index
    %8 = vector.load %arg4[%c0_5, %c0_6] : memref<16x512xbf16, #tpu.memory_space<vmem>>, vector<16x512xbf16>
    tpu.vector_store %arg4[%c0_5, %c0_6], %7 {strides = array<i32>} : memref<16x512xbf16, #tpu.memory_space<vmem>>, vector<16x512xbf16>,
    return
  }
  func.func @transform_0(%arg0: i32) -> (i32, i32) {
    %c0_i32 = arith.constant 0 : i32
    %c0_i32_0 = arith.constant 0 : i32
    return %arg0, %c0_i32 : i32, i32
  }
  func.func @transform_1(%arg0: i32) -> (i32, i32) {
    %c0_i32 = arith.constant 0 : i32
    %c0_i32_0 = arith.constant 0 : i32
    %c0_i32_1 = arith.constant 0 : i32
    return %c0_i32, %c0_i32_0 : i32, i32
  }
  func.func @transform_2(%arg0: i32) -> (i32, i32) {
    %c0_i32 = arith.constant 0 : i32
    %c0_i32_0 = arith.constant 0 : i32
    %c0_i32_1 = arith.constant 0 : i32
    return %c0_i32, %c0_i32_0 : i32, i32
  }
  func.func @transform_3(%arg0: i32) -> (i32, i32) {
    %c0_i32 = arith.constant 0 : i32
    %c0_i32_0 = arith.constant 0 : i32
    return %arg0, %c0_i32 : i32, i32
  }
}

module attributes {stable_mosaic.version = 11 : i64} {
  func.func @_matmul_bias_act_kernel(%arg0: i32, %arg1: memref<256x896xbf16, #tpu.memory_space<vmem>>, %arg2: memref<896x128xbf16, #tpu.memory_space<vmem>>, %arg3: memref<1x128xf32, #tpu.memory_space<vmem>>, %arg4: memref<256x128xbf16, #tpu.memory_space<vmem>>) attributes {dimension_semantics = [#tpu.dimension_semantics<parallel>], iteration_bounds = array<i64: 1>, scalar_prefetch = 0 : i64, scratch_operands = 0 : i64, tpu.core_type = #tpu.core_type<tc>, window_params = [{transform_indices = @transform_0, window_bounds = array<i64: 256, 896>}, {pipeline_mode = #tpu.pipeline_mode<synchronous>, transform_indices = @transform_1, window_bounds = array<i64: 896, 128>}, {pipeline_mode = #tpu.pipeline_mode<synchronous>, transform_indices = @transform_2, window_bounds = array<i64: 1, 128>}, {transform_indices = @transform_3, window_bounds = array<i64: 256, 128>}]} {
    %c0 = arith.constant 0 : index
    %c0_0 = arith.constant 0 : index
    %0 = vector.load %arg1[%c0, %c0_0] : memref<256x896xbf16, #tpu.memory_space<vmem>>, vector<256x896xbf16>
    %c0_1 = arith.constant 0 : index
    %c0_2 = arith.constant 0 : index
    %1 = vector.load %arg2[%c0_1, %c0_2] : memref<896x128xbf16, #tpu.memory_space<vmem>>, vector<896x128xbf16>
    %cst = arith.constant dense<0.000000e+00> : vector<256x128xf32>
    %2 = tpu.matmul %0, %1, %cst {dimension_numbers = #tpu.dot_dimension_numbers<[1], [0], [0], [1], [0, 0, 1, 1], [], []>} : vector<256x896xbf16>, vector<896x128xbf16>, vector<256x128xf32> -> vector<256x128xf32>
    %c0_3 = arith.constant 0 : index
    %c0_4 = arith.constant 0 : index
    %3 = vector.load %arg3[%c0_3, %c0_4] : memref<1x128xf32, #tpu.memory_space<vmem>>, vector<1x128xf32>
    %4 = vector.broadcast %3 : vector<1x128xf32> to vector<256x128xf32>
    %5 = arith.addf %2, %4 : vector<256x128xf32>
    %6 = math.tanh %5 : vector<256x128xf32>
    %7 = arith.truncf %6 : vector<256x128xf32> to vector<256x128xbf16>
    %c0_5 = arith.constant 0 : index
    %c0_6 = arith.constant 0 : index
    %8 = vector.load %arg4[%c0_5, %c0_6] : memref<256x128xbf16, #tpu.memory_space<vmem>>, vector<256x128xbf16>
    tpu.vector_store %arg4[%c0_5, %c0_6], %7 {strides = array<i32>} : memref<256x128xbf16, #tpu.memory_space<vmem>>, vector<256x128xbf16>,
    return
  }
  func.func @transform_0(%arg0: i32) -> (i32, i32) {
    %c0_i32 = arith.constant 0 : i32
    %c0_i32_0 = arith.constant 0 : i32
    return %arg0, %c0_i32 : i32, i32
  }
  func.func @transform_1(%arg0: i32) -> (i32, i32) {
    %c0_i32 = arith.constant 0 : i32
    %c0_i32_0 = arith.constant 0 : i32
    %c0_i32_1 = arith.constant 0 : i32
    return %c0_i32, %c0_i32_0 : i32, i32
  }
  func.func @transform_2(%arg0: i32) -> (i32, i32) {
    %c0_i32 = arith.constant 0 : i32
    %c0_i32_0 = arith.constant 0 : i32
    %c0_i32_1 = arith.constant 0 : i32
    return %c0_i32, %c0_i32_0 : i32, i32
  }
  func.func @transform_3(%arg0: i32) -> (i32, i32) {
    %c0_i32 = arith.constant 0 : i32
    %c0_i32_0 = arith.constant 0 : i32
    return %arg0, %c0_i32 : i32, i32
  }
}

module attributes {stable_mosaic.version = 11 : i64} {
  func.func @_matmul_bias_act_kernel(%arg0: i32, %arg1: memref<256x512xbf16, #tpu.memory_space<vmem>>, %arg2: memref<512x128xbf16, #tpu.memory_space<vmem>>, %arg3: memref<1x128xf32, #tpu.memory_space<vmem>>, %arg4: memref<256x128xbf16, #tpu.memory_space<vmem>>) attributes {dimension_semantics = [#tpu.dimension_semantics<parallel>], iteration_bounds = array<i64: 5>, scalar_prefetch = 0 : i64, scratch_operands = 0 : i64, tpu.core_type = #tpu.core_type<tc>, window_params = [{transform_indices = @transform_0, window_bounds = array<i64: 256, 512>}, {pipeline_mode = #tpu.pipeline_mode<synchronous>, transform_indices = @transform_1, window_bounds = array<i64: 512, 128>}, {pipeline_mode = #tpu.pipeline_mode<synchronous>, transform_indices = @transform_2, window_bounds = array<i64: 1, 128>}, {transform_indices = @transform_3, window_bounds = array<i64: 256, 128>}]} {
    %c0 = arith.constant 0 : index
    %c0_0 = arith.constant 0 : index
    %0 = vector.load %arg1[%c0, %c0_0] : memref<256x512xbf16, #tpu.memory_space<vmem>>, vector<256x512xbf16>
    %c0_1 = arith.constant 0 : index
    %c0_2 = arith.constant 0 : index
    %1 = vector.load %arg2[%c0_1, %c0_2] : memref<512x128xbf16, #tpu.memory_space<vmem>>, vector<512x128xbf16>
    %cst = arith.constant dense<0.000000e+00> : vector<256x128xf32>
    %2 = tpu.matmul %0, %1, %cst {dimension_numbers = #tpu.dot_dimension_numbers<[1], [0], [0], [1], [0, 0, 1, 1], [], []>} : vector<256x512xbf16>, vector<512x128xbf16>, vector<256x128xf32> -> vector<256x128xf32>
    %c0_3 = arith.constant 0 : index
    %c0_4 = arith.constant 0 : index
    %3 = vector.load %arg3[%c0_3, %c0_4] : memref<1x128xf32, #tpu.memory_space<vmem>>, vector<1x128xf32>
    %4 = vector.broadcast %3 : vector<1x128xf32> to vector<256x128xf32>
    %5 = arith.addf %2, %4 : vector<256x128xf32>
    %6 = math.tanh %5 : vector<256x128xf32>
    %7 = arith.truncf %6 : vector<256x128xf32> to vector<256x128xbf16>
    %c0_5 = arith.constant 0 : index
    %c0_6 = arith.constant 0 : index
    %8 = vector.load %arg4[%c0_5, %c0_6] : memref<256x128xbf16, #tpu.memory_space<vmem>>, vector<256x128xbf16>
    tpu.vector_store %arg4[%c0_5, %c0_6], %7 {strides = array<i32>} : memref<256x128xbf16, #tpu.memory_space<vmem>>, vector<256x128xbf16>,
    return
  }
  func.func @transform_0(%arg0: i32) -> (i32, i32) {
    %c0_i32 = arith.constant 0 : i32
    %c0_i32_0 = arith.constant 0 : i32
    return %arg0, %c0_i32 : i32, i32
  }
  func.func @transform_1(%arg0: i32) -> (i32, i32) {
    %c0_i32 = arith.constant 0 : i32
    %c0_i32_0 = arith.constant 0 : i32
    %c0_i32_1 = arith.constant 0 : i32
    return %c0_i32, %c0_i32_0 : i32, i32
  }
  func.func @transform_2(%arg0: i32) -> (i32, i32) {
    %c0_i32 = arith.constant 0 : i32
    %c0_i32_0 = arith.constant 0 : i32
    %c0_i32_1 = arith.constant 0 : i32
    return %c0_i32, %c0_i32_0 : i32, i32
  }
  func.func @transform_3(%arg0: i32) -> (i32, i32) {
    %c0_i32 = arith.constant 0 : i32
    %c0_i32_0 = arith.constant 0 : i32
    return %arg0, %c0_i32 : i32, i32
  }
}

module attributes {stable_mosaic.version = 11 : i64} {
  func.func @_matmul_bias_act_kernel(%arg0: i32, %arg1: memref<256x128xbf16, #tpu.memory_space<vmem>>, %arg2: memref<128x128xbf16, #tpu.memory_space<vmem>>, %arg3: memref<1x128xf32, #tpu.memory_space<vmem>>, %arg4: memref<256x128xf32, #tpu.memory_space<vmem>>) attributes {dimension_semantics = [#tpu.dimension_semantics<parallel>], iteration_bounds = array<i64: 7>, scalar_prefetch = 0 : i64, scratch_operands = 0 : i64, tpu.core_type = #tpu.core_type<tc>, window_params = [{transform_indices = @transform_0, window_bounds = array<i64: 256, 128>}, {pipeline_mode = #tpu.pipeline_mode<synchronous>, transform_indices = @transform_1, window_bounds = array<i64: 128, 128>}, {pipeline_mode = #tpu.pipeline_mode<synchronous>, transform_indices = @transform_2, window_bounds = array<i64: 1, 128>}, {transform_indices = @transform_3, window_bounds = array<i64: 256, 128>}]} {
    %c0 = arith.constant 0 : index
    %c0_0 = arith.constant 0 : index
    %0 = vector.load %arg1[%c0, %c0_0] : memref<256x128xbf16, #tpu.memory_space<vmem>>, vector<256x128xbf16>
    %c0_1 = arith.constant 0 : index
    %c0_2 = arith.constant 0 : index
    %1 = vector.load %arg2[%c0_1, %c0_2] : memref<128x128xbf16, #tpu.memory_space<vmem>>, vector<128x128xbf16>
    %cst = arith.constant dense<0.000000e+00> : vector<256x128xf32>
    %2 = tpu.matmul %0, %1, %cst {dimension_numbers = #tpu.dot_dimension_numbers<[1], [0], [0], [1], [0, 0, 1, 1], [], []>} : vector<256x128xbf16>, vector<128x128xbf16>, vector<256x128xf32> -> vector<256x128xf32>
    %c0_3 = arith.constant 0 : index
    %c0_4 = arith.constant 0 : index
    %3 = vector.load %arg3[%c0_3, %c0_4] : memref<1x128xf32, #tpu.memory_space<vmem>>, vector<1x128xf32>
    %4 = vector.broadcast %3 : vector<1x128xf32> to vector<256x128xf32>
    %5 = arith.addf %2, %4 : vector<256x128xf32>
    %6 = arith.negf %5 : vector<256x128xf32>
    %7 = math.exp %6 : vector<256x128xf32>
    %cst_5 = arith.constant 1.000000e+00 : f32
    %8 = vector.broadcast %cst_5 : f32 to vector<256x128xf32>
    %9 = arith.addf %8, %7 : vector<256x128xf32>
    %10 = arith.divf %8, %9 : vector<256x128xf32>
    %c0_6 = arith.constant 0 : index
    %c0_7 = arith.constant 0 : index
    %11 = vector.load %arg4[%c0_6, %c0_7] : memref<256x128xf32, #tpu.memory_space<vmem>>, vector<256x128xf32>
    tpu.vector_store %arg4[%c0_6, %c0_7], %10 {strides = array<i32>} : memref<256x128xf32, #tpu.memory_space<vmem>>, vector<256x128xf32>,
    return
  }
  func.func @transform_0(%arg0: i32) -> (i32, i32) {
    %c0_i32 = arith.constant 0 : i32
    %c0_i32_0 = arith.constant 0 : i32
    return %arg0, %c0_i32 : i32, i32
  }
  func.func @transform_1(%arg0: i32) -> (i32, i32) {
    %c0_i32 = arith.constant 0 : i32
    %c0_i32_0 = arith.constant 0 : i32
    %c0_i32_1 = arith.constant 0 : i32
    return %c0_i32, %c0_i32_0 : i32, i32
  }
  func.func @transform_2(%arg0: i32) -> (i32, i32) {
    %c0_i32 = arith.constant 0 : i32
    %c0_i32_0 = arith.constant 0 : i32
    %c0_i32_1 = arith.constant 0 : i32
    return %c0_i32, %c0_i32_0 : i32, i32
  }
  func.func @transform_3(%arg0: i32) -> (i32, i32) {
    %c0_i32 = arith.constant 0 : i32
    %c0_i32_0 = arith.constant 0 : i32
    return %arg0, %c0_i32 : i32, i32
  }
}

</mosaic_0001>

<bundles_post_ra>
// kernel: cvae_forward.7
= control target key start
LH: loop header
LB: loop body
LE: loop exit
PB: predicated region body
PF: predicated region fallthrough
CT: control target
= control target key end

     0   :  { %s1190_s12 = smov 0   ;;  %s1311_s0 = inlined_call_operand.vmem [shape: bf16[512,128], index: 0, kind: input, shape index: {}]   ;;  %s1312_s1 = inlined_call_operand.vmem [shape: bf16[128,128], index: 1, kind: input, shape index: {}]   ;;  %s1313_s2 = inlined_call_operand.vmem [shape: f32[1,128], index: 2, kind: input, shape index: {}]   ;;  %s1314_s3 = inlined_call_operand.vmem [shape: bf16[512,128], index: 3, kind: output, shape index: {}]  }
   0x1 LB: > { %s783_s13 = sadd.s32 4294967295, %s1168_s12   ;;  %p787_p0 = scmp.ge.s32.totalorder %s1168_s12, 1  ;;  %s1168_s12 = sphi %s1190_s12, %s13_s12  }
   0x2   : > { %p138_p1 = scmp.lt.s32.totalorder %s1168_s12, 3 }
   0x4   : > { %p139_p2 = pnand %p787_p0, %p138_p1 }
   0x5   : > { %s788_s16 = sshll.u32 (!%p139_p2), %s783_s13, 5 }
   0x6   : > { %142 = sbr.rel (%p139_p2) target bundleno = 287 (0x11f), region = 32  ;;  %p163_p3 = scmp.lt.s32.totalorder (!%p139_p2), %s788_s16, 63 }
   0xb   : > { %v1074_v0 = vld [vmem:[%s1312_s1 + $0x38] sm:$0xff]   ;;  %v1075_v1 = vld [vmem:[%s1312_s1 + $0x30] sm:$0xff]   ;;  %s1316_s16 = smov (!%p163_p3, %s788_s16), 63  ;;  %v1076_v2 = vld [vmem:[%s1312_s1 + $0x28] sm:$0xff]  }
   0xc   : > { %1002 = vmatprep.subr.bf16.mxu0 %v1074_v0  ;;  %1050 = vmatprep.subr.bf16.mxu1 %v1074_v0  ;;  %s789_s21 = sshll.u32 %s1316_s16, 2  ;;  %v1077_v3 = vld [vmem:[%s1312_s1 + $0x20] sm:$0xff]   ;;  %v1078_v6 = vld [vmem:[%s1312_s1 + $0x18] sm:$0xff]   ;;  %v1079_v7 = vld [vmem:[%s1312_s1 + $0x10] sm:$0xff]  }
   0xd   : > { %1003 = vmatpush3.bf16.msra.mxu0 %v1074_v0  ;;  %1058 = vmatpush3.bf16.msra.mxu1 %v1074_v0  ;;  %s1215_s24 = scalar_lea.vmem %s1311_s0, %s789_s21  ;;  %v1080_v8 = vld [vmem:[%s1312_s1 + $0x8] sm:$0xff]   ;;  %v1081_v9 = vld [vmem:[%s1312_s1] sm:$0xff]   ;;  %s1278_s13 = scalar_lea.vmem %s1314_s3, %s789_s21 }
   0xe   : > { %1004 = vmatprep.subr.bf16.mxu0 %v1075_v1  ;;  %1051 = vmatprep.subr.bf16.mxu1 %v1075_v1  ;;  %v1082_v4 = vld [vmem:[%s1215_s24] sm:$0xff]   ;;  %v1084_v10 = vld [vmem:[%s1215_s24 + $0x8] sm:$0xff]   ;;  %v1086_v12 = vld [vmem:[%s1215_s24 + $0x10] sm:$0xff]  }
   0xf   : > { %v1083_v5 = vld [vmem:[%s1215_s24 + $0x40] sm:$0xff]   ;;  %1018 = vmatprep.mubr.bf16.mxu0 %v1082_v4  ;;  %v1085_v11 = vld [vmem:[%s1215_s24 + $0x48] sm:$0xff]   ;;  %v1087_v13 = vld [vmem:[%s1215_s24 + $0x50] sm:$0xff]  }
  0x10   : > { %1034 = vmatprep.mubr.bf16.mxu1 %v1083_v5  ;;  %v1088_v14 = vld [vmem:[%s1215_s24 + $0x18] sm:$0xff]   ;;  %v1090_v16 = vld [vmem:[%s1215_s24 + $0x20] sm:$0xff]   ;;  %v1092_v18 = vld [vmem:[%s1215_s24 + $0x28] sm:$0xff]  }
  0x11   : > { %1005 = vmatpush3.bf16.msra.mxu0 %v1075_v1  ;;  %1059 = vmatpush3.bf16.msra.mxu1 %v1075_v1  ;;  %v1089_v15 = vld [vmem:[%s1215_s24 + $0x58] sm:$0xff]   ;;  %v1091_v17 = vld [vmem:[%s1215_s24 + $0x60] sm:$0xff]   ;;  %v1093_v19 = vld [vmem:[%s1215_s24 + $0x68] sm:$0xff]  }
  0x12   : > { %1006 = vmatprep.subr.bf16.mxu0 %v1076_v2  ;;  %1052 = vmatprep.subr.bf16.mxu1 %v1076_v2  ;;  %v1094_v20 = vld [vmem:[%s1215_s24 + $0x30] sm:$0xff]   ;;  %v1096_v22 = vld [vmem:[%s1215_s24 + $0x38] sm:$0xff]   ;;  %v1251_v24 = vld [vmem:[%s1313_s2] ss:$0 sm:$0xff] }
  0x13   : > { %v1095_v21 = vld [vmem:[%s1215_s24 + $0x70] sm:$0xff]   ;;  %v1097_v23 = vld [vmem:[%s1215_s24 + $0x78] sm:$0xff]  }
  0x15   : > { %1007 = vmatpush3.bf16.msra.mxu0 %v1076_v2  ;;  %1060 = vmatpush3.bf16.msra.mxu1 %v1076_v2 }
  0x16   : > { %1008 = vmatprep.subr.bf16.mxu0 %v1077_v3  ;;  %1053 = vmatprep.subr.bf16.mxu1 %v1077_v3 }
  0x19   : > { %1009 = vmatpush3.bf16.msra.mxu0 %v1077_v3  ;;  %1061 = vmatpush3.bf16.msra.mxu1 %v1077_v3 }
  0x1a   : > { %1010 = vmatprep.subr.bf16.mxu0 %v1078_v6  ;;  %1054 = vmatprep.subr.bf16.mxu1 %v1078_v6 }
  0x1d   : > { %1011 = vmatpush3.bf16.msra.mxu0 %v1078_v6  ;;  %1062 = vmatpush3.bf16.msra.mxu1 %v1078_v6 }
  0x1e   : > { %1012 = vmatprep.subr.bf16.mxu0 %v1079_v7  ;;  %1055 = vmatprep.subr.bf16.mxu1 %v1079_v7 }
  0x21   : > { %1013 = vmatpush3.bf16.msra.mxu0 %v1079_v7  ;;  %1063 = vmatpush3.bf16.msra.mxu1 %v1079_v7 }
  0x22   : > { %1014 = vmatprep.subr.bf16.mxu0 %v1080_v8  ;;  %1056 = vmatprep.subr.bf16.mxu1 %v1080_v8 }
  0x25   : > { %1015 = vmatpush3.bf16.msra.mxu0 %v1080_v8  ;;  %1064 = vmatpush3.bf16.msra.mxu1 %v1080_v8 }
  0x26   : > { %1016 = vmatprep.subr.bf16.mxu0 %v1081_v9  ;;  %1057 = vmatprep.subr.bf16.mxu1 %v1081_v9 }
  0x29   : > { %1017 = vmatpush3.bf16.msra.mxu0 %v1081_v9  ;;  %1065 = vmatpush3.bf16.msra.mxu1 %v1081_v9 }
  0x2c   : > { %1019 = vmatmul.mubr.bf16.vlgmr.msra.gmra.mxu0 %v1084_v10  ;;  %1035 = vmatmul.mubr.bf16.vlgmr.msra.gmra.mxu1 %v1085_v11 }
  0x2d   : > { %1022 = vmatprep.mubr.bf16.mxu0 %v1086_v12  ;;  %1038 = vmatprep.mubr.bf16.mxu1 %v1087_v13 }
  0x34   : > { %1023 = vmatmul.mubr.bf16.gmra.mxu0 %v1088_v14  ;;  %1039 = vmatmul.mubr.bf16.gmra.mxu1 %v1089_v15 }
  0x35   : > { %1026 = vmatprep.mubr.bf16.mxu0 %v1090_v16  ;;  %1042 = vmatprep.mubr.bf16.mxu1 %v1091_v17 }
  0x3c   : > { %1027 = vmatmul.mubr.bf16.gmra.mxu0 %v1092_v18  ;;  %1043 = vmatmul.mubr.bf16.gmra.mxu1 %v1093_v19 }
  0x3d   : > { %1030 = vmatprep.mubr.bf16.mxu0 %v1094_v20  ;;  %1046 = vmatprep.mubr.bf16.mxu1 %v1095_v21 }
  0x44   : > { %1031 = vmatmul.mubr.bf16.gmra.mxu0 %v1096_v22  ;;  %1047 = vmatmul.mubr.bf16.gmra.mxu1 %v1097_v23 }
  0xec   : > { %v1020_v25 = vpop.f32.mrf.mxu0  ;;  %v1036_v26 = vpop.f32.mrf.mxu1 }
  0xed   : > { %v417_v27 = vadd.f32 %v1020_v25, %v1251_v24  ;;  %v481_v28 = vadd.f32 %v1036_v26, %v1251_v24 }
  0xee   : > { %v408_v29 = vpop.f32.mrf.mxu0  ;;  %v472_v30 = vpop.f32.mrf.mxu1 }
  0xef   : > { %1098 = vtanh.f32 %v417_v27  ;;  %v409_v31 = vadd.f32 %v1251_v24, %v408_v29  ;;  %v473_v32 = vadd.f32 %v1251_v24, %v472_v30 }
  0xf0   : > { %1100 = vtanh.f32 %v481_v28  ;;  %v1021_v33 = vpop.f32.mrf.mxu0  ;;  %v1037_v34 = vpop.f32.mrf.mxu1 }
  0xf1   : > { %1102 = vtanh.f32 %v409_v31  ;;  %v420_v35 = vadd.f32 %v1021_v33, %v1251_v24  ;;  %v484_v36 = vadd.f32 %v1037_v34, %v1251_v24 }
  0xf2   : > { %1104 = vtanh.f32 %v473_v32  ;;  %v411_v37 = vpop.f32.mrf.mxu0  ;;  %v475_v38 = vpop.f32.mrf.mxu1 }
  0xf3   : > { %1106 = vtanh.f32 %v420_v35  ;;  %v412_v39 = vadd.f32 %v1251_v24, %v411_v37  ;;  %v476_v40 = vadd.f32 %v1251_v24, %v475_v38 }
  0xf4   : > { %1108 = vtanh.f32 %v484_v36  ;;  %v1024_v41 = vpop.f32.mrf.mxu0  ;;  %v1040_v42 = vpop.f32.mrf.mxu1 }
  0xf5   : > { %1110 = vtanh.f32 %v412_v39  ;;  %v433_v43 = vadd.f32 %v1024_v41, %v1251_v24  ;;  %v497_v44 = vadd.f32 %v1040_v42, %v1251_v24 }
  0xf6   : > { %1112 = vtanh.f32 %v476_v40  ;;  %v424_v45 = vpop.f32.mrf.mxu0  ;;  %v488_v46 = vpop.f32.mrf.mxu1 }
  0xf7   : > { %1114 = vtanh.f32 %v433_v43  ;;  %v425_v47 = vadd.f32 %v1251_v24, %v424_v45  ;;  %v489_v48 = vadd.f32 %v1251_v24, %v488_v46 }
  0xf8   : > { %1116 = vtanh.f32 %v497_v44  ;;  %v1025_v49 = vpop.f32.mrf.mxu0  ;;  %v1041_v50 = vpop.f32.mrf.mxu1 }
  0xf9   : > { %1118 = vtanh.f32 %v425_v47  ;;  %v436_v51 = vadd.f32 %v1025_v49, %v1251_v24  ;;  %v500_v52 = vadd.f32 %v1041_v50, %v1251_v24 }
  0xfa   : > { %1120 = vtanh.f32 %v489_v48  ;;  %v427_v53 = vpop.f32.mrf.mxu0  ;;  %v491_v54 = vpop.f32.mrf.mxu1 }
  0xfb   : > { %1122 = vtanh.f32 %v436_v51  ;;  %v428_v55 = vadd.f32 %v1251_v24, %v427_v53  ;;  %v492_v56 = vadd.f32 %v1251_v24, %v491_v54 }
  0xfc   : > { %v1099_v57 = vpop.eup %1098  ;;  %1124 = vtanh.f32 %v500_v52  ;;  %v1028_v58 = vpop.f32.mrf.mxu0 }
  0xfd   : > { %v1044_v59 = vpop.f32.mrf.mxu1  ;;  %v1101_v60 = vpop.eup %1100  ;;  %1126 = vtanh.f32 %v428_v55  ;;  %v449_v61 = vadd.f32 %v1028_v58, %v1251_v24 }
  0xfe   : > { %v513_v62 = vadd.f32 %v1044_v59, %v1251_v24  ;;  %v1103_v63 = vpop.eup %1102  ;;  %1128 = vtanh.f32 %v492_v56  ;;  %v440_v0 = vpop.f32.mrf.mxu0 }
  0xff   : > { %v504_v1 = vpop.f32.mrf.mxu1  ;;  %v1105_v2 = vpop.eup %1104  ;;  %1130 = vtanh.f32 %v449_v61  ;;  %v441_v3 = vadd.f32 %v1251_v24, %v440_v0 }
 0x100   : > { %v505_v4 = vadd.f32 %v1251_v24, %v504_v1  ;;  %v1107_v5 = vpop.eup %1106  ;;  %1132 = vtanh.f32 %v513_v62  ;;  %v1029_v6 = vpop.f32.mrf.mxu0 }
 0x101   : > { %v1045_v7 = vpop.f32.mrf.mxu1  ;;  %v1109_v8 = vpop.eup %1108  ;;  %v891_v9 = vpack.c.bf16 %v1107_v5, %v1099_v57  ;;  %1134 = vtanh.f32 %v441_v3  ;;  %v452_v10 = vadd.f32 %v1029_v6, %v1251_v24 }
 0x102   : > { %v516_v11 = vadd.f32 %v1045_v7, %v1251_v24  ;;  %v1111_v12 = vpop.eup %1110  ;;  %v931_v13 = vpack.c.bf16 %v1109_v8, %v1101_v60  ;;  %1136 = vtanh.f32 %v505_v4  ;;  %v443_v14 = vpop.f32.mrf.mxu0 }
 0x103   : > { %v507_v15 = vpop.f32.mrf.mxu1  ;;  %v1113_v16 = vpop.eup %1112  ;;  %963 = vst [vmem:[%s1278_s13 + $0x8] sm:$0xff] %v891_v9   ;;  %v886_v17 = vpack.c.bf16 %v1111_v12, %v1103_v63  ;;  %1138 = vtanh.f32 %v452_v10  ;;  %v444_v18 = vadd.f32 %v1251_v24, %v443_v14 }
 0x104   : > { %v508_v19 = vadd.f32 %v1251_v24, %v507_v15  ;;  %v1115_v20 = vpop.eup %1114  ;;  %971 = vst [vmem:[%s1278_s13 + $0x48] sm:$0xff] %v931_v13   ;;  %v926_v21 = vpack.c.bf16 %v1113_v16, %v1105_v2  ;;  %1140 = vtanh.f32 %v516_v11  ;;  %v1032_v22 = vpop.f32.mrf.mxu0 }
 0x105   : > { %v1048_v23 = vpop.f32.mrf.mxu1  ;;  %v1117_v25 = vpop.eup %1116  ;;  %887 = vst [vmem:[%s1278_s13] sm:$0xff] %v886_v17   ;;  %1142 = vtanh.f32 %v444_v18  ;;  %v465_v26 = vadd.f32 %v1032_v22, %v1251_v24 }
 0x106   : > { %v529_v27 = vadd.f32 %v1048_v23, %v1251_v24  ;;  %v1119_v28 = vpop.eup %1118  ;;  %970 = vst [vmem:[%s1278_s13 + $0x40] sm:$0xff] %v926_v21   ;;  %1144 = vtanh.f32 %v508_v19  ;;  %v456_v29 = vpop.f32.mrf.mxu0 }
 0x107   : > { %v520_v30 = vpop.f32.mrf.mxu1  ;;  %v1121_v31 = vpop.eup %1120  ;;  %1146 = vtanh.f32 %v465_v26  ;;  %v457_v32 = vadd.f32 %v1251_v24, %v456_v29 }
 0x108   : > { %v521_v33 = vadd.f32 %v1251_v24, %v520_v30  ;;  %v1123_v34 = vpop.eup %1122  ;;  %1148 = vtanh.f32 %v529_v27  ;;  %v1033_v35 = vpop.f32.mrf.mxu0 }
 0x109   : > { %v1049_v36 = vpop.f32.mrf.mxu1  ;;  %v1125_v37 = vpop.eup %1124  ;;  %v901_v38 = vpack.c.bf16 %v1123_v34, %v1115_v20  ;;  %1150 = vtanh.f32 %v457_v32  ;;  %v468_v39 = vadd.f32 %v1033_v35, %v1251_v24 }
 0x10a   : > { %v532_v40 = vadd.f32 %v1049_v36, %v1251_v24  ;;  %v1127_v41 = vpop.eup %1126  ;;  %v941_v42 = vpack.c.bf16 %v1125_v37, %v1117_v25  ;;  %1152 = vtanh.f32 %v521_v33  ;;  %v459_v43 = vpop.f32.mrf.mxu0 }
 0x10b   : > { %v523_v44 = vpop.f32.mrf.mxu1  ;;  %v1129_v45 = vpop.eup %1128  ;;  %965 = vst [vmem:[%s1278_s13 + $0x18] sm:$0xff] %v901_v38   ;;  %v896_v46 = vpack.c.bf16 %v1127_v41, %v1119_v28  ;;  %1154 = vtanh.f32 %v468_v39  ;;  %v460_v47 = vadd.f32 %v1251_v24, %v459_v43 }
 0x10c   : > { %v524_v48 = vadd.f32 %v1251_v24, %v523_v44  ;;  %v1131_v49 = vpop.eup %1130  ;;  %973 = vst [vmem:[%s1278_s13 + $0x58] sm:$0xff] %v941_v42   ;;  %v936_v50 = vpack.c.bf16 %v1129_v45, %v1121_v31  ;;  %1156 = vtanh.f32 %v532_v40 }
 0x10d   : > { %v1133_v51 = vpop.eup %1132  ;;  %964 = vst [vmem:[%s1278_s13 + $0x10] sm:$0xff] %v896_v46   ;;  %1158 = vtanh.f32 %v460_v47 }
 0x10e   : > { %v1135_v52 = vpop.eup %1134  ;;  %972 = vst [vmem:[%s1278_s13 + $0x50] sm:$0xff] %v936_v50   ;;  %1160 = vtanh.f32 %v524_v48 }
 0x10f   : > { %v1137_v53 = vpop.eup %1136 }
 0x110   : > { %v1139_v54 = vpop.eup %1138 }
 0x111   : > { %v1141_v55 = vpop.eup %1140  ;;  %v911_v56 = vpack.c.bf16 %v1139_v54, %v1131_v49 }
 0x112   : > { %v1143_v57 = vpop.eup %1142  ;;  %v951_v24 = vpack.c.bf16 %v1141_v55, %v1133_v51 }
 0x113   : > { %v1145_v58 = vpop.eup %1144  ;;  %967 = vst [vmem:[%s1278_s13 + $0x28] sm:$0xff] %v911_v56   ;;  %v906_v59 = vpack.c.bf16 %v1143_v57, %v1135_v52 }
 0x114   : > { %v1147_v60 = vpop.eup %1146  ;;  %975 = vst [vmem:[%s1278_s13 + $0x68] sm:$0xff] %v951_v24   ;;  %v946_v61 = vpack.c.bf16 %v1145_v58, %v1137_v53 }
 0x115   : > { %v1149_v62 = vpop.eup %1148  ;;  %966 = vst [vmem:[%s1278_s13 + $0x20] sm:$0xff] %v906_v59  }
 0x116   : > { %v1151_v63 = vpop.eup %1150  ;;  %974 = vst [vmem:[%s1278_s13 + $0x60] sm:$0xff] %v946_v61  }
 0x117   : > { %v1153_v0 = vpop.eup %1152 }
 0x118   : > { %v1155_v1 = vpop.eup %1154 }
 0x119   : > { %v1157_v2 = vpop.eup %1156  ;;  %v921_v3 = vpack.c.bf16 %v1155_v1, %v1147_v60 }
 0x11a   : > { %v1159_v4 = vpop.eup %1158  ;;  %v961_v5 = vpack.c.bf16 %v1157_v2, %v1149_v62 }
 0x11b   : > { %v1161_v6 = vpop.eup %1160  ;;  %969 = vst [vmem:[%s1278_s13 + $0x38] sm:$0xff] %v921_v3   ;;  %v916_v7 = vpack.c.bf16 %v1159_v4, %v1151_v63 }
 0x11c   : > { %977 = vst [vmem:[%s1278_s13 + $0x78] sm:$0xff] %v961_v5   ;;  %v956_v8 = vpack.c.bf16 %v1161_v6, %v1153_v0 }
 0x11d   : > { %968 = vst [vmem:[%s1278_s13 + $0x30] sm:$0xff] %v916_v7  }
 0x11e   : > { %976 = vst [vmem:[%s1278_s13 + $0x70] sm:$0xff] %v956_v8  }
 0x11f PF: > { %s13_s12 = sadd.s32 1, %s1168_s12  }
 0x120   : > { %p10_p4 = scmp.ge.s32.totalorder %s13_s12, 4  }
 0x122   :  { %12 = sbr.rel (!%p10_p4) target bundleno = 1 (0x1), region = 62 }

// kernel: cvae_forward.8
= control target key start
LH: loop header
LB: loop body
LE: loop exit
PB: predicated region body
PF: predicated region fallthrough
CT: control target
= control target key end

     0   :  { %s769_s1 = inlined_call_operand.vmem [shape: bf16[512,128], index: 1, kind: input, shape index: {}]   ;;  %s770_s0 = inlined_call_operand.vmem [shape: bf16[32,512], index: 0, kind: input, shape index: {}]   ;;  %s771_s2 = inlined_call_operand.vmem [shape: f32[1,128], index: 2, kind: input, shape index: {}]   ;;  %s772_s3 = inlined_call_operand.vmem [shape: bf16[32,128], index: 3, kind: output, shape index: {}]  }
   0x1   :  { %v568_v0 = vld [vmem:[%s769_s1 + $0x78] sm:$0xff]   ;;  %v572_v4 = vld [vmem:[%s769_s1 + $0x70] sm:$0xff]   ;;  %v576_v8 = vld [vmem:[%s769_s1 + $0x68] sm:$0xff]  }
   0x2   :  { %v569_v1 = vld [vmem:[%s769_s1 + $0xf8] sm:$0xff]   ;;  %512 = vmatprep.subr.bf16.mxu0 %v568_v0  ;;  %v573_v5 = vld [vmem:[%s769_s1 + $0xf0] sm:$0xff]   ;;  %v577_v9 = vld [vmem:[%s769_s1 + $0xe8] sm:$0xff]  }
   0x3   :  { %v570_v2 = vld [vmem:[%s769_s1 + $0x38] sm:$0xff]   ;;  %540 = vmatprep.subr.bf16.mxu1 %v569_v1  ;;  %v574_v6 = vld [vmem:[%s769_s1 + $0x30] sm:$0xff]   ;;  %v578_v10 = vld [vmem:[%s769_s1 + $0x28] sm:$0xff]  }
   0x4   :  { %v571_v3 = vld [vmem:[%s769_s1 + $0xb8] sm:$0xff]   ;;  %513 = vmatpush3.bf16.msra.mxu0 %v570_v2  ;;  %v575_v7 = vld [vmem:[%s769_s1 + $0xb0] sm:$0xff]   ;;  %v579_v11 = vld [vmem:[%s769_s1 + $0xa8] sm:$0xff]  }
   0x5   :  { %541 = vmatpush3.bf16.msra.mxu1 %v571_v3  ;;  %514 = vmatprep.subr.bf16.mxu0 %v572_v4  ;;  %v580_v12 = vld [vmem:[%s769_s1 + $0x60] sm:$0xff]   ;;  %v584_v16 = vld [vmem:[%s769_s1 + $0x58] sm:$0xff]   ;;  %v588_v20 = vld [vmem:[%s769_s1 + $0x50] sm:$0xff]  }
   0x6   :  { %542 = vmatprep.subr.bf16.mxu1 %v573_v5  ;;  %v581_v13 = vld [vmem:[%s769_s1 + $0xe0] sm:$0xff]   ;;  %v585_v17 = vld [vmem:[%s769_s1 + $0xd8] sm:$0xff]   ;;  %v589_v21 = vld [vmem:[%s769_s1 + $0xd0] sm:$0xff]  }
   0x7   :  { %v582_v14 = vld [vmem:[%s769_s1 + $0x20] sm:$0xff]   ;;  %v586_v18 = vld [vmem:[%s769_s1 + $0x18] sm:$0xff]   ;;  %v590_v22 = vld [vmem:[%s769_s1 + $0x10] sm:$0xff]  }
   0x8   :  { %515 = vmatpush3.bf16.msra.mxu0 %v574_v6  ;;  %v583_v15 = vld [vmem:[%s769_s1 + $0xa0] sm:$0xff]   ;;  %v587_v19 = vld [vmem:[%s769_s1 + $0x98] sm:$0xff]   ;;  %v591_v23 = vld [vmem:[%s769_s1 + $0x90] sm:$0xff]  }
   0x9   :  { %543 = vmatpush3.bf16.msra.mxu1 %v575_v7  ;;  %516 = vmatprep.subr.bf16.mxu0 %v576_v8  ;;  %v592_v24 = vld [vmem:[%s769_s1 + $0x48] sm:$0xff]   ;;  %v596_v28 = vld [vmem:[%s769_s1 + $0x40] sm:$0xff]  }
   0xa   :  { %544 = vmatprep.subr.bf16.mxu1 %v577_v9  ;;  %v593_v25 = vld [vmem:[%s769_s1 + $0xc8] sm:$0xff]   ;;  %v597_v29 = vld [vmem:[%s769_s1 + $0xc0] sm:$0xff]  }
   0xb   :  { %v594_v26 = vld [vmem:[%s769_s1 + $0x8] sm:$0xff]   ;;  %v598_v30 = vld [vmem:[%s769_s1] sm:$0xff]  }
   0xc   :  { %517 = vmatpush3.bf16.msra.mxu0 %v578_v10  ;;  %v595_v27 = vld [vmem:[%s769_s1 + $0x88] sm:$0xff]   ;;  %v599_v31 = vld [vmem:[%s769_s1 + $0x80] sm:$0xff]  }
   0xd   :  { %545 = vmatpush3.bf16.msra.mxu1 %v579_v11  ;;  %518 = vmatprep.subr.bf16.mxu0 %v580_v12  ;;  %v600_v32 = vld [vmem:[%s770_s0] ss:$16 sps:$4 sm:$0xff]   ;;  %v602_v33 = vld [vmem:[%s770_s0 + $0x4] ss:$16 sps:$4 sm:$0xff]   ;;  %v603_v34 = vld [vmem:[%s770_s0 + $0x8] ss:$16 sps:$4 sm:$0xff]  }
   0xe   :  { %546 = vmatprep.subr.bf16.mxu1 %v581_v13  ;;  %v605_v35 = vld [vmem:[%s770_s0 + $0xc] ss:$16 sps:$4 sm:$0xff]   ;;  %358 = vmatprep.mubr.bf16.mxu0 %v602_v33  ;;  %v606_v36 = vld [vmem:[%s770_s0 + $0x24] ss:$16 sps:$4 sm:$0xff]   ;;  %v610_v38 = vld [vmem:[%s770_s0 + $0x20] ss:$16 sps:$4 sm:$0xff]  }
   0xf   :  { %407 = vmatprep.mubr.bf16.mxu1 %v605_v35  ;;  %v608_v37 = vld [vmem:[%s770_s0 + $0x2c] ss:$16 sps:$4 sm:$0xff]   ;;  %v611_v39 = vld [vmem:[%s770_s0 + $0x28] ss:$16 sps:$4 sm:$0xff]   ;;  %v452_v42 = vld [vmem:[%s771_s2] ss:$0 sm:$0xff] }
  0x10   :  { %519 = vmatpush3.bf16.msra.mxu0 %v582_v14 }
  0x11   :  { %547 = vmatpush3.bf16.msra.mxu1 %v583_v15  ;;  %520 = vmatprep.subr.bf16.mxu0 %v584_v16 }
  0x12   :  { %548 = vmatprep.subr.bf16.mxu1 %v585_v17 }
  0x14   :  { %521 = vmatpush3.bf16.msra.mxu0 %v586_v18 }
  0x15   :  { %549 = vmatpush3.bf16.msra.mxu1 %v587_v19  ;;  %522 = vmatprep.subr.bf16.mxu0 %v588_v20 }
  0x16   :  { %550 = vmatprep.subr.bf16.mxu1 %v589_v21 }
  0x18   :  { %523 = vmatpush3.bf16.msra.mxu0 %v590_v22 }
  0x19   :  { %551 = vmatpush3.bf16.msra.mxu1 %v591_v23  ;;  %524 = vmatprep.subr.bf16.mxu0 %v592_v24 }
  0x1a   :  { %552 = vmatprep.subr.bf16.mxu1 %v593_v25 }
  0x1c   :  { %525 = vmatpush3.bf16.msra.mxu0 %v594_v26 }
  0x1d   :  { %553 = vmatpush3.bf16.msra.mxu1 %v595_v27  ;;  %526 = vmatprep.subr.bf16.mxu0 %v596_v28 }
  0x1e   :  { %554 = vmatprep.subr.bf16.mxu1 %v597_v29 }
  0x20   :  { %527 = vmatpush3.bf16.msra.mxu0 %v598_v30 }
  0x21   :  { %555 = vmatpush3.bf16.msra.mxu1 %v599_v31 }
  0x23   :  { %359 = vmatmul.mubr.bf16.vlgmr.msra.gmra.mxu0 %v600_v32 }
  0x24   :  { %408 = vmatmul.mubr.bf16.vlgmr.msra.gmra.mxu1 %v603_v34  ;;  %366 = vmatprep.mubr.bf16.mxu0 %v606_v36 }
  0x25   :  { %415 = vmatprep.mubr.bf16.mxu1 %v608_v37 }
  0x2b   :  { %367 = vmatmul.mubr.bf16.gmra.mxu0 %v610_v38 }
  0x2c   :  { %416 = vmatmul.mubr.bf16.gmra.mxu1 %v611_v39 }
  0xe3   :  { %v528_v40 = vpop.f32.mrf.mxu0 }
  0xe4   :  { %v556_v41 = vpop.f32.mrf.mxu1 }
  0xe5   :  { %v529_v43 = vpop.f32.mrf.mxu0 }
  0xe6   :  { %v530_v44 = vadd.f32 %v529_v43, %v528_v40  ;;  %v557_v45 = vpop.f32.mrf.mxu1 }
  0xe7   :  { %v531_v46 = vpop.f32.mrf.mxu0  ;;  %v558_v49 = vadd.f32 %v557_v45, %v556_v41 }
  0xe8   :  { %v361_v47 = vadd.f32 %v530_v44, %v452_v42  ;;  %v559_v48 = vpop.f32.mrf.mxu1 }
  0xe9   :  { %v532_v50 = vpop.f32.mrf.mxu0 }
  0xea   :  { %v533_v51 = vadd.f32 %v532_v50, %v531_v46  ;;  %v560_v52 = vpop.f32.mrf.mxu1  ;;  %v410_v53 = vadd.f32 %v558_v49, %v361_v47 }
  0xeb   :  { %v534_v54 = vpop.f32.mrf.mxu0  ;;  %v561_v56 = vadd.f32 %v560_v52, %v559_v48 }
  0xec   :  { %v364_v55 = vadd.f32 %v533_v51, %v452_v42  ;;  %v562_v57 = vpop.f32.mrf.mxu1  ;;  %612 = vtanh.f32 %v410_v53 }
  0xed   :  { %v535_v58 = vpop.f32.mrf.mxu0 }
  0xee   :  { %v413_v59 = vadd.f32 %v561_v56, %v364_v55  ;;  %v536_v60 = vadd.f32 %v535_v58, %v534_v54  ;;  %v563_v61 = vpop.f32.mrf.mxu1 }
  0xef   :  { %v537_v62 = vpop.f32.mrf.mxu0  ;;  %v564_v1 = vadd.f32 %v563_v61, %v562_v57 }
  0xf0   :  { %614 = vtanh.f32 %v413_v59  ;;  %v369_v63 = vadd.f32 %v536_v60, %v452_v42  ;;  %v565_v0 = vpop.f32.mrf.mxu1 }
  0xf1   :  { %v538_v2 = vpop.f32.mrf.mxu0 }
  0xf2   :  { %v539_v3 = vadd.f32 %v538_v2, %v537_v62  ;;  %v566_v4 = vpop.f32.mrf.mxu1  ;;  %v418_v5 = vadd.f32 %v564_v1, %v369_v63 }
  0xf3   :  { %v567_v7 = vadd.f32 %v566_v4, %v565_v0 }
  0xf4   :  { %v372_v6 = vadd.f32 %v539_v3, %v452_v42  ;;  %616 = vtanh.f32 %v418_v5 }
  0xf6   :  { %v421_v8 = vadd.f32 %v567_v7, %v372_v6 }
  0xf8   :  { %618 = vtanh.f32 %v421_v8 }
  0xf9   :  { %v613_v9 = vpop.eup %612 }
  0xfd   :  { %v615_v10 = vpop.eup %614 }
  0xfe   :  { %v504_v11 = vpack.c.bf16 %v615_v10, %v613_v9 }
 0x100   :  { %505 = vst [vmem:[%s772_s3] sm:$0xff] %v504_v11  }
 0x101   :  { %v617_v12 = vpop.eup %616 }
 0x105   :  { %v619_v13 = vpop.eup %618 }
 0x106   :  { %v509_v14 = vpack.c.bf16 %v619_v13, %v617_v12 }
 0x108   :  { %511 = vst [vmem:[%s772_s3 + $0x8] sm:$0xff] %v509_v14  }

// kernel: cvae_forward.9
= control target key start
LH: loop header
LB: loop body
LE: loop exit
PB: predicated region body
PF: predicated region fallthrough
CT: control target
= control target key end

     0   :  { %12 = vsyncpa [#allocation3], 0  ;;  %v89_v38 = vlaneseq  ;;  %v795_v39 = vmov 1966171168   ;;  %s1048_s0 = inlined_call_operand.vmem [shape: bf16[2,512], index: 0, kind: input, shape index: {}]   ;;  %s1049_s1 = inlined_call_operand.vmem [shape: bf16[512,256], index: 1, kind: input, shape index: {}]   ;;  %s1050_s2 = inlined_call_operand.vmem [shape: f32[1,256], index: 2, kind: input, shape index: {}]   ;;  %s1051_s3 = inlined_call_operand.vmem [shape: f32[2,128], index: 3, kind: input, shape index: {}]   ;;  %s1052_s4 = inlined_call_operand.vmem [shape: f32[2,128], index: 4, kind: output, shape index: {0}]   ;;  %s1053_s5 = inlined_call_operand.hbm [shape: f32[2,128], index: 5, kind: output, shape index: {1}]   ;;  %s1054_s6 = inlined_call_operand.hbm [shape: f32[2,128], index: 6, kind: output, shape index: {2}]  }
   0x1   :  { %v647_v0 = vld [vmem:[%s1049_s1 + $0x74] ss:$8 sps:$4 sm:$0xff]   ;;  %v651_v2 = vld [vmem:[%s1049_s1 + $0x70] ss:$8 sps:$4 sm:$0xff]   ;;  %v653_v4 = vld [vmem:[%s1049_s1 + $0x64] ss:$8 sps:$4 sm:$0xff]   ;;  %v109_v40 = vunpack.c.l.s4 %v795_v39 }
   0x2   :  { %v649_v1 = vld [vmem:[%s1049_s1 + $0x174] ss:$8 sps:$4 sm:$0xff]   ;;  %448 = vmatprep.subr.bf16.mxu0 %v647_v0  ;;  %v652_v3 = vld [vmem:[%s1049_s1 + $0x170] ss:$8 sps:$4 sm:$0xff]   ;;  %v655_v5 = vld [vmem:[%s1049_s1 + $0x164] ss:$8 sps:$4 sm:$0xff]  }
   0x3   :  { %489 = vmatprep.subr.bf16.mxu1 %v649_v1  ;;  %449 = vmatpush1.bf16.msra.mxu0 %v651_v2  ;;  %v657_v6 = vld [vmem:[%s1049_s1 + $0x60] ss:$8 sps:$4 sm:$0xff]   ;;  %v659_v8 = vld [vmem:[%s1049_s1 + $0x54] ss:$8 sps:$4 sm:$0xff]   ;;  %v663_v10 = vld [vmem:[%s1049_s1 + $0x50] ss:$8 sps:$4 sm:$0xff]   ;;  %v110_v46 = vunpack.c.0.s8 %v109_v40 }
   0x4   :  { %490 = vmatpush1.bf16.msra.mxu1 %v652_v3  ;;  %450 = vmatprep.subr.bf16.mxu0 %v653_v4  ;;  %v658_v7 = vld [vmem:[%s1049_s1 + $0x160] ss:$8 sps:$4 sm:$0xff]   ;;  %v661_v9 = vld [vmem:[%s1049_s1 + $0x154] ss:$8 sps:$4 sm:$0xff]   ;;  %v664_v11 = vld [vmem:[%s1049_s1 + $0x150] ss:$8 sps:$4 sm:$0xff]  }
   0x5   :  { %491 = vmatprep.subr.bf16.mxu1 %v655_v5  ;;  %v665_v12 = vld [vmem:[%s1049_s1 + $0x44] ss:$8 sps:$4 sm:$0xff]   ;;  %v669_v14 = vld [vmem:[%s1049_s1 + $0x40] ss:$8 sps:$4 sm:$0xff]   ;;  %v671_v16 = vld [vmem:[%s1049_s1 + $0x34] ss:$8 sps:$4 sm:$0xff]  }
   0x6   :  { %v667_v13 = vld [vmem:[%s1049_s1 + $0x144] ss:$8 sps:$4 sm:$0xff]   ;;  %v670_v15 = vld [vmem:[%s1049_s1 + $0x140] ss:$8 sps:$4 sm:$0xff]   ;;  %v673_v17 = vld [vmem:[%s1049_s1 + $0x134] ss:$8 sps:$4 sm:$0xff]  }
   0x7   :  { %451 = vmatpush1.bf16.msra.mxu0 %v657_v6  ;;  %v675_v18 = vld [vmem:[%s1049_s1 + $0x30] ss:$8 sps:$4 sm:$0xff]   ;;  %v677_v20 = vld [vmem:[%s1049_s1 + $0x24] ss:$8 sps:$4 sm:$0xff]   ;;  %v681_v22 = vld [vmem:[%s1049_s1 + $0x20] ss:$8 sps:$4 sm:$0xff]  }
   0x8   :  { %492 = vmatpush1.bf16.msra.mxu1 %v658_v7  ;;  %452 = vmatprep.subr.bf16.mxu0 %v659_v8  ;;  %v676_v19 = vld [vmem:[%s1049_s1 + $0x130] ss:$8 sps:$4 sm:$0xff]   ;;  %v679_v21 = vld [vmem:[%s1049_s1 + $0x124] ss:$8 sps:$4 sm:$0xff]   ;;  %v682_v23 = vld [vmem:[%s1049_s1 + $0x120] ss:$8 sps:$4 sm:$0xff]  }
   0x9   :  { %493 = vmatprep.subr.bf16.mxu1 %v661_v9  ;;  %v683_v24 = vld [vmem:[%s1049_s1 + $0x14] ss:$8 sps:$4 sm:$0xff]   ;;  %v687_v26 = vld [vmem:[%s1049_s1 + $0x10] ss:$8 sps:$4 sm:$0xff]   ;;  %v689_v28 = vld [vmem:[%s1049_s1 + $0x4] ss:$8 sps:$4 sm:$0xff]  }
   0xa   :  { %v685_v25 = vld [vmem:[%s1049_s1 + $0x114] ss:$8 sps:$4 sm:$0xff]   ;;  %v688_v27 = vld [vmem:[%s1049_s1 + $0x110] ss:$8 sps:$4 sm:$0xff]   ;;  %v691_v29 = vld [vmem:[%s1049_s1 + $0x104] ss:$8 sps:$4 sm:$0xff]  }
   0xb   :  { %453 = vmatpush1.bf16.msra.mxu0 %v663_v10  ;;  %v693_v30 = vld [vmem:[%s1049_s1] ss:$8 sps:$4 sm:$0xff]   ;;  %v695_v32 = vld [vmem:[%s1049_s1 + $0xf4] ss:$8 sps:$4 sm:$0xff]   ;;  %v699_v34 = vld [vmem:[%s1049_s1 + $0xf0] ss:$8 sps:$4 sm:$0xff]  }
   0xc   :  { %494 = vmatpush1.bf16.msra.mxu1 %v664_v11  ;;  %454 = vmatprep.subr.bf16.mxu0 %v665_v12  ;;  %v694_v31 = vld [vmem:[%s1049_s1 + $0x100] ss:$8 sps:$4 sm:$0xff]   ;;  %v697_v33 = vld [vmem:[%s1049_s1 + $0x1f4] ss:$8 sps:$4 sm:$0xff]   ;;  %v700_v35 = vld [vmem:[%s1049_s1 + $0x1f0] ss:$8 sps:$4 sm:$0xff]  }
   0xd   :  { %495 = vmatprep.subr.bf16.mxu1 %v667_v13  ;;  %v701_v36 = vld [vmem:[%s1049_s1 + $0xe4] ss:$8 sps:$4 sm:$0xff]   ;;  %v705_v41 = vld [vmem:[%s1049_s1 + $0xe0] ss:$8 sps:$4 sm:$0xff]   ;;  %v707_v43 = vld [vmem:[%s1049_s1 + $0xd4] ss:$8 sps:$4 sm:$0xff]  }
   0xe   :  { %v703_v37 = vld [vmem:[%s1049_s1 + $0x1e4] ss:$8 sps:$4 sm:$0xff]   ;;  %v706_v42 = vld [vmem:[%s1049_s1 + $0x1e0] ss:$8 sps:$4 sm:$0xff]   ;;  %v709_v44 = vld [vmem:[%s1049_s1 + $0x1d4] ss:$8 sps:$4 sm:$0xff]  }
   0xf   :  { %455 = vmatpush1.bf16.msra.mxu0 %v669_v14  ;;  %v959_v45 = vshrl.u32 %v89_v38, 7  ;;  %v711_v47 = vld [vmem:[%s1049_s1 + $0xd0] ss:$8 sps:$4 sm:$0xff]   ;;  %v713_v49 = vld [vmem:[%s1049_s1 + $0xc4] ss:$8 sps:$4 sm:$0xff]  }
  0x10   :  { %496 = vmatpush1.bf16.msra.mxu1 %v670_v15  ;;  %456 = vmatprep.subr.bf16.mxu0 %v671_v16  ;;  %v712_v48 = vld [vmem:[%s1049_s1 + $0x1d0] ss:$8 sps:$4 sm:$0xff]   ;;  %v715_v50 = vld [vmem:[%s1049_s1 + $0x1c4] ss:$8 sps:$4 sm:$0xff]  }
  0x11   :  { %497 = vmatprep.subr.bf16.mxu1 %v673_v17  ;;  %v113_v51 = vsub.s32 %v110_v46, %v959_v45  ;;  %v578_v52 = vld.sshfl [vmem:[%s1048_s0] sm:$0x33 pattern:$0x75316420] }
  0x13   :  { %457 = vmatpush1.bf16.msra.mxu0 %v675_v18 }
  0x14   :  { %498 = vmatpush1.bf16.msra.mxu1 %v676_v19  ;;  %458 = vmatprep.subr.bf16.mxu0 %v677_v20 }
  0x15   :  { %499 = vmatprep.subr.bf16.mxu1 %v679_v21 }
  0x17   :  { %459 = vmatpush1.bf16.msra.mxu0 %v681_v22 }
  0x18   :  { %500 = vmatpush1.bf16.msra.mxu1 %v682_v23  ;;  %460 = vmatprep.subr.bf16.mxu0 %v683_v24 }
  0x19   :  { %501 = vmatprep.subr.bf16.mxu1 %v685_v25 }
  0x1b   :  { %461 = vmatpush1.bf16.msra.mxu0 %v687_v26 }
  0x1c   :  { %502 = vmatpush1.bf16.msra.mxu1 %v688_v27  ;;  %462 = vmatprep.subr.bf16.mxu0 %v689_v28 }
  0x1d   :  { %503 = vmatprep.subr.bf16.mxu1 %v691_v29 }
  0x1f   :  { %463 = vmatpush1.bf16.msra.mxu0 %v693_v30 }
  0x20   :  { %504 = vmatpush1.bf16.msra.mxu1 %v694_v31  ;;  %464 = vmatprep.subr.bf16.mxu0 %v695_v32 }
  0x21   :  { %505 = vmatprep.subr.bf16.mxu1 %v697_v33 }
  0x23   :  { %465 = vmatpush2.bf16.msra.mxu0 %v699_v34 }
  0x24   :  { %506 = vmatpush2.bf16.msra.mxu1 %v700_v35  ;;  %466 = vmatprep.subr.bf16.mxu0 %v701_v36 }
  0x25   :  { %507 = vmatprep.subr.bf16.mxu1 %v703_v37 }
  0x27   :  { %467 = vmatpush2.bf16.msra.mxu0 %v705_v41 }
  0x28   :  { %508 = vmatpush2.bf16.msra.mxu1 %v706_v42  ;;  %468 = vmatprep.subr.bf16.mxu0 %v707_v43 }
  0x29   :  { %509 = vmatprep.subr.bf16.mxu1 %v709_v44 }
  0x2a   :  { %13 = vsyncpa [#allocation5], 0  ;;  %v717_v53 = vld [vmem:[%s1049_s1 + $0xc0] ss:$8 sps:$4 sm:$0xff]   ;;  %v107_v55 = vcombine.high %v578_v52, %v578_v52  ;;  %v719_v56 = vld [vmem:[%s1049_s1 + $0xb4] ss:$8 sps:$4 sm:$0xff]   ;;  %v114_v8 = vrot.slane %v578_v52, %v113_v51 }
  0x2b   :  { %469 = vmatpush2.bf16.msra.mxu0 %v711_v47  ;;  %v718_v54 = vld [vmem:[%s1049_s1 + $0x1c0] ss:$8 sps:$4 sm:$0xff]   ;;  %v721_v57 = vld [vmem:[%s1049_s1 + $0x1b4] ss:$8 sps:$4 sm:$0xff]   ;;  %v723_v59 = vld [vmem:[%s1049_s1 + $0xb0] ss:$8 sps:$4 sm:$0xff]  }
  0x2c   :  { %510 = vmatpush2.bf16.msra.mxu1 %v712_v48  ;;  %470 = vmatprep.subr.bf16.mxu0 %v713_v49  ;;  %v121_v58 = vrot.slane %v107_v55, %v113_v51  ;;  %v724_v60 = vld [vmem:[%s1049_s1 + $0x1b0] ss:$8 sps:$4 sm:$0xff]   ;;  %v725_v62 = vld [vmem:[%s1049_s1 + $0xa4] ss:$8 sps:$4 sm:$0xff]   ;;  %v729_v0 = vld [vmem:[%s1049_s1 + $0xa0] ss:$8 sps:$4 sm:$0xff]   ;;  %v122_v11 = vcombine.high %v114_v8, %v114_v8 }
  0x2d   :  { %511 = vmatprep.subr.bf16.mxu1 %v715_v50  ;;  %v727_v63 = vld [vmem:[%s1049_s1 + $0x1a4] ss:$8 sps:$4 sm:$0xff]   ;;  %v730_v1 = vld [vmem:[%s1049_s1 + $0x1a0] ss:$8 sps:$4 sm:$0xff]   ;;  %v731_v2 = vld [vmem:[%s1049_s1 + $0x94] ss:$8 sps:$4 sm:$0xff]  }
  0x2e   :  { %v123_v61 = vcombine.high %v121_v58, %v121_v58  ;;  %480 = vmatprep.mubr.bf16.mxu0 %v121_v58  ;;  %v733_v3 = vld [vmem:[%s1049_s1 + $0x194] ss:$8 sps:$4 sm:$0xff]   ;;  %v735_v4 = vld [vmem:[%s1049_s1 + $0x90] ss:$8 sps:$4 sm:$0xff]   ;;  %v737_v6 = vld [vmem:[%s1049_s1 + $0x84] ss:$8 sps:$4 sm:$0xff]  }
  0x2f   :  { %471 = vmatpush2.bf16.msra.mxu0 %v717_v53  ;;  %v736_v5 = vld [vmem:[%s1049_s1 + $0x190] ss:$8 sps:$4 sm:$0xff]   ;;  %v739_v7 = vld [vmem:[%s1049_s1 + $0x184] ss:$8 sps:$4 sm:$0xff]   ;;  %v741_v9 = vld [vmem:[%s1049_s1 + $0x80] ss:$8 sps:$4 sm:$0xff]  }
  0x30   :  { %512 = vmatpush2.bf16.msra.mxu1 %v718_v54  ;;  %472 = vmatprep.subr.bf16.mxu0 %v719_v56  ;;  %v742_v10 = vld [vmem:[%s1049_s1 + $0x180] ss:$8 sps:$4 sm:$0xff]   ;;  %v91_v12 = vsub.s32 0, %v959_v45  ;;  %v95_v14 = vsub.s32 1, %v959_v45  ;;  %s796_s1 = smov [#allocation2]  }
  0x31   :  { %513 = vmatprep.subr.bf16.mxu1 %v721_v57  ;;  %521 = vmatprep.mubr.bf16.mxu1 %v123_v61  ;;  %v87_v13 = vld [vmem:[%s1050_s2] sm:$0x3]  ;;  %s554_s2 = sshll.u32 %s796_s1, 4  ;;  %s555_s2 = int_to_ptr.vmem [resolvable:$true] %s554_s2 }
  0x32   :  { %v92_v15 = vrot.slane %v87_v13, %v91_v12  ;;  %v96_v16 = vrot.slane %v87_v13, %v95_v14  ;;  %s751_s7 = scalar_lea.vmem %s555_s2, 32  ;;  %p756_p1 = scmp.lt.s32.totalorder %s555_s2, %s555_s2 }
  0x33   :  { %473 = vmatpush2.bf16.msra.mxu0 %v723_v59  ;;  %p752_p0 = scmp.ne.s32.totalorder %s555_s2, %s751_s7  ;;  %p757_p2 = scmp.lt.s32.totalorder %s751_s7, %s751_s7 }
  0x34   :  { %514 = vmatpush2.bf16.msra.mxu1 %v724_v60  ;;  %474 = vmatprep.subr.bf16.mxu0 %v725_v62 }
  0x35   :  { %515 = vmatprep.subr.bf16.mxu1 %v727_v63  ;;  %p758_p3 = por %p757_p2, %p756_p1 }
  0x37   :  { %475 = vmatpush2.bf16.msra.mxu0 %v729_v0  ;;  %p759_p4 = pnand %p758_p3, %p752_p0 }
  0x38   :  { %516 = vmatpush2.bf16.msra.mxu1 %v730_v1  ;;  %476 = vmatprep.subr.bf16.mxu0 %v731_v2 }
  0x39   :  { %517 = vmatprep.subr.bf16.mxu1 %v733_v3 }
  0x3b   :  { %477 = vmatpush2.bf16.msra.mxu0 %v735_v4 }
  0x3c   :  { %518 = vmatpush2.bf16.msra.mxu1 %v736_v5  ;;  %478 = vmatprep.subr.bf16.mxu0 %v737_v6 }
  0x3d   :  { %519 = vmatprep.subr.bf16.mxu1 %v739_v7 }
  0x3f   :  { %479 = vmatpush2.bf16.msra.mxu0 %v741_v9 }
  0x40   :  { %520 = vmatpush2.bf16.msra.mxu1 %v742_v10 }
  0x42   :  { %481 = vmatmul.mubr.bf16.vlgmr.msra.gmra.mxu0 %v114_v8 }
  0x43   :  { %522 = vmatmul.mubr.bf16.vlgmr.msra.gmra.mxu1 %v122_v11 }
 0x102   :  { %v482_v17 = vpop.f32.mrf.mxu0 }
 0x103   :  { %v523_v18 = vpop.f32.mrf.mxu1  ;;  %v483_v19 = vadd.f32 %v482_v17, %v92_v15 }
 0x104   :  { %v484_v20 = vpop.f32.mrf.mxu0 }
 0x105   :  { %v525_v21 = vpop.f32.mrf.mxu1  ;;  %v524_v22 = vadd.f32 %v523_v18, %v483_v19  ;;  %v485_v23 = vadd.f32 %v484_v20, %v96_v16 }
 0x106   :  { %v486_v24 = vpop.f32.mrf.mxu0 }
 0x107   :  { %v527_v25 = vpop.f32.mrf.mxu1  ;;  %743 = vtanh.f32 %v524_v22  ;;  %v526_v26 = vadd.f32 %v525_v21, %v485_v23 }
 0x108   :  { %v487_v27 = vpop.f32.mrf.mxu0 }
 0x109   :  { %v528_v28 = vpop.f32.mrf.mxu1  ;;  %v643_v29 = vmul.f32 -1.442695, %v526_v26 }
 0x10b   :  { %745 = vpow2.f32 %v643_v29 }
 0x114   :  { %v744_v30 = vpop.eup %743 }
 0x115   :  { %540 = vst [vmem:[#allocation2] sm:$0x3] %v744_v30 }
 0x116   :  { %762 = shalt.err (!%p759_p4)
}
 0x117   :  { %557 = dma.vmem_to_hbm [thread:$0]  %s555_s2, 32, %s1053_s5, [#allocation3]   ;;  %v542_v36 = vld [vmem:[%s1051_s3] sm:$0x3] }
 0x118   :  { %v746_v31 = vpop.eup %745  ;;  %s797_s10 = smov [#allocation4]  }
 0x119   :  { %v534_v32 = vadd.f32 1.0, %v746_v31  ;;  %s564_s11 = sshll.u32 %s797_s10, 4  ;;  %s565_s11 = int_to_ptr.vmem [resolvable:$true] %s564_s11 }
 0x11a   :  { %s771_s14 = scalar_lea.vmem %s565_s11, 32  ;;  %p776_p6 = scmp.lt.s32.totalorder %s565_s11, %s565_s11 }
 0x11b   :  { %747 = vrcp.f32 %v534_v32  ;;  %p772_p5 = scmp.ne.s32.totalorder %s565_s11, %s771_s14  ;;  %p777_p7 = scmp.lt.s32.totalorder %s771_s14, %s771_s14 }
 0x11d   :  { %p778_p8 = por %p777_p7, %p776_p6 }
 0x11f   :  { %p779_p9 = pnand %p778_p8, %p772_p5 }
 0x128   :  { %v748_v33 = vpop.eup %747 }
 0x129   :  { %v537_v34 = vmul.f32 0.5, %v748_v33 }
 0x12b   :  { %v538_v35 = vmul.f32 1.442695, %v537_v34 }
 0x12d   :  { %749 = vpow2.f32 %v538_v35 }
 0x13a   :  { %v750_v37 = vpop.eup %749 }
 0x13b   :  { %v543_v38 = vmul.f32 %v750_v37, %v542_v36  ;;  %541 = vst [vmem:[#allocation4] sm:$0x3] %v750_v37 }
 0x13c   :  { %782 = shalt.err (!%p779_p9)
}
 0x13d   :  { %567 = dma.vmem_to_hbm [thread:$0]  %s565_s11, 32, %s1054_s6, [#allocation5]   ;;  %v544_v39 = vadd.f32 %v744_v30, %v543_v38 }
 0x13f   :  { %545 = vst [vmem:[%s1052_s4] sm:$0x3] %v544_v39 }
 0x140   :  { %791 = dma.done.wait [#allocation3], 32  }
 0x141   :  { %792 = vsyncadd [#allocation3], 4294967264 }
 0x142   :  { %793 = dma.done.wait [#allocation5], 32  }
 0x143   :  { %794 = vsyncadd [#allocation5], 4294967264 }
 0x144   :  { %576 = vsyncpa [#allocation3], 1 }
 0x145   :  { %577 = vsyncpa [#allocation5], 1 }

// kernel: cvae_forward.10
= control target key start
LH: loop header
LB: loop body
LE: loop exit
PB: predicated region body
PF: predicated region fallthrough
CT: control target
= control target key end

     0   :  { %v470_v1 = vmov 0   ;;  %v51_v34 = vlaneseq  ;;  %s605_s1 = inlined_call_operand.vmem [shape: bf16[128,512], index: 1, kind: input, shape index: {}]   ;;  %s606_s0 = inlined_call_operand.vmem [shape: bf16[16,128], index: 0, kind: input, shape index: {}]   ;;  %s607_s2 = inlined_call_operand.vmem [shape: f32[1,512], index: 2, kind: input, shape index: {}]   ;;  %s608_s3 = inlined_call_operand.vmem [shape: bf16[16,512], index: 3, kind: output, shape index: {}]  }
   0x1   :  { %v405_v0 = vld [vmem:[%s605_s1 + $0xe4] ss:$16 sps:$4 sm:$0xff]   ;;  %269 = vmatprep.mubr.bf16.mxu0 %v470_v1  ;;  %312 = vmatprep.mubr.bf16.mxu1 %v470_v1  ;;  %v407_v2 = vld [vmem:[%s605_s1 + $0xec] ss:$16 sps:$4 sm:$0xff]   ;;  %v409_v3 = vld [vmem:[%s605_s1 + $0xe0] ss:$16 sps:$4 sm:$0xff]  }
   0x2   :  { %237 = vmatprep.subr.bf16.mxu0 %v405_v0  ;;  %v410_v4 = vld [vmem:[%s605_s1 + $0xe8] ss:$16 sps:$4 sm:$0xff]   ;;  %280 = vmatprep.subr.bf16.mxu1 %v407_v2  ;;  %v411_v5 = vld [vmem:[%s605_s1 + $0xc4] ss:$16 sps:$4 sm:$0xff]   ;;  %v413_v6 = vld [vmem:[%s605_s1 + $0xcc] ss:$16 sps:$4 sm:$0xff]  }
   0x3   :  { %238 = vmatpush1.bf16.msra.mxu0 %v409_v3  ;;  %281 = vmatpush1.bf16.msra.mxu1 %v410_v4  ;;  %v415_v7 = vld [vmem:[%s605_s1 + $0xc0] ss:$16 sps:$4 sm:$0xff]   ;;  %v416_v8 = vld [vmem:[%s605_s1 + $0xc8] ss:$16 sps:$4 sm:$0xff]   ;;  %v417_v9 = vld [vmem:[%s605_s1 + $0xa4] ss:$16 sps:$4 sm:$0xff]  }
   0x4   :  { %239 = vmatprep.subr.bf16.mxu0 %v411_v5  ;;  %282 = vmatprep.subr.bf16.mxu1 %v413_v6  ;;  %v419_v10 = vld [vmem:[%s605_s1 + $0xac] ss:$16 sps:$4 sm:$0xff]   ;;  %v421_v11 = vld [vmem:[%s605_s1 + $0xa0] ss:$16 sps:$4 sm:$0xff]   ;;  %v422_v12 = vld [vmem:[%s605_s1 + $0xa8] ss:$16 sps:$4 sm:$0xff]  }
   0x5   :  { %v423_v13 = vld [vmem:[%s605_s1 + $0x84] ss:$16 sps:$4 sm:$0xff]   ;;  %v425_v14 = vld [vmem:[%s605_s1 + $0x8c] ss:$16 sps:$4 sm:$0xff]   ;;  %v427_v15 = vld [vmem:[%s605_s1 + $0x80] ss:$16 sps:$4 sm:$0xff]  }
   0x6   :  { %v428_v16 = vld [vmem:[%s605_s1 + $0x88] ss:$16 sps:$4 sm:$0xff]   ;;  %v429_v17 = vld [vmem:[%s605_s1 + $0x64] ss:$16 sps:$4 sm:$0xff]   ;;  %v431_v18 = vld [vmem:[%s605_s1 + $0x6c] ss:$16 sps:$4 sm:$0xff]  }
   0x7   :  { %240 = vmatpush1.bf16.msra.mxu0 %v415_v7  ;;  %283 = vmatpush1.bf16.msra.mxu1 %v416_v8  ;;  %v433_v19 = vld [vmem:[%s605_s1 + $0x60] ss:$16 sps:$4 sm:$0xff]   ;;  %v434_v20 = vld [vmem:[%s605_s1 + $0x68] ss:$16 sps:$4 sm:$0xff]   ;;  %v435_v21 = vld [vmem:[%s605_s1 + $0x44] ss:$16 sps:$4 sm:$0xff]  }
   0x8   :  { %241 = vmatprep.subr.bf16.mxu0 %v417_v9  ;;  %284 = vmatprep.subr.bf16.mxu1 %v419_v10  ;;  %v437_v22 = vld [vmem:[%s605_s1 + $0x4c] ss:$16 sps:$4 sm:$0xff]   ;;  %v439_v23 = vld [vmem:[%s605_s1 + $0x40] ss:$16 sps:$4 sm:$0xff]   ;;  %v440_v24 = vld [vmem:[%s605_s1 + $0x48] ss:$16 sps:$4 sm:$0xff]  }
   0x9   :  { %v441_v25 = vld [vmem:[%s605_s1 + $0x24] ss:$16 sps:$4 sm:$0xff]   ;;  %v443_v26 = vld [vmem:[%s605_s1 + $0x2c] ss:$16 sps:$4 sm:$0xff]   ;;  %v445_v27 = vld [vmem:[%s605_s1 + $0x20] ss:$16 sps:$4 sm:$0xff]  }
   0xa   :  { %v446_v28 = vld [vmem:[%s605_s1 + $0x28] ss:$16 sps:$4 sm:$0xff]   ;;  %v447_v29 = vld [vmem:[%s605_s1 + $0x4] ss:$16 sps:$4 sm:$0xff]   ;;  %v449_v30 = vld [vmem:[%s605_s1 + $0xc] ss:$16 sps:$4 sm:$0xff]  }
   0xb   :  { %242 = vmatpush1.bf16.msra.mxu0 %v421_v11  ;;  %285 = vmatpush1.bf16.msra.mxu1 %v422_v12  ;;  %v451_v31 = vld [vmem:[%s605_s1] ss:$16 sps:$4 sm:$0xff]   ;;  %v452_v32 = vld [vmem:[%s605_s1 + $0x8] ss:$16 sps:$4 sm:$0xff]   ;;  %v52_v35 = vshrl.u32 %v51_v34, 7 }
   0xc   :  { %243 = vmatprep.subr.bf16.mxu0 %v423_v13  ;;  %286 = vmatprep.subr.bf16.mxu1 %v425_v14  ;;  %v453_v33 = vld [vmem:[%s606_s0] sm:$0xff]  }
   0xd   :  { %v53_v36 = vsub.s32 0, %v52_v35  ;;  %v61_v37 = vsub.s32 2, %v52_v35  ;;  %v49_v38 = vld [vmem:[%s607_s2] sm:$0xf]  ;;  %v57_v39 = vsub.s32 1, %v52_v35  ;;  %v65_v40 = vsub.s32 3, %v52_v35 }
   0xf   :  { %244 = vmatpush1.bf16.msra.mxu0 %v427_v15  ;;  %287 = vmatpush1.bf16.msra.mxu1 %v428_v16  ;;  %v54_v41 = vrot.slane %v49_v38, %v53_v36  ;;  %v62_v42 = vrot.slane %v49_v38, %v61_v37  ;;  %v58_v43 = vrot.slane %v49_v38, %v57_v39 }
  0x10   :  { %245 = vmatprep.subr.bf16.mxu0 %v429_v17  ;;  %288 = vmatprep.subr.bf16.mxu1 %v431_v18  ;;  %v66_v44 = vrot.slane %v49_v38, %v65_v40 }
  0x13   :  { %246 = vmatpush1.bf16.msra.mxu0 %v433_v19  ;;  %289 = vmatpush1.bf16.msra.mxu1 %v434_v20 }
  0x14   :  { %247 = vmatprep.subr.bf16.mxu0 %v435_v21  ;;  %290 = vmatprep.subr.bf16.mxu1 %v437_v22 }
  0x17   :  { %248 = vmatpush1.bf16.msra.mxu0 %v439_v23  ;;  %291 = vmatpush1.bf16.msra.mxu1 %v440_v24 }
  0x18   :  { %249 = vmatprep.subr.bf16.mxu0 %v441_v25  ;;  %292 = vmatprep.subr.bf16.mxu1 %v443_v26 }
  0x1b   :  { %250 = vmatpush1.bf16.msra.mxu0 %v445_v27  ;;  %293 = vmatpush1.bf16.msra.mxu1 %v446_v28 }
  0x1c   :  { %251 = vmatprep.subr.bf16.mxu0 %v447_v29  ;;  %294 = vmatprep.subr.bf16.mxu1 %v449_v30 }
  0x1f   :  { %252 = vmatpush1.bf16.msra.mxu0 %v451_v31  ;;  %295 = vmatpush1.bf16.msra.mxu1 %v452_v32 }
  0x22   :  { %270 = vmatmul.mubr.bf16.vlgmr.msra.gmra.mxu0 %v453_v33  ;;  %313 = vmatmul.mubr.bf16.vlgmr.msra.gmra.mxu1 %v453_v33 }
  0xe2   :  { %v271_v45 = vpop.f32.mrf.mxu0  ;;  %v314_v46 = vpop.f32.mrf.mxu1 }
  0xe3   :  { %v272_v47 = vadd.f32 %v271_v45, %v54_v41  ;;  %v315_v48 = vadd.f32 %v314_v46, %v62_v42 }
  0xe4   :  { %v273_v49 = vpop.f32.mrf.mxu0  ;;  %v316_v50 = vpop.f32.mrf.mxu1 }
  0xe5   :  { %454 = vtanh.f32 %v272_v47  ;;  %v274_v51 = vadd.f32 %v273_v49, %v58_v43  ;;  %v317_v52 = vadd.f32 %v316_v50, %v66_v44 }
  0xe6   :  { %456 = vtanh.f32 %v315_v48  ;;  %v275_v53 = vpop.f32.mrf.mxu0  ;;  %v318_v54 = vpop.f32.mrf.mxu1 }
  0xe7   :  { %458 = vtanh.f32 %v274_v51  ;;  %v276_v55 = vadd.f32 %v275_v53, %v54_v41  ;;  %v319_v56 = vadd.f32 %v318_v54, %v62_v42 }
  0xe8   :  { %460 = vtanh.f32 %v317_v52  ;;  %v277_v57 = vpop.f32.mrf.mxu0  ;;  %v320_v58 = vpop.f32.mrf.mxu1 }
  0xe9   :  { %462 = vtanh.f32 %v276_v55  ;;  %v278_v59 = vadd.f32 %v277_v57, %v58_v43  ;;  %v321_v60 = vadd.f32 %v320_v58, %v66_v44 }
  0xea   :  { %464 = vtanh.f32 %v319_v56 }
  0xeb   :  { %466 = vtanh.f32 %v278_v59 }
  0xec   :  { %468 = vtanh.f32 %v321_v60 }
  0xf2   :  { %v455_v61 = vpop.eup %454 }
  0xf3   :  { %v457_v62 = vpop.eup %456 }
  0xf4   :  { %v459_v63 = vpop.eup %458 }
  0xf5   :  { %v461_v0 = vpop.eup %460  ;;  %v400_v1 = vpack.c.bf16 %v459_v63, %v455_v61 }
  0xf6   :  { %v463_v2 = vpop.eup %462  ;;  %v401_v3 = vpack.c.bf16 %v461_v0, %v457_v62 }
  0xf7   :  { %v465_v4 = vpop.eup %464  ;;  %355 = vst [vmem:[%s608_s3] sm:$0xff] %v400_v1 }
  0xf8   :  { %v467_v5 = vpop.eup %466  ;;  %356 = vst [vmem:[%s608_s3 + $0x8] sm:$0xff] %v401_v3 }
  0xf9   :  { %v469_v6 = vpop.eup %468  ;;  %v402_v7 = vpack.c.bf16 %v467_v5, %v463_v2 }
  0xfa   :  { %v403_v8 = vpack.c.bf16 %v469_v6, %v465_v4 }
  0xfb   :  { %357 = vst [vmem:[%s608_s3 + $0x10] sm:$0xff] %v402_v7 }
  0xfc   :  { %358 = vst [vmem:[%s608_s3 + $0x18] sm:$0xff] %v403_v8 }

// kernel: cvae_forward.11
= control target key start
LH: loop header
LB: loop body
LE: loop exit
PB: predicated region body
PF: predicated region fallthrough
CT: control target
= control target key end

     0   :  { %s3952_s1 = inlined_call_operand.vmem [shape: bf16[896,128], index: 1, kind: input, shape index: {}]   ;;  %s3953_s0 = inlined_call_operand.vmem [shape: bf16[256,896], index: 0, kind: input, shape index: {}]   ;;  %s3954_s2 = inlined_call_operand.vmem [shape: f32[1,128], index: 2, kind: input, shape index: {}]   ;;  %s3955_s3 = inlined_call_operand.vmem [shape: bf16[256,128], index: 3, kind: output, shape index: {}]  }
   0x1   :  { %v2766_v0 = vld [vmem:[%s3952_s1 + $0x78] sm:$0xff]   ;;  %v2768_v2 = vld [vmem:[%s3952_s1 + $0x70] sm:$0xff]   ;;  %v2770_v4 = vld [vmem:[%s3952_s1 + $0x68] sm:$0xff]  }
   0x2   :  { %v2767_v1 = vld [vmem:[%s3952_s1 + $0x38] sm:$0xff]   ;;  %2342 = vmatprep.subr.bf16.mxu0 %v2766_v0  ;;  %2750 = vmatprep.subr.bf16.mxu1 %v2766_v0  ;;  %v2769_v3 = vld [vmem:[%s3952_s1 + $0x30] sm:$0xff]   ;;  %v2771_v5 = vld [vmem:[%s3952_s1 + $0x28] sm:$0xff]  }
   0x3   :  { %2343 = vmatpush3.bf16.msra.mxu0 %v2767_v1  ;;  %2758 = vmatpush3.bf16.msra.mxu1 %v2767_v1  ;;  %v2772_v6 = vld [vmem:[%s3952_s1 + $0x60] sm:$0xff]   ;;  %v2774_v8 = vld [vmem:[%s3952_s1 + $0x58] sm:$0xff]   ;;  %v2776_v10 = vld [vmem:[%s3952_s1 + $0x50] sm:$0xff]  }
   0x4   :  { %2344 = vmatprep.subr.bf16.mxu0 %v2768_v2  ;;  %2751 = vmatprep.subr.bf16.mxu1 %v2768_v2  ;;  %v2773_v7 = vld [vmem:[%s3952_s1 + $0x20] sm:$0xff]   ;;  %v2775_v9 = vld [vmem:[%s3952_s1 + $0x18] sm:$0xff]   ;;  %v2777_v13 = vld [vmem:[%s3952_s1 + $0x10] sm:$0xff]  }
   0x5   :  { %v2784_v11 = vld [vmem:[%s3953_s0 + $0x4] ss:$28 sps:$4 sm:$0xff]   ;;  %v2778_v14 = vld [vmem:[%s3952_s1 + $0x48] sm:$0xff]   ;;  %v2788_v18 = vld [vmem:[%s3952_s1 + $0xf8] sm:$0xff]  }
   0x6   :  { %v2787_v12 = vld [vmem:[%s3953_s0 + $0x2a4] ss:$28 sps:$4 sm:$0xff]   ;;  %1206 = vmatprep.mubr.bf16.mxu0 %v2784_v11  ;;  %v2779_v15 = vld [vmem:[%s3952_s1 + $0x8] sm:$0xff]   ;;  %v2789_v21 = vld [vmem:[%s3952_s1 + $0x178] sm:$0xff]  }
   0x7   :  { %2345 = vmatpush3.bf16.msra.mxu0 %v2769_v3  ;;  %2759 = vmatpush3.bf16.msra.mxu1 %v2769_v3  ;;  %v2780_v16 = vld [vmem:[%s3952_s1 + $0x40] sm:$0xff]   ;;  %v2790_v22 = vld [vmem:[%s3952_s1 + $0xb8] sm:$0xff]   ;;  %v2792_v24 = vld [vmem:[%s3952_s1 + $0xf0] sm:$0xff]  }
   0x8   :  { %2346 = vmatprep.subr.bf16.mxu0 %v2770_v4  ;;  %2752 = vmatprep.subr.bf16.mxu1 %v2770_v4  ;;  %v2781_v17 = vld [vmem:[%s3952_s1] sm:$0xff]   ;;  %v2791_v23 = vld [vmem:[%s3952_s1 + $0x138] sm:$0xff]   ;;  %v2803_v27 = vld [vmem:[%s3952_s1 + $0x170] sm:$0xff]  }
   0x9   :  { %1302 = vmatprep.mubr.bf16.mxu1 %v2787_v12  ;;  %v2782_v19 = vld [vmem:[%s3953_s0] ss:$28 sps:$4 sm:$0xff]   ;;  %v2793_v28 = vld [vmem:[%s3952_s1 + $0xb0] sm:$0xff]   ;;  %v2800_v32 = vld [vmem:[%s3952_s1 + $0xe8] sm:$0xff]  }
   0xa   :  { %v2785_v20 = vld [vmem:[%s3953_s0 + $0x2a0] ss:$28 sps:$4 sm:$0xff]   ;;  %v2805_v29 = vld [vmem:[%s3952_s1 + $0x130] sm:$0xff]   ;;  %v2801_v33 = vld [vmem:[%s3952_s1 + $0xa8] sm:$0xff]  }
   0xb   :  { %2347 = vmatpush3.bf16.msra.mxu0 %v2771_v5  ;;  %2760 = vmatpush3.bf16.msra.mxu1 %v2771_v5  ;;  %v2794_v25 = vld [vmem:[%s3953_s0 + $0x3c] ss:$28 sps:$4 sm:$0xff]   ;;  %v2802_v34 = vld [vmem:[%s3952_s1 + $0xe0] sm:$0xff]   ;;  %v2806_v35 = vld [vmem:[%s3953_s0 + $0x74] ss:$28 sps:$4 sm:$0xff]  }
   0xc   :  { %2348 = vmatprep.subr.bf16.mxu0 %v2772_v6  ;;  %2753 = vmatprep.subr.bf16.mxu1 %v2772_v6  ;;  %v2796_v26 = vld [vmem:[%s3953_s0 + $0x2dc] ss:$28 sps:$4 sm:$0xff]   ;;  %v2808_v36 = vld [vmem:[%s3953_s0 + $0x314] ss:$28 sps:$4 sm:$0xff]   ;;  %v2804_v37 = vld [vmem:[%s3952_s1 + $0xa0] sm:$0xff]  }
   0xd   :  { %v2798_v30 = vld [vmem:[%s3953_s0 + $0x38] ss:$28 sps:$4 sm:$0xff]   ;;  %v2810_v39 = vld [vmem:[%s3953_s0 + $0x70] ss:$28 sps:$4 sm:$0xff]   ;;  %v2820_v49 = vld [vmem:[%s3953_s0 + $0xa8] ss:$28 sps:$4 sm:$0xff]  }
   0xe   :  { %v2799_v31 = vld [vmem:[%s3953_s0 + $0x2d8] ss:$28 sps:$4 sm:$0xff]   ;;  %v2811_v40 = vld [vmem:[%s3953_s0 + $0x310] ss:$28 sps:$4 sm:$0xff]   ;;  %v2821_v50 = vld [vmem:[%s3953_s0 + $0x348] ss:$28 sps:$4 sm:$0xff]  }
   0xf   :  { %2349 = vmatpush3.bf16.msra.mxu0 %v2773_v7  ;;  %2761 = vmatpush3.bf16.msra.mxu1 %v2773_v7  ;;  %v2812_v38 = vld [vmem:[%s3952_s1 + $0xd8] sm:$0xff]   ;;  %v2823_v41 = vld [vmem:[%s3952_s1 + $0x168] sm:$0xff]   ;;  %v2814_v43 = vld [vmem:[%s3952_s1 + $0xd0] sm:$0xff]  }
  0x10   :  { %2350 = vmatprep.subr.bf16.mxu0 %v2774_v8  ;;  %2754 = vmatprep.subr.bf16.mxu1 %v2774_v8  ;;  %v2813_v42 = vld [vmem:[%s3952_s1 + $0x98] sm:$0xff]   ;;  %v2825_v44 = vld [vmem:[%s3952_s1 + $0x128] sm:$0xff]   ;;  %v2815_v47 = vld [vmem:[%s3952_s1 + $0x90] sm:$0xff]  }
  0x11   :  { %v2816_v45 = vld [vmem:[%s3953_s0 + $0xac] ss:$28 sps:$4 sm:$0xff]   ;;  %v2834_v51 = vld [vmem:[%s3952_s1 + $0x160] sm:$0xff]   ;;  %v2835_v58 = vld [vmem:[%s3952_s1 + $0x1b8] sm:$0xff]  }
  0x12   :  { %v2818_v46 = vld [vmem:[%s3953_s0 + $0x34c] ss:$28 sps:$4 sm:$0xff]   ;;  %v2836_v53 = vld [vmem:[%s3952_s1 + $0x120] sm:$0xff]   ;;  %v2849_v60 = vld [vmem:[%s3952_s1 + $0x158] sm:$0xff]  }
  0x13   :  { %2351 = vmatpush3.bf16.msra.mxu0 %v2775_v9  ;;  %2762 = vmatpush3.bf16.msra.mxu1 %v2775_v9  ;;  %v2822_v48 = vld [vmem:[%s3952_s1 + $0xc8] sm:$0xff]   ;;  %v2828_v54 = vld [vmem:[%s3953_s0 + $0xe4] ss:$28 sps:$4 sm:$0xff]   ;;  %v2850_v61 = vld [vmem:[%s3952_s1 + $0x118] sm:$0xff]  }
  0x14   :  { %2352 = vmatprep.subr.bf16.mxu0 %v2776_v10  ;;  %2755 = vmatprep.subr.bf16.mxu1 %v2776_v10  ;;  %v2824_v52 = vld [vmem:[%s3952_s1 + $0x88] sm:$0xff]   ;;  %v2826_v55 = vld [vmem:[%s3952_s1 + $0xc0] sm:$0xff]   ;;  %v2837_v63 = vld [vmem:[%s3953_s0 + $0x11c] ss:$28 sps:$4 sm:$0xff]  }
  0x15   :  { %v2832_v56 = vld [vmem:[%s3953_s0 + $0xc] ss:$28 sps:$4 sm:$0xff]   ;;  %v2827_v57 = vld [vmem:[%s3952_s1 + $0x80] sm:$0xff]   ;;  %v2851_v1 = vld [vmem:[%s3952_s1 + $0x1b0] sm:$0xff]  }
  0x16   :  { %v2830_v59 = vld [vmem:[%s3953_s0 + $0x8] ss:$28 sps:$4 sm:$0xff]   ;;  %v2833_v62 = vld [vmem:[%s3953_s0 + $0xe0] ss:$28 sps:$4 sm:$0xff]   ;;  %v2858_v2 = vld [vmem:[%s3952_s1 + $0x150] sm:$0xff]  }
  0x17   :  { %2353 = vmatpush3.bf16.msra.mxu0 %v2777_v13  ;;  %2763 = vmatpush3.bf16.msra.mxu1 %v2777_v13  ;;  %v2839_v0 = vld [vmem:[%s3953_s0 + $0x44] ss:$28 sps:$4 sm:$0xff]   ;;  %v2859_v3 = vld [vmem:[%s3952_s1 + $0x110] sm:$0xff]   ;;  %v2866_v7 = vld [vmem:[%s3952_s1 + $0x1a8] sm:$0xff]  }
  0x18   :  { %2354 = vmatprep.subr.bf16.mxu0 %v2778_v14  ;;  %2756 = vmatprep.subr.bf16.mxu1 %v2778_v14  ;;  %v2841_v4 = vld [vmem:[%s3953_s0 + $0x118] ss:$28 sps:$4 sm:$0xff]   ;;  %v2842_v5 = vld [vmem:[%s3953_s0 + $0x40] ss:$28 sps:$4 sm:$0xff]   ;;  %v2873_v9 = vld [vmem:[%s3952_s1 + $0x148] sm:$0xff]  }
  0x19   :  { %v2843_v6 = vld [vmem:[%s3953_s0 + $0x154] ss:$28 sps:$4 sm:$0xff]   ;;  %v2845_v8 = vld [vmem:[%s3953_s0 + $0x7c] ss:$28 sps:$4 sm:$0xff]   ;;  %v2874_v10 = vld [vmem:[%s3952_s1 + $0x108] sm:$0xff]  }
  0x1a   :  { %v2847_v11 = vld [vmem:[%s3953_s0 + $0x150] ss:$28 sps:$4 sm:$0xff]   ;;  %v2848_v12 = vld [vmem:[%s3953_s0 + $0x78] ss:$28 sps:$4 sm:$0xff]  }
  0x1b   :  { %2355 = vmatpush3.bf16.msra.mxu0 %v2779_v15  ;;  %2764 = vmatpush3.bf16.msra.mxu1 %v2779_v15  ;;  %v2852_v13 = vld [vmem:[%s3953_s0 + $0x18c] ss:$28 sps:$4 sm:$0xff]   ;;  %v2854_v14 = vld [vmem:[%s3953_s0 + $0xb4] ss:$28 sps:$4 sm:$0xff]   ;;  %v2881_v15 = vld [vmem:[%s3952_s1 + $0x140] sm:$0xff]  }
  0x1c   :  { %2356 = vmatprep.subr.bf16.mxu0 %v2780_v16  ;;  %2757 = vmatprep.subr.bf16.mxu1 %v2780_v16  ;;  %v2882_v16 = vld [vmem:[%s3952_s1 + $0x1a0] sm:$0xff]  }
  0x1f   :  { %2357 = vmatpush3.bf16.msra.mxu0 %v2781_v17  ;;  %2765 = vmatpush3.bf16.msra.mxu1 %v2781_v17  ;;  %v2883_v17 = vld [vmem:[%s3952_s1 + $0x100] sm:$0xff]  }
  0x20   :  { %2454 = vmatprep.subr.bf16.mxu1 %v2788_v18  ;;  %2566 = vmatprep.subr.bf16.mxu0 %v2789_v21  ;;  %v2856_v18 = vld [vmem:[%s3953_s0 + $0x188] ss:$28 sps:$4 sm:$0xff]  }
  0x21   :  { %v2862_v21 = vld [vmem:[%s3953_s0 + $0xec] ss:$28 sps:$4 sm:$0xff]  }
  0x22   :  { %1207 = vmatmul.mubr.bf16.vlgmr.msra.gmra.mxu0 %v2782_v19  ;;  %1303 = vmatmul.mubr.bf16.vlgmr.msra.gmra.mxu1 %v2785_v20  ;;  %v2857_v19 = vld [vmem:[%s3953_s0 + $0xb0] ss:$28 sps:$4 sm:$0xff]   ;;  %v2860_v20 = vld [vmem:[%s3953_s0 + $0x1c4] ss:$28 sps:$4 sm:$0xff]  }
  0x23   :  { %2455 = vmatpush3.bf16.msra.mxu1 %v2790_v22  ;;  %2567 = vmatpush3.bf16.msra.mxu0 %v2791_v23  ;;  %v2896_v22 = vld [vmem:[%s3952_s1 + $0x198] sm:$0xff]  }
  0x24   :  { %2456 = vmatprep.subr.bf16.mxu1 %v2792_v24  ;;  %1214 = vmatprep.mubr.bf16.mxu0 %v2794_v25  ;;  %v2864_v23 = vld [vmem:[%s3953_s0 + $0x1c0] ss:$28 sps:$4 sm:$0xff]   ;;  %v2865_v24 = vld [vmem:[%s3953_s0 + $0xe8] ss:$28 sps:$4 sm:$0xff]   ;;  %v2909_v25 = vld [vmem:[%s3952_s1 + $0x190] sm:$0xff]  }
  0x25   :  { %1310 = vmatprep.mubr.bf16.mxu1 %v2796_v26  ;;  %2568 = vmatprep.subr.bf16.mxu0 %v2803_v27  ;;  %v2867_v26 = vld [vmem:[%s3953_s0 + $0x1fc] ss:$28 sps:$4 sm:$0xff]   ;;  %v2869_v27 = vld [vmem:[%s3953_s0 + $0x124] ss:$28 sps:$4 sm:$0xff]  }
  0x27   :  { %2457 = vmatpush3.bf16.msra.mxu1 %v2793_v28  ;;  %2569 = vmatpush3.bf16.msra.mxu0 %v2805_v29  ;;  %v2922_v28 = vld [vmem:[%s3952_s1 + $0x188] sm:$0xff]   ;;  %v2871_v29 = vld [vmem:[%s3953_s0 + $0x1f8] ss:$28 sps:$4 sm:$0xff]  }
  0x28   :  { %2458 = vmatprep.subr.bf16.mxu1 %v2800_v32  ;;  %2570 = vmatprep.subr.bf16.mxu0 %v2823_v41  ;;  %v2877_v32 = vld [vmem:[%s3953_s0 + $0x15c] ss:$28 sps:$4 sm:$0xff]   ;;  %v2894_v41 = vld [vmem:[%s3953_s0 + $0x14] ss:$28 sps:$4 sm:$0xff]  }
  0x2a   :  { %1215 = vmatmul.mubr.bf16.gmra.mxu0 %v2798_v30  ;;  %1311 = vmatmul.mubr.bf16.gmra.mxu1 %v2799_v31  ;;  %v2872_v30 = vld [vmem:[%s3953_s0 + $0x120] ss:$28 sps:$4 sm:$0xff]   ;;  %v2875_v31 = vld [vmem:[%s3953_s0 + $0x234] ss:$28 sps:$4 sm:$0xff]  }
  0x2b   :  { %2459 = vmatpush3.bf16.msra.mxu1 %v2801_v33  ;;  %1222 = vmatprep.mubr.bf16.mxu0 %v2806_v35  ;;  %v2935_v33 = vld [vmem:[%s3952_s1 + $0x180] sm:$0xff]   ;;  %v2880_v35 = vld [vmem:[%s3953_s0 + $0x158] ss:$28 sps:$4 sm:$0xff]  }
  0x2c   :  { %2460 = vmatprep.subr.bf16.mxu1 %v2802_v34  ;;  %1318 = vmatprep.mubr.bf16.mxu1 %v2808_v36  ;;  %v2879_v34 = vld [vmem:[%s3953_s0 + $0x230] ss:$28 sps:$4 sm:$0xff]  }
  0x2d   :  { %2571 = vmatpush3.bf16.msra.mxu0 %v2825_v44  ;;  %v2884_v36 = vld [vmem:[%s3953_s0 + $0x26c] ss:$28 sps:$4 sm:$0xff]   ;;  %v2897_v44 = vld [vmem:[%s3953_s0 + $0x204] ss:$28 sps:$4 sm:$0xff]  }
  0x2e   :  { %2572 = vmatprep.subr.bf16.mxu0 %v2834_v51  ;;  %v2908_v51 = vld [vmem:[%s3953_s0 + $0x80] ss:$28 sps:$4 sm:$0xff]  }
  0x2f   :  { %2461 = vmatpush3.bf16.msra.mxu1 %v2804_v37  ;;  %v2886_v37 = vld [vmem:[%s3953_s0 + $0x194] ss:$28 sps:$4 sm:$0xff]  }
  0x30   :  { %2462 = vmatprep.subr.bf16.mxu1 %v2812_v38  ;;  %v2888_v38 = vld [vmem:[%s3953_s0 + $0x268] ss:$28 sps:$4 sm:$0xff]  }
  0x31   :  { %2573 = vmatpush3.bf16.msra.mxu0 %v2836_v53  ;;  %v2912_v53 = vld [vmem:[%s3953_s0 + $0xbc] ss:$28 sps:$4 sm:$0xff]  }
  0x32   :  { %1223 = vmatmul.mubr.bf16.gmra.mxu0 %v2810_v39  ;;  %1319 = vmatmul.mubr.bf16.gmra.mxu1 %v2811_v40  ;;  %v2889_v39 = vld [vmem:[%s3953_s0 + $0x190] ss:$28 sps:$4 sm:$0xff]  }
  0x33   :  { %2463 = vmatpush3.bf16.msra.mxu1 %v2813_v42  ;;  %1230 = vmatprep.mubr.bf16.mxu0 %v2816_v45  ;;  %v2890_v40 = vld [vmem:[%s3953_s0 + $0x1cc] ss:$28 sps:$4 sm:$0xff]  }
  0x34   :  { %2464 = vmatprep.subr.bf16.mxu1 %v2814_v43  ;;  %1326 = vmatprep.mubr.bf16.mxu1 %v2818_v46  ;;  %v2892_v42 = vld [vmem:[%s3953_s0 + $0x10] ss:$28 sps:$4 sm:$0xff]   ;;  %v2895_v43 = vld [vmem:[%s3953_s0 + $0x1c8] ss:$28 sps:$4 sm:$0xff]   ;;  %v2901_v46 = vld [vmem:[%s3953_s0 + $0x200] ss:$28 sps:$4 sm:$0xff]  }
  0x35   :  { %2574 = vmatprep.subr.bf16.mxu0 %v2849_v60  ;;  %v2899_v45 = vld [vmem:[%s3953_s0 + $0x4c] ss:$28 sps:$4 sm:$0xff]   ;;  %v2923_v60 = vld [vmem:[%s3953_s0 + $0x2e4] ss:$28 sps:$4 sm:$0xff]  }
  0x36   :  { %2575 = vmatpush3.bf16.msra.mxu0 %v2850_v61  ;;  %v2925_v61 = vld [vmem:[%s3953_s0 + $0x12c] ss:$28 sps:$4 sm:$0xff]  }
  0x37   :  { %2465 = vmatpush3.bf16.msra.mxu1 %v2815_v47  ;;  %2576 = vmatprep.subr.bf16.mxu0 %v2858_v2  ;;  %v2902_v47 = vld [vmem:[%s3953_s0 + $0x48] ss:$28 sps:$4 sm:$0xff]   ;;  %v2933_v2 = vld [vmem:[%s3953_s0 + $0x318] ss:$28 sps:$4 sm:$0xff]  }
  0x38   :  { %2466 = vmatprep.subr.bf16.mxu1 %v2822_v48  ;;  %v2903_v48 = vld [vmem:[%s3953_s0 + $0x23c] ss:$28 sps:$4 sm:$0xff]  }
  0x3a   :  { %1231 = vmatmul.mubr.bf16.gmra.mxu0 %v2820_v49  ;;  %1327 = vmatmul.mubr.bf16.gmra.mxu1 %v2821_v50  ;;  %v2905_v49 = vld [vmem:[%s3953_s0 + $0x84] ss:$28 sps:$4 sm:$0xff]   ;;  %v2907_v50 = vld [vmem:[%s3953_s0 + $0x238] ss:$28 sps:$4 sm:$0xff]  }
  0x3b   :  { %2467 = vmatpush3.bf16.msra.mxu1 %v2824_v52  ;;  %1238 = vmatprep.mubr.bf16.mxu0 %v2828_v54  ;;  %v2910_v52 = vld [vmem:[%s3953_s0 + $0x274] ss:$28 sps:$4 sm:$0xff]  }
  0x3c   :  { %2468 = vmatprep.subr.bf16.mxu1 %v2826_v55  ;;  %1367 = vmatprep.mubr.bf16.mxu1 %v2832_v56  ;;  %v2914_v54 = vld [vmem:[%s3953_s0 + $0x270] ss:$28 sps:$4 sm:$0xff]   ;;  %v2915_v55 = vld [vmem:[%s3953_s0 + $0xb8] ss:$28 sps:$4 sm:$0xff]  }
  0x3d   :  { %2577 = vmatpush3.bf16.msra.mxu0 %v2859_v3  ;;  %v2916_v56 = vld [vmem:[%s3953_s0 + $0x2ac] ss:$28 sps:$4 sm:$0xff]   ;;  %v2934_v3 = vld [vmem:[%s3953_s0 + $0x160] ss:$28 sps:$4 sm:$0xff]  }
  0x3e   :  { %2578 = vmatprep.subr.bf16.mxu0 %v2873_v9  ;;  %v2944_v9 = vld [vmem:[%s3953_s0 + $0x18] ss:$28 sps:$4 sm:$0xff]  }
  0x3f   :  { %2469 = vmatpush3.bf16.msra.mxu1 %v2827_v57  ;;  %v2918_v57 = vld [vmem:[%s3953_s0 + $0xf4] ss:$28 sps:$4 sm:$0xff]  }
  0x40   :  { %2702 = vmatprep.subr.bf16.mxu1 %v2835_v58 }
  0x41   :  { %2579 = vmatpush3.bf16.msra.mxu0 %v2874_v10  ;;  %v2945_v10 = vld [vmem:[%s3953_s0 + $0x1d0] ss:$28 sps:$4 sm:$0xff]  }
  0x42   :  { %1239 = vmatmul.mubr.bf16.gmra.mxu0 %v2833_v62  ;;  %1368 = vmatmul.mubr.bf16.vlgmr.msra.gmra.mxu1 %v2830_v59  ;;  %v2921_v59 = vld [vmem:[%s3953_s0 + $0xf0] ss:$28 sps:$4 sm:$0xff]   ;;  %v2927_v62 = vld [vmem:[%s3953_s0 + $0x2e0] ss:$28 sps:$4 sm:$0xff]  }
  0x43   :  { %2703 = vmatpush3.bf16.msra.mxu1 %v2835_v58  ;;  %1246 = vmatprep.mubr.bf16.mxu0 %v2837_v63  ;;  %v2920_v58 = vld [vmem:[%s3953_s0 + $0x2a8] ss:$28 sps:$4 sm:$0xff]  }
  0x44   :  { %1375 = vmatprep.mubr.bf16.mxu1 %v2839_v0  ;;  %2704 = vmatprep.subr.bf16.mxu1 %v2851_v1  ;;  %v2928_v63 = vld [vmem:[%s3953_s0 + $0x128] ss:$28 sps:$4 sm:$0xff]   ;;  %v2929_v0 = vld [vmem:[%s3953_s0 + $0x31c] ss:$28 sps:$4 sm:$0xff]  }
  0x45   :  { %2580 = vmatprep.subr.bf16.mxu0 %v2881_v15  ;;  %v2951_v15 = vld [vmem:[%s3953_s0 + $0xc0] ss:$28 sps:$4 sm:$0xff]  }
  0x46   :  { %2581 = vmatpush3.bf16.msra.mxu0 %v2883_v17  ;;  %v2954_v17 = vld [vmem:[%s3953_s0 + $0xf8] ss:$28 sps:$4 sm:$0xff]  }
  0x47   :  { %2705 = vmatpush3.bf16.msra.mxu1 %v2851_v1  ;;  %v2931_v1 = vld [vmem:[%s3953_s0 + $0x164] ss:$28 sps:$4 sm:$0xff]  }
  0x48   :  { %2706 = vmatprep.subr.bf16.mxu1 %v2866_v7 }
  0x4a   :  { %1247 = vmatmul.mubr.bf16.gmra.mxu0 %v2841_v4  ;;  %1376 = vmatmul.mubr.bf16.gmra.mxu1 %v2842_v5  ;;  %v2936_v4 = vld [vmem:[%s3953_s0 + $0x354] ss:$28 sps:$4 sm:$0xff]   ;;  %v2938_v5 = vld [vmem:[%s3953_s0 + $0x19c] ss:$28 sps:$4 sm:$0xff]  }
  0x4b   :  { %1254 = vmatprep.mubr.bf16.mxu0 %v2843_v6  ;;  %1383 = vmatprep.mubr.bf16.mxu1 %v2845_v8  ;;  %v2940_v6 = vld [vmem:[%s3953_s0 + $0x350] ss:$28 sps:$4 sm:$0xff]  }
  0x4c   :  { %2707 = vmatpush3.bf16.msra.mxu1 %v2866_v7  ;;  %v2941_v7 = vld [vmem:[%s3953_s0 + $0x198] ss:$28 sps:$4 sm:$0xff]  }
  0x4d   :  { %2708 = vmatprep.subr.bf16.mxu1 %v2882_v16  ;;  %v2942_v8 = vld [vmem:[%s3953_s0 + $0x1d4] ss:$28 sps:$4 sm:$0xff]  }
  0x50   :  { %2709 = vmatpush3.bf16.msra.mxu1 %v2882_v16  ;;  %v2952_v16 = vld [vmem:[%s3953_s0 + $0x244] ss:$28 sps:$4 sm:$0xff]  }
  0x51   :  { %2710 = vmatprep.subr.bf16.mxu1 %v2896_v22 }
  0x52   :  { %1255 = vmatmul.mubr.bf16.gmra.mxu0 %v2847_v11  ;;  %1384 = vmatmul.mubr.bf16.gmra.mxu1 %v2848_v12  ;;  %v2946_v11 = vld [vmem:[%s3953_s0 + $0x50] ss:$28 sps:$4 sm:$0xff]  }
  0x53   :  { %1262 = vmatprep.mubr.bf16.mxu0 %v2852_v13  ;;  %1391 = vmatprep.mubr.bf16.mxu1 %v2854_v14  ;;  %v2947_v12 = vld [vmem:[%s3953_s0 + $0x20c] ss:$28 sps:$4 sm:$0xff]  }
  0x54   :  { %2711 = vmatpush3.bf16.msra.mxu1 %v2896_v22  ;;  %v2949_v13 = vld [vmem:[%s3953_s0 + $0x88] ss:$28 sps:$4 sm:$0xff]   ;;  %v2960_v22 = vld [vmem:[%s3953_s0 + $0x278] ss:$28 sps:$4 sm:$0xff]  }
  0x55   :  { %2712 = vmatprep.subr.bf16.mxu1 %v2909_v25  ;;  %v2950_v14 = vld [vmem:[%s3953_s0 + $0x208] ss:$28 sps:$4 sm:$0xff]  }
  0x58   :  { %2713 = vmatpush3.bf16.msra.mxu1 %v2909_v25  ;;  %v2964_v25 = vld [vmem:[%s3953_s0 + $0x1d8] ss:$28 sps:$4 sm:$0xff]  }
  0x59   :  { %2714 = vmatprep.subr.bf16.mxu1 %v2922_v28 }
  0x5a   :  { %1263 = vmatmul.mubr.bf16.gmra.mxu0 %v2856_v18  ;;  %1392 = vmatmul.mubr.bf16.gmra.mxu1 %v2857_v19  ;;  %v2955_v18 = vld [vmem:[%s3953_s0 + $0x240] ss:$28 sps:$4 sm:$0xff]   ;;  %v2956_v19 = vld [vmem:[%s3953_s0 + $0x130] ss:$28 sps:$4 sm:$0xff]  }
  0x5b   :  { %1270 = vmatprep.mubr.bf16.mxu0 %v2860_v20  ;;  %1399 = vmatprep.mubr.bf16.mxu1 %v2862_v21  ;;  %v2957_v20 = vld [vmem:[%s3953_s0 + $0x27c] ss:$28 sps:$4 sm:$0xff]   ;;  %v2959_v21 = vld [vmem:[%s3953_s0 + $0x168] ss:$28 sps:$4 sm:$0xff]  }
  0x5c   :  { %2715 = vmatpush3.bf16.msra.mxu1 %v2922_v28  ;;  %v2967_v28 = vld [vmem:[%s3953_s0 + $0x2ec] ss:$28 sps:$4 sm:$0xff]  }
  0x5d   :  { %2716 = vmatprep.subr.bf16.mxu1 %v2935_v33 }
  0x60   :  { %2717 = vmatpush3.bf16.msra.mxu1 %v2935_v33 }
  0x62   :  { %1271 = vmatmul.mubr.bf16.gmra.mxu0 %v2864_v23  ;;  %1400 = vmatmul.mubr.bf16.gmra.mxu1 %v2865_v24  ;;  %v2961_v23 = vld [vmem:[%s3953_s0 + $0x1a0] ss:$28 sps:$4 sm:$0xff]   ;;  %v2962_v24 = vld [vmem:[%s3953_s0 + $0x2b4] ss:$28 sps:$4 sm:$0xff]  }
  0x63   :  { %1278 = vmatprep.mubr.bf16.mxu0 %v2867_v26  ;;  %1407 = vmatprep.mubr.bf16.mxu1 %v2869_v27  ;;  %v2965_v26 = vld [vmem:[%s3953_s0 + $0x2b0] ss:$28 sps:$4 sm:$0xff]  }
  0x64   :  { %v2966_v27 = vld [vmem:[%s3953_s0 + $0x210] ss:$28 sps:$4 sm:$0xff]  }
  0x6a   :  { %1279 = vmatmul.mubr.bf16.gmra.mxu0 %v2871_v29  ;;  %1408 = vmatmul.mubr.bf16.gmra.mxu1 %v2872_v30  ;;  %v2969_v29 = vld [vmem:[%s3953_s0 + $0x248] ss:$28 sps:$4 sm:$0xff]  }
  0x6b   :  { %1286 = vmatprep.mubr.bf16.mxu0 %v2875_v31  ;;  %1415 = vmatprep.mubr.bf16.mxu1 %v2877_v32 }
  0x72   :  { %1287 = vmatmul.mubr.bf16.gmra.mxu0 %v2879_v34  ;;  %1416 = vmatmul.mubr.bf16.gmra.mxu1 %v2880_v35 }
  0x73   :  { %1294 = vmatprep.mubr.bf16.mxu0 %v2884_v36  ;;  %1423 = vmatprep.mubr.bf16.mxu1 %v2886_v37 }
  0x7a   :  { %1295 = vmatmul.mubr.bf16.gmra.mxu0 %v2888_v38  ;;  %1424 = vmatmul.mubr.bf16.gmra.mxu1 %v2889_v39  ;;  %v2970_v38 = vld [vmem:[%s3953_s0 + $0x2e8] ss:$28 sps:$4 sm:$0xff]   ;;  %v2971_v39 = vld [vmem:[%s3953_s0 + $0x280] ss:$28 sps:$4 sm:$0xff]  }
  0x7b   :  { %1431 = vmatprep.mubr.bf16.mxu1 %v2890_v40  ;;  %1528 = vmatprep.mubr.bf16.mxu0 %v2894_v41  ;;  %v2972_v40 = vld [vmem:[%s3953_s0 + $0x324] ss:$28 sps:$4 sm:$0xff]   ;;  %v2974_v41 = vld [vmem:[%s3953_s0 + $0x2b8] ss:$28 sps:$4 sm:$0xff]  }
  0x82   :  { %1432 = vmatmul.mubr.bf16.gmra.mxu1 %v2895_v43  ;;  %1529 = vmatmul.mubr.bf16.vlgmr.msra.gmra.mxu0 %v2892_v42 }
  0x83   :  { %1439 = vmatprep.mubr.bf16.mxu1 %v2897_v44  ;;  %1536 = vmatprep.mubr.bf16.mxu0 %v2899_v45 }
  0x8a   :  { %1440 = vmatmul.mubr.bf16.gmra.mxu1 %v2901_v46  ;;  %1537 = vmatmul.mubr.bf16.gmra.mxu0 %v2902_v47 }
  0x8b   :  { %1447 = vmatprep.mubr.bf16.mxu1 %v2903_v48  ;;  %1544 = vmatprep.mubr.bf16.mxu0 %v2905_v49 }
  0x92   :  { %1448 = vmatmul.mubr.bf16.gmra.mxu1 %v2907_v50  ;;  %1545 = vmatmul.mubr.bf16.gmra.mxu0 %v2908_v51 }
  0x93   :  { %1455 = vmatprep.mubr.bf16.mxu1 %v2910_v52  ;;  %1552 = vmatprep.mubr.bf16.mxu0 %v2912_v53 }
  0x9a   :  { %1456 = vmatmul.mubr.bf16.gmra.mxu1 %v2914_v54  ;;  %1553 = vmatmul.mubr.bf16.gmra.mxu0 %v2915_v55  ;;  %v2975_v54 = vld [vmem:[%s3953_s0 + $0x320] ss:$28 sps:$4 sm:$0xff]   ;;  %v2976_v55 = vld [vmem:[%s3953_s0 + $0x2f0] ss:$28 sps:$4 sm:$0xff]  }
  0x9b   :  { %1463 = vmatprep.mubr.bf16.mxu1 %v2916_v56  ;;  %1560 = vmatprep.mubr.bf16.mxu0 %v2918_v57  ;;  %v2977_v56 = vld [vmem:[%s3953_s0 + $0x35c] ss:$28 sps:$4 sm:$0xff]   ;;  %v2979_v57 = vld [vmem:[%s3953_s0 + $0x328] ss:$28 sps:$4 sm:$0xff]  }
  0xa2   :  { %1464 = vmatmul.mubr.bf16.gmra.mxu1 %v2920_v58  ;;  %1561 = vmatmul.mubr.bf16.gmra.mxu0 %v2921_v59 }
  0xa3   :  { %1471 = vmatprep.mubr.bf16.mxu1 %v2923_v60  ;;  %1568 = vmatprep.mubr.bf16.mxu0 %v2925_v61 }
  0xaa   :  { %1472 = vmatmul.mubr.bf16.gmra.mxu1 %v2927_v62  ;;  %1569 = vmatmul.mubr.bf16.gmra.mxu0 %v2928_v63 }
  0xab   :  { %1479 = vmatprep.mubr.bf16.mxu1 %v2929_v0  ;;  %1576 = vmatprep.mubr.bf16.mxu0 %v2931_v1 }
  0xb2   :  { %1480 = vmatmul.mubr.bf16.gmra.mxu1 %v2933_v2  ;;  %1577 = vmatmul.mubr.bf16.gmra.mxu0 %v2934_v3 }
  0xb3   :  { %1487 = vmatprep.mubr.bf16.mxu1 %v2936_v4  ;;  %1584 = vmatprep.mubr.bf16.mxu0 %v2938_v5 }
  0xba   :  { %1488 = vmatmul.mubr.bf16.gmra.mxu1 %v2940_v6  ;;  %1585 = vmatmul.mubr.bf16.gmra.mxu0 %v2941_v7  ;;  %v2980_v6 = vld [vmem:[%s3953_s0 + $0x358] ss:$28 sps:$4 sm:$0xff]   ;;  %v2981_v7 = vld [vmem:[%s3953_s0 + $0x360] ss:$28 sps:$4 sm:$0xff]  }
  0xbb   :  { %1592 = vmatprep.mubr.bf16.mxu0 %v2942_v8  ;;  %2718 = vmatprep.mubr.bf16.mxu1 %v2944_v9 }
  0xc2   :  { %1593 = vmatmul.mubr.bf16.gmra.mxu0 %v2945_v10  ;;  %2719 = vmatmul.mubr.bf16.vlgmr.msra.gmra.mxu1 %v2946_v11 }
  0xc3   :  { %1600 = vmatprep.mubr.bf16.mxu0 %v2947_v12  ;;  %2722 = vmatprep.mubr.bf16.mxu1 %v2949_v13 }
  0xca   :  { %1601 = vmatmul.mubr.bf16.gmra.mxu0 %v2950_v14  ;;  %2723 = vmatmul.mubr.bf16.gmra.mxu1 %v2951_v15 }
  0xcb   :  { %1608 = vmatprep.mubr.bf16.mxu0 %v2952_v16  ;;  %2726 = vmatprep.mubr.bf16.mxu1 %v2954_v17 }
  0xd2   :  { %1609 = vmatmul.mubr.bf16.gmra.mxu0 %v2955_v18  ;;  %2727 = vmatmul.mubr.bf16.gmra.mxu1 %v2956_v19 }
  0xd3   :  { %1616 = vmatprep.mubr.bf16.mxu0 %v2957_v20  ;;  %2730 = vmatprep.mubr.bf16.mxu1 %v2959_v21 }
  0xda   :  { %1617 = vmatmul.mubr.bf16.gmra.mxu0 %v2960_v22  ;;  %2731 = vmatmul.mubr.bf16.gmra.mxu1 %v2961_v23 }
  0xdb   :  { %1624 = vmatprep.mubr.bf16.mxu0 %v2962_v24  ;;  %2734 = vmatprep.mubr.bf16.mxu1 %v2964_v25  ;;  %v3599_v24 = vld [vmem:[%s3954_s2] ss:$0 sm:$0xff] }
  0xe2   :  { %v2358_v30 = vpop.f32.mrf.mxu0  ;;  %v2430_v31 = vpop.f32.mrf.mxu1  ;;  %1625 = vmatmul.mubr.bf16.gmra.mxu0 %v2965_v26  ;;  %2735 = vmatmul.mubr.bf16.gmra.mxu1 %v2966_v27 }
  0xe3   :  { %1632 = vmatprep.mubr.bf16.mxu0 %v2967_v28  ;;  %2738 = vmatprep.mubr.bf16.mxu1 %v2969_v29 }
  0xe4   :  { %v2359_v32 = vpop.f32.mrf.mxu0  ;;  %v2431_v33 = vpop.f32.mrf.mxu1 }
  0xe5   :  { %v3540_v34 = vadd.f32 %v2359_v32, %v2358_v30  ;;  %v3542_v35 = vadd.f32 %v2431_v33, %v2430_v31 }
  0xe6   :  { %v2361_v36 = vpop.f32.mrf.mxu0  ;;  %v2433_v37 = vpop.f32.mrf.mxu1 }
  0xe7   :  { %v1209_v29 = vadd.f32 %v3540_v34, %v3599_v24 }
  0xe8   :  { %v2362_v42 = vpop.f32.mrf.mxu0  ;;  %v2434_v43 = vpop.f32.mrf.mxu1 }
  0xe9   :  { %v3556_v44 = vadd.f32 %v2362_v42, %v2361_v36  ;;  %v3558_v45 = vadd.f32 %v2434_v43, %v2433_v37 }
  0xea   :  { %v2364_v46 = vpop.f32.mrf.mxu0  ;;  %v2436_v47 = vpop.f32.mrf.mxu1  ;;  %1633 = vmatmul.mubr.bf16.gmra.mxu0 %v2970_v38  ;;  %2739 = vmatmul.mubr.bf16.gmra.mxu1 %v2971_v39 }
  0xeb   :  { %1640 = vmatprep.mubr.bf16.mxu0 %v2972_v40  ;;  %2742 = vmatprep.mubr.bf16.mxu1 %v2974_v41  ;;  %v1212_v39 = vadd.f32 %v3556_v44, %v3599_v24 }
  0xec   :  { %v2365_v48 = vpop.f32.mrf.mxu0  ;;  %v2437_v49 = vpop.f32.mrf.mxu1 }
  0xed   :  { %v3560_v50 = vadd.f32 %v2365_v48, %v2364_v46  ;;  %v3562_v51 = vadd.f32 %v2437_v49, %v2436_v47 }
  0xee   :  { %v2367_v52 = vpop.f32.mrf.mxu0  ;;  %v2439_v53 = vpop.f32.mrf.mxu1 }
  0xef   :  { %v1217_v48 = vadd.f32 %v3560_v50, %v3599_v24 }
  0xf0   :  { %v2368_v58 = vpop.f32.mrf.mxu0  ;;  %v2440_v59 = vpop.f32.mrf.mxu1 }
  0xf1   :  { %v3576_v60 = vadd.f32 %v2368_v58, %v2367_v52  ;;  %v3578_v61 = vadd.f32 %v2440_v59, %v2439_v53 }
  0xf2   :  { %v2370_v62 = vpop.f32.mrf.mxu0  ;;  %v2442_v63 = vpop.f32.mrf.mxu1  ;;  %1641 = vmatmul.mubr.bf16.gmra.mxu0 %v2975_v54  ;;  %2743 = vmatmul.mubr.bf16.gmra.mxu1 %v2976_v55 }
  0xf3   :  { %1648 = vmatprep.mubr.bf16.mxu0 %v2977_v56  ;;  %2746 = vmatprep.mubr.bf16.mxu1 %v2979_v57  ;;  %v1220_v57 = vadd.f32 %v3576_v60, %v3599_v24 }
  0xf4   :  { %v2371_v0 = vpop.f32.mrf.mxu0  ;;  %v2443_v1 = vpop.f32.mrf.mxu1 }
  0xf5   :  { %v2372_v2 = vadd.f32 %v2371_v0, %v2370_v62  ;;  %v3580_v3 = vadd.f32 %v2443_v1, %v2442_v63 }
  0xf6   :  { %v2373_v4 = vpop.f32.mrf.mxu0  ;;  %v2445_v5 = vpop.f32.mrf.mxu1 }
  0xf8   :  { %v2374_v8 = vpop.f32.mrf.mxu0  ;;  %v2446_v9 = vpop.f32.mrf.mxu1 }
  0xf9   :  { %v2375_v10 = vadd.f32 %v2374_v8, %v2373_v4  ;;  %v3588_v11 = vadd.f32 %v2446_v9, %v2445_v5  ;;  %v1225_v4 = vadd.f32 %v2372_v2, %v3599_v24 }
  0xfa   :  { %v2376_v12 = vpop.f32.mrf.mxu0  ;;  %v2448_v13 = vpop.f32.mrf.mxu1  ;;  %1649 = vmatmul.mubr.bf16.gmra.mxu0 %v2980_v6  ;;  %2747 = vmatmul.mubr.bf16.gmra.mxu1 %v2981_v7 }
  0xfc   :  { %v2377_v14 = vpop.f32.mrf.mxu0  ;;  %v2449_v15 = vpop.f32.mrf.mxu1 }
  0xfd   :  { %v2378_v16 = vadd.f32 %v2377_v14, %v2376_v12  ;;  %v3590_v17 = vadd.f32 %v2449_v15, %v2448_v13  ;;  %v1228_v13 = vadd.f32 %v2375_v10, %v3599_v24 }
  0xfe   :  { %v2379_v18 = vpop.f32.mrf.mxu0  ;;  %v2451_v19 = vpop.f32.mrf.mxu1 }
 0x100   :  { %v2380_v20 = vpop.f32.mrf.mxu0  ;;  %v2452_v21 = vpop.f32.mrf.mxu1 }
 0x101   :  { %v3592_v22 = vadd.f32 %v2380_v20, %v2379_v18  ;;  %v3594_v23 = vadd.f32 %v2452_v21, %v2451_v19 }
 0x102   :  { %v2382_v25 = vpop.f32.mrf.mxu0  ;;  %v2470_v26 = vpop.f32.mrf.mxu1 }
 0x104   :  { %v2383_v27 = vpop.f32.mrf.mxu0  ;;  %v2471_v28 = vpop.f32.mrf.mxu1 }
 0x105   :  { %v3603_v30 = vadd.f32 %v2383_v27, %v2382_v25  ;;  %v2472_v31 = vadd.f32 %v2471_v28, %v2470_v26  ;;  %v1233_v25 = vadd.f32 %v2378_v16, %v3599_v24 }
 0x106   :  { %v2385_v32 = vpop.f32.mrf.mxu0  ;;  %v2473_v33 = vpop.f32.mrf.mxu1 }
 0x107   :  { %v3605_v36 = vadd.f32 %v2472_v31, %v1209_v29 }
 0x108   :  { %v2386_v37 = vpop.f32.mrf.mxu0  ;;  %v2474_v38 = vpop.f32.mrf.mxu1 }
 0x109   :  { %v3609_v40 = vadd.f32 %v2386_v37, %v2385_v32  ;;  %v2475_v41 = vadd.f32 %v2474_v38, %v2473_v33  ;;  %v1236_v33 = vadd.f32 %v3592_v22, %v3599_v24 }
 0x10a   :  { %v2388_v42 = vpop.f32.mrf.mxu0  ;;  %v2476_v43 = vpop.f32.mrf.mxu1 }
 0x10b   :  { %v3611_v46 = vadd.f32 %v2475_v41, %v1212_v39 }
 0x10c   :  { %v2389_v34 = vpop.f32.mrf.mxu0  ;;  %v2477_v47 = vpop.f32.mrf.mxu1 }
 0x10d   :  { %v3615_v49 = vadd.f32 %v2389_v34, %v2388_v42  ;;  %v2478_v52 = vadd.f32 %v2477_v47, %v2476_v43  ;;  %v1241_v34 = vadd.f32 %v3603_v30, %v3599_v24 }
 0x10e   :  { %v2391_v53 = vpop.f32.mrf.mxu0  ;;  %v2479_v54 = vpop.f32.mrf.mxu1 }
 0x10f   :  { %v3617_v55 = vadd.f32 %v2478_v52, %v1217_v48 }
 0x110   :  { %v2392_v44 = vpop.f32.mrf.mxu0  ;;  %v2480_v56 = vpop.f32.mrf.mxu1 }
 0x111   :  { %v3621_v58 = vadd.f32 %v2392_v44, %v2391_v53  ;;  %v2481_v59 = vadd.f32 %v2480_v56, %v2479_v54  ;;  %v1244_v56 = vadd.f32 %v3609_v40, %v3599_v24 }
 0x112   :  { %v2394_v62 = vpop.f32.mrf.mxu0  ;;  %v2482_v63 = vpop.f32.mrf.mxu1 }
 0x113   :  { %v3623_v0 = vadd.f32 %v2481_v59, %v1220_v57 }
 0x114   :  { %v2395_v50 = vpop.f32.mrf.mxu0  ;;  %v2483_v1 = vpop.f32.mrf.mxu1 }
 0x115   :  { %v3626_v5 = vadd.f32 %v2395_v50, %v2394_v62  ;;  %v2484_v6 = vadd.f32 %v2483_v1, %v2482_v63 }
 0x116   :  { %v2397_v7 = vpop.f32.mrf.mxu0  ;;  %v2485_v8 = vpop.f32.mrf.mxu1 }
 0x117   :  { %v3628_v9 = vadd.f32 %v2484_v6, %v1225_v4  ;;  %v1249_v4 = vadd.f32 %v3615_v49, %v3599_v24 }
 0x118   :  { %v2398_v12 = vpop.f32.mrf.mxu0  ;;  %v2486_v60 = vpop.f32.mrf.mxu1 }
 0x119   :  { %v3631_v14 = vadd.f32 %v2398_v12, %v2397_v7  ;;  %v2487_v15 = vadd.f32 %v2486_v60, %v2485_v8 }
 0x11a   :  { %v2400_v18 = vpop.f32.mrf.mxu0  ;;  %v2488_v19 = vpop.f32.mrf.mxu1 }
 0x11b   :  { %v3633_v20 = vadd.f32 %v2487_v15, %v1228_v13  ;;  %v1252_v15 = vadd.f32 %v3621_v58, %v3599_v24  ;;  %v1260_v58 = vadd.f32 %v3631_v14, %v3599_v24 }
 0x11c   :  { %v2401_v21 = vpop.f32.mrf.mxu0  ;;  %v2489_v2 = vpop.f32.mrf.mxu1 }
 0x11d   :  { %v3636_v26 = vadd.f32 %v2401_v21, %v2400_v18  ;;  %v2490_v27 = vadd.f32 %v2489_v2, %v2488_v19 }
 0x11e   :  { %v2403_v28 = vpop.f32.mrf.mxu0  ;;  %v2491_v29 = vpop.f32.mrf.mxu1 }
 0x11f   :  { %v3638_v31 = vadd.f32 %v2490_v27, %v1233_v25 }
 0x120   :  { %v2404_v32 = vpop.f32.mrf.mxu0  ;;  %v2492_v10 = vpop.f32.mrf.mxu1 }
 0x121   :  { %v3642_v37 = vadd.f32 %v2404_v32, %v2403_v28  ;;  %v2493_v38 = vadd.f32 %v2492_v10, %v2491_v29  ;;  %v1257_v28 = vadd.f32 %v3626_v5, %v3599_v24  ;;  %v1265_v5 = vadd.f32 %v3636_v26, %v3599_v24 }
 0x122   :  { %v2406_v39 = vpop.f32.mrf.mxu0  ;;  %v2494_v41 = vpop.f32.mrf.mxu1 }
 0x123   :  { %v3644_v42 = vadd.f32 %v2493_v38, %v1236_v33  ;;  %v1268_v14 = vadd.f32 %v3642_v37, %v3599_v24 }
 0x124   :  { %v2407_v16 = vpop.f32.mrf.mxu0  ;;  %v2495_v43 = vpop.f32.mrf.mxu1 }
 0x125   :  { %v3648_v47 = vadd.f32 %v2407_v16, %v2406_v39  ;;  %v2496_v48 = vadd.f32 %v2495_v43, %v2494_v41 }
 0x126   :  { %v2409_v52 = vpop.f32.mrf.mxu0  ;;  %v2497_v53 = vpop.f32.mrf.mxu1 }
 0x127   :  { %v3650_v54 = vadd.f32 %v2496_v48, %v1241_v34  ;;  %v1273_v26 = vadd.f32 %v3648_v47, %v3599_v24 }
 0x128   :  { %v2410_v22 = vpop.f32.mrf.mxu0  ;;  %v2498_v44 = vpop.f32.mrf.mxu1 }
 0x129   :  { %v3654_v57 = vadd.f32 %v2410_v22, %v2409_v52  ;;  %v2499_v59 = vadd.f32 %v2498_v44, %v2497_v53 }
 0x12a   :  { %v2412_v62 = vpop.f32.mrf.mxu0  ;;  %v2500_v63 = vpop.f32.mrf.mxu1 }
 0x12b   :  { %v3656_v50 = vadd.f32 %v2499_v59, %v1244_v56 }
 0x12c   :  { %v2413_v30 = vpop.f32.mrf.mxu0  ;;  %v2501_v1 = vpop.f32.mrf.mxu1 }
 0x12d   :  { %v3660_v6 = vadd.f32 %v2413_v30, %v2412_v62  ;;  %v2502_v7 = vadd.f32 %v2501_v1, %v2500_v63 }
 0x12e   :  { %v2415_v8 = vpop.f32.mrf.mxu0  ;;  %v2503_v12 = vpop.f32.mrf.mxu1 }
 0x12f   :  { %v3662_v60 = vadd.f32 %v2502_v7, %v1249_v4 }
 0x130   :  { %v2416_v40 = vpop.f32.mrf.mxu0  ;;  %v2504_v13 = vpop.f32.mrf.mxu1 }
 0x131   :  { %v2417_v18 = vadd.f32 %v2416_v40, %v2415_v8  ;;  %v2505_v19 = vadd.f32 %v2504_v13, %v2503_v12 }
 0x132   :  { %v2418_v21 = vpop.f32.mrf.mxu0  ;;  %v2506_v2 = vpop.f32.mrf.mxu1 }
 0x133   :  { %v3666_v25 = vadd.f32 %v2505_v19, %v1252_v15 }
 0x134   :  { %v2419_v27 = vpop.f32.mrf.mxu0  ;;  %v2507_v49 = vpop.f32.mrf.mxu1 }
 0x135   :  { %v2420_v29 = vadd.f32 %v2419_v27, %v2418_v21  ;;  %v2508_v32 = vadd.f32 %v2507_v49, %v2506_v2 }
 0x136   :  { %v2421_v10 = vpop.f32.mrf.mxu0  ;;  %v2509_v33 = vpop.f32.mrf.mxu1 }
 0x137   :  { %v3670_v38 = vadd.f32 %v2508_v32, %v1257_v28 }
 0x138   :  { %v2422_v39 = vpop.f32.mrf.mxu0  ;;  %v2510_v41 = vpop.f32.mrf.mxu1 }
 0x139   :  { %v2423_v16 = vadd.f32 %v2422_v39, %v2421_v10  ;;  %v2511_v43 = vadd.f32 %v2510_v41, %v2509_v33  ;;  %v1276_v10 = vadd.f32 %v3654_v57, %v3599_v24 }
 0x13a   :  { %v2424_v34 = vpop.f32.mrf.mxu0  ;;  %v2512_v48 = vpop.f32.mrf.mxu1 }
 0x13b   :  { %v3674_v52 = vadd.f32 %v2511_v43, %v1260_v58 }
 0x13c   :  { %v2425_v53 = vpop.f32.mrf.mxu0  ;;  %v2513_v22 = vpop.f32.mrf.mxu1 }
 0x13d   :  { %v2426_v44 = vadd.f32 %v2425_v53, %v2424_v34  ;;  %v2514_v56 = vadd.f32 %v2513_v22, %v2512_v48  ;;  %v1281_v34 = vadd.f32 %v3660_v6, %v3599_v24  ;;  %v1289_v6 = vadd.f32 %v2420_v29, %v3599_v24 }
 0x13e   :  { %v2427_v59 = vpop.f32.mrf.mxu0  ;;  %v2515_v62 = vpop.f32.mrf.mxu1 }
 0x13f   :  { %v3678_v63 = vadd.f32 %v2514_v56, %v1265_v5  ;;  %v1284_v56 = vadd.f32 %v2417_v18, %v3599_v24  ;;  %v1292_v18 = vadd.f32 %v2423_v16, %v3599_v24  ;;  %v1297_v29 = vadd.f32 %v2426_v44, %v3599_v24 }
 0x140   :  { %v2428_v30 = vpop.f32.mrf.mxu0  ;;  %v2516_v1 = vpop.f32.mrf.mxu1  ;;  %v1305_v44 = vadd.f32 %v3542_v35, %v3599_v24 }
 0x141   :  { %v2429_v4 = vadd.f32 %v2428_v30, %v2427_v59  ;;  %v2517_v7 = vadd.f32 %v2516_v1, %v2515_v62 }
 0x142   :  { %v2518_v8 = vpop.f32.mrf.mxu1  ;;  %v2582_v12 = vpop.f32.mrf.mxu0 }
 0x143   :  { %v3682_v40 = vadd.f32 %v2517_v7, %v1268_v14  ;;  %v1300_v16 = vadd.f32 %v2429_v4, %v3599_v24 }
 0x144   :  { %v2519_v13 = vpop.f32.mrf.mxu1  ;;  %v2583_v15 = vpop.f32.mrf.mxu0 }
 0x145   :  { %v2520_v19 = vadd.f32 %v2519_v13, %v2518_v8  ;;  %v2584_v21 = vadd.f32 %v2583_v15, %v2582_v12 }
 0x146   :  { %v2521_v2 = vpop.f32.mrf.mxu1  ;;  %v3686_v27 = vpop.f32.mrf.mxu0 }
 0x147   :  { %v3688_v49 = vadd.f32 %v2520_v19, %v1273_v26  ;;  %v3691_v37 = vadd.f32 %v2584_v21, %v3605_v36 }
 0x148   :  { %v2522_v28 = vpop.f32.mrf.mxu1  ;;  %v3693_v32 = vpop.f32.mrf.mxu0 }
 0x149   :  { %v2523_v33 = vadd.f32 %v2522_v28, %v2521_v2 }
 0x14a   :  { %v2524_v39 = vpop.f32.mrf.mxu1  ;;  %v3697_v41 = vpop.f32.mrf.mxu0 }
 0x14b   :  { %v3699_v47 = vadd.f32 %v2523_v33, %v1276_v10 }
 0x14c   :  { %v2525_v58 = vpop.f32.mrf.mxu1  ;;  %v3701_v43 = vpop.f32.mrf.mxu0 }
 0x14d   :  { %v2526_v36 = vadd.f32 %v2525_v58, %v2524_v39 }
 0x14e   :  { %v2527_v48 = vpop.f32.mrf.mxu1  ;;  %v3705_v53 = vpop.f32.mrf.mxu0 }
 0x14f   :  { %v3707_v22 = vadd.f32 %v2526_v36, %v1281_v34 }
 0x150   :  { %v2528_v5 = vpop.f32.mrf.mxu1  ;;  %v3709_v57 = vpop.f32.mrf.mxu0 }
 0x151   :  { %v2529_v59 = vadd.f32 %v2528_v5, %v2527_v48 }
 0x152   :  { %v2530_v62 = vpop.f32.mrf.mxu1  ;;  %v3712_v30 = vpop.f32.mrf.mxu0 }
 0x153   :  { %v3714_v1 = vadd.f32 %v2529_v59, %v1284_v56 }
 0x154   :  { %v2531_v14 = vpop.f32.mrf.mxu1  ;;  %v3716_v7 = vpop.f32.mrf.mxu0 }
 0x155   :  { %v2532_v8 = vadd.f32 %v2531_v14, %v2530_v62 }
 0x156   :  { %v2533_v12 = vpop.f32.mrf.mxu1  ;;  %v3719_v13 = vpop.f32.mrf.mxu0 }
 0x157   :  { %v3721_v15 = vadd.f32 %v2532_v8, %v1289_v6 }
 0x158   :  { %v2534_v26 = vpop.f32.mrf.mxu1  ;;  %v3723_v19 = vpop.f32.mrf.mxu0 }
 0x159   :  { %3956 = vst [vmem:[#allocation2_spill] sm:$0xff] %v3721_v15  ;;  %v2535_v21 = vadd.f32 %v2534_v26, %v2533_v12 }
 0x15a   :  { %v2536_v2 = vpop.f32.mrf.mxu1  ;;  %v3726_v28 = vpop.f32.mrf.mxu0 }
 0x15b   :  { %v3728_v10 = vadd.f32 %v2535_v21, %v1292_v18 }
 0x15c   :  { %v2537_v33 = vpop.f32.mrf.mxu1  ;;  %v3730_v39 = vpop.f32.mrf.mxu0 }
 0x15d   :  { %3957 = vst [vmem:[#allocation3_spill] sm:$0xff] %v3728_v10  ;;  %v2538_v58 = vadd.f32 %v2537_v33, %v2536_v2 }
 0x15e   :  { %v2539_v34 = vpop.f32.mrf.mxu1  ;;  %v3733_v36 = vpop.f32.mrf.mxu0 }
 0x15f   :  { %v3735_v48 = vadd.f32 %v2538_v58, %v1297_v29  ;;  %v1308_v29 = vadd.f32 %v3558_v45, %v3599_v24 }
 0x160   :  { %v2540_v5 = vpop.f32.mrf.mxu1  ;;  %v3737_v56 = vpop.f32.mrf.mxu0 }
 0x161   :  { %3958 = vst [vmem:[#allocation4_spill] sm:$0xff] %v3735_v48  ;;  %v2541_v59 = vadd.f32 %v2540_v5, %v2539_v34 }
 0x162   :  { %v2542_v62 = vpop.f32.mrf.mxu1  ;;  %v3740_v14 = vpop.f32.mrf.mxu0 }
 0x163   :  { %v3742_v6 = vadd.f32 %v2541_v59, %v1300_v16 }
 0x164   :  { %v2543_v8 = vpop.f32.mrf.mxu1  ;;  %v3744_v12 = vpop.f32.mrf.mxu0 }
 0x165   :  { %3959 = vst [vmem:[#allocation5_spill] sm:$0xff] %v3742_v6  ;;  %v2544_v26 = vadd.f32 %v2543_v8, %v2542_v62  ;;  %v1313_v62 = vadd.f32 %v3562_v51, %v3599_v24 }
 0x166   :  { %v2545_v18 = vpop.f32.mrf.mxu1  ;;  %v3748_v21 = vpop.f32.mrf.mxu0 }
 0x167   :  { %v3750_v2 = vadd.f32 %v2544_v26, %v1305_v44 }
 0x168   :  { %v2546_v33 = vpop.f32.mrf.mxu1  ;;  %v3752_v4 = vpop.f32.mrf.mxu0 }
 0x169   :  { %3960 = vst [vmem:[#allocation6_spill] sm:$0xff] %v3750_v2  ;;  %v2547_v58 = vadd.f32 %v2546_v33, %v2545_v18  ;;  %v1316_v18 = vadd.f32 %v3578_v61, %v3599_v24 }
 0x16a   :  { %v2548_v34 = vpop.f32.mrf.mxu1  ;;  %v3756_v5 = vpop.f32.mrf.mxu0 }
 0x16b   :  { %v3758_v16 = vadd.f32 %v2547_v58, %v1308_v29 }
 0x16c   :  { %v2549_v59 = vpop.f32.mrf.mxu1  ;;  %v3760_v35 = vpop.f32.mrf.mxu0 }
 0x16d   :  { %3961 = vst [vmem:[#allocation7_spill] sm:$0xff] %v3758_v16  ;;  %v2550_v8 = vadd.f32 %v2549_v59, %v2548_v34  ;;  %v1321_v34 = vadd.f32 %v3580_v3, %v3599_v24 }
 0x16e   :  { %v2551_v44 = vpop.f32.mrf.mxu1  ;;  %v3764_v26 = vpop.f32.mrf.mxu0 }
 0x16f   :  { %v3766_v2 = vadd.f32 %v2550_v8, %v1313_v62 }
 0x170   :  { %v2552_v10 = vpop.f32.mrf.mxu1  ;;  %v3768_v45 = vpop.f32.mrf.mxu0 }
 0x171   :  { %3962 = vst [vmem:[#allocation8_spill] sm:$0xff] %v3766_v2  ;;  %v2553_v33 = vadd.f32 %v2552_v10, %v2551_v44  ;;  %v1324_v10 = vadd.f32 %v3588_v11, %v3599_v24 }
 0x172   :  { %v2554_v29 = vpop.f32.mrf.mxu1  ;;  %v3772_v58 = vpop.f32.mrf.mxu0 }
 0x173   :  { %v3774_v16 = vadd.f32 %v2553_v33, %v1316_v18 }
 0x174   :  { %v2555_v6 = vpop.f32.mrf.mxu1  ;;  %v3776_v51 = vpop.f32.mrf.mxu0 }
 0x175   :  { %3963 = vst [vmem:[#allocation9_spill] sm:$0xff] %v3774_v16  ;;  %v2556_v59 = vadd.f32 %v2555_v6, %v2554_v29  ;;  %v1329_v6 = vadd.f32 %v3590_v17, %v3599_v24 }
 0x176   :  { %v2557_v62 = vpop.f32.mrf.mxu1  ;;  %v3780_v8 = vpop.f32.mrf.mxu0 }
 0x177   :  { %v3782_v2 = vadd.f32 %v2556_v59, %v1321_v34  ;;  %v2590_v34 = vadd.f32 %v3701_v43, %v3697_v41  ;;  %v2587_v43 = vadd.f32 %v3693_v32, %v3686_v27  ;;  %v2596_v27 = vadd.f32 %v3716_v7, %v3712_v30 }
 0x178   :  { %v2558_v15 = vpop.f32.mrf.mxu1  ;;  %v3784_v61 = vpop.f32.mrf.mxu0 }
 0x179   :  { %3964 = vst [vmem:[#allocation10_spill] sm:$0xff] %v3782_v2  ;;  %v2559_v44 = vadd.f32 %v2558_v15, %v2557_v62 }
 0x17a   :  { %v2560_v18 = vpop.f32.mrf.mxu1  ;;  %v3788_v33 = vpop.f32.mrf.mxu0 }
 0x17b   :  { %v3790_v16 = vadd.f32 %v2559_v44, %v1324_v10  ;;  %v1332_v10 = vadd.f32 %v3594_v23, %v3599_v24  ;;  %v2593_v44 = vadd.f32 %v3709_v57, %v3705_v53  ;;  %v2602_v24 = vadd.f32 %v3730_v39, %v3726_v28 }
 0x17c   :  { %v2561_v48 = vpop.f32.mrf.mxu1  ;;  %v3792_v3 = vpop.f32.mrf.mxu0 }
 0x17d   :  { %3965 = vst [vmem:[#allocation11_spill] sm:$0xff] %v3790_v16  ;;  %v2562_v29 = vadd.f32 %v2561_v48, %v2560_v18  ;;  %v1539_v48 = vadd.f32 %v2590_v34, %v3617_v55  ;;  %v1542_v23 = vadd.f32 %v2593_v44, %v3623_v0  ;;  %v2605_v0 = vadd.f32 %v3737_v56, %v3733_v36 }
 0x17e   :  { %v2563_v59 = vpop.f32.mrf.mxu1  ;;  %v3798_v2 = vpop.f32.mrf.mxu0  ;;  %v1555_v39 = vadd.f32 %v2602_v24, %v3638_v31  ;;  %v2614_v56 = vadd.f32 %v3760_v35, %v3756_v5 }
 0x17f   :  { %v3800_v11 = vadd.f32 %v2562_v29, %v1329_v6  ;;  %v1558_v36 = vadd.f32 %v2605_v0, %v3644_v42  ;;  %v2617_v42 = vadd.f32 %v3768_v45, %v3764_v26 }
 0x180   :  { %v2564_v15 = vpop.f32.mrf.mxu1  ;;  %v3802_v62 = vpop.f32.mrf.mxu0  ;;  %v1571_v35 = vadd.f32 %v2614_v56, %v3662_v60 }
 0x181   :  { %3966 = vst [vmem:[#allocation12_spill] sm:$0xff] %v3800_v11  ;;  %v2565_v16 = vadd.f32 %v2564_v15, %v2563_v59  ;;  %v1534_v59 = vadd.f32 %v2587_v43, %v3611_v46  ;;  %v2599_v46 = vadd.f32 %v3723_v19, %v3719_v13  ;;  %v1547_v15 = vadd.f32 %v2596_v27, %v3628_v9 }
 0x182   :  { %v3808_v17 = vpop.f32.mrf.mxu0  ;;  %v2720_v41 = vpop.f32.mrf.mxu1  ;;  %v2608_v13 = vadd.f32 %v3744_v12, %v3740_v14  ;;  %v1574_v26 = vadd.f32 %v2617_v42, %v3666_v25 }
 0x183   :  { %v3813_v18 = vadd.f32 %v2565_v16, %v1332_v10  ;;  %v1700_v6 = vadd.f32 %v2720_v41, %v1539_v48  ;;  %v1550_v43 = vadd.f32 %v2599_v46, %v3633_v20  ;;  %v2611_v20 = vadd.f32 %v3752_v4, %v3748_v21 }
 0x184   :  { %v3815_v29 = vpop.f32.mrf.mxu0  ;;  %v1691_v11 = vpop.f32.mrf.mxu1  ;;  %v1563_v24 = vadd.f32 %v2608_v13, %v3650_v54  ;;  %v2620_v54 = vadd.f32 %v3776_v51, %v3772_v58  ;;  %v2623_v58 = vadd.f32 %v3784_v61, %v3780_v8 }
 0x185   :  { %v1692_v53 = vadd.f32 %v1691_v11, %v3691_v37  ;;  %2982 = vtanh.f32 %v1700_v6  ;;  %v1566_v0 = vadd.f32 %v2611_v20, %v3656_v50 }
 0x186   :  { %v3821_v57 = vpop.f32.mrf.mxu0  ;;  %v2721_v55 = vpop.f32.mrf.mxu1  ;;  %v1582_v13 = vadd.f32 %v2623_v58, %v3674_v52 }
 0x187   :  { %v1703_v34 = vadd.f32 %v2721_v55, %v1542_v23 }
 0x188   :  { %v3826_v32 = vpop.f32.mrf.mxu0  ;;  %v1694_v16 = vpop.f32.mrf.mxu1 }
 0x189   :  { %2984 = vtanh.f32 %v1703_v34  ;;  %v1695_v28 = vadd.f32 %v1694_v16, %v1534_v59  ;;  %v2626_v34 = vadd.f32 %v3792_v3, %v3788_v33  ;;  %v2629_v33 = vadd.f32 %v3802_v62, %v3798_v2 }
 0x18a   :  { %2986 = vtanh.f32 %v1692_v53  ;;  %v3830_v37 = vpop.f32.mrf.mxu0  ;;  %v2724_v11 = vpop.f32.mrf.mxu1  ;;  %v1579_v62 = vadd.f32 %v2620_v54, %v3670_v38  ;;  %v2632_v38 = vadd.f32 %v3815_v29, %v3808_v17  ;;  %v2635_v17 = vadd.f32 %v3826_v32, %v3821_v57  ;;  %v3967_v54 = vld [vmem:[#allocation4_spill] sm:$0xff] }
 0x18b   :  { %2988 = vtanh.f32 %v1695_v28  ;;  %v1716_v30 = vadd.f32 %v2724_v11, %v1555_v39  ;;  %v1587_v46 = vadd.f32 %v2626_v34, %v3678_v63 }
 0x18c   :  { %v3835_v7 = vpop.f32.mrf.mxu0  ;;  %v1707_v10 = vpop.f32.mrf.mxu1 }
 0x18d   :  { %v1708_v44 = vadd.f32 %v1707_v10, %v1547_v15  ;;  %2990 = vtanh.f32 %v1716_v30  ;;  %v2638_v63 = vadd.f32 %v3835_v7, %v3830_v37 }
 0x18e   :  { %v3841_v48 = vpop.f32.mrf.mxu0  ;;  %v2725_v31 = vpop.f32.mrf.mxu1 }
 0x18f   :  { %v1719_v41 = vadd.f32 %v2725_v31, %v1558_v36  ;;  %v1590_v36 = vadd.f32 %v2629_v33, %v3682_v40  ;;  %v1603_v52 = vadd.f32 %v2638_v63, %v3707_v22 }
 0x190   :  { %v3846_v19 = vpop.f32.mrf.mxu0  ;;  %v1710_v9 = vpop.f32.mrf.mxu1 }
 0x191   :  { %2992 = vtanh.f32 %v1719_v41  ;;  %v1711_v6 = vadd.f32 %v1710_v9, %v1550_v43  ;;  %v2641_v40 = vadd.f32 %v3846_v19, %v3841_v48  ;;  %v1595_v48 = vadd.f32 %v2632_v38, %v3688_v49  ;;  %v3971_v38 = vld [vmem:[#allocation8_spill] sm:$0xff] }
 0x192   :  { %2994 = vtanh.f32 %v1708_v44  ;;  %v3850_v5 = vpop.f32.mrf.mxu0  ;;  %v2728_v23 = vpop.f32.mrf.mxu1 }
 0x193   :  { %2996 = vtanh.f32 %v1711_v6  ;;  %v1732_v14 = vadd.f32 %v2728_v23, %v1571_v35  ;;  %v2983_v55 = vpop.eup %2982 }
 0x194   :  { %v3855_v12 = vpop.f32.mrf.mxu0  ;;  %v1723_v53 = vpop.f32.mrf.mxu1 }
 0x195   :  { %v1724_v59 = vadd.f32 %v1723_v53, %v1563_v24  ;;  %2998 = vtanh.f32 %v1732_v14  ;;  %v1606_v24 = vadd.f32 %v2641_v40, %v3714_v1 }
 0x196   :  { %v2985_v45 = vpop.eup %2984  ;;  %v3861_v60 = vpop.f32.mrf.mxu0 }
 0x197   :  { %v2729_v27 = vpop.f32.mrf.mxu1  ;;  %v2987_v16 = vpop.eup %2986  ;;  %v2255_v21 = vpack.c.bf16 %v2985_v45, %v2983_v55 }
 0x198   :  { %v1735_v4 = vadd.f32 %v2729_v27, %v1574_v26  ;;  %v2989_v28 = vpop.eup %2988  ;;  %v3866_v39 = vpop.f32.mrf.mxu0 }
 0x199   :  { %v1726_v25 = vpop.f32.mrf.mxu1  ;;  %2327 = vst [vmem:[%s3955_s3 + $0x8] sm:$0xff] %v2255_v21   ;;  %v2250_v3 = vpack.c.bf16 %v2989_v28, %v2987_v16  ;;  %v2644_v16 = vadd.f32 %v3855_v12, %v3850_v5  ;;  %v2647_v33 = vadd.f32 %v3866_v39, %v3861_v60 }
 0x19a   :  { %3000 = vtanh.f32 %v1735_v4  ;;  %v1727_v11 = vadd.f32 %v1726_v25, %v1566_v0  ;;  %v2648_v50 = vpop.f32.mrf.mxu0  ;;  %v2991_v10 = vpop.eup %2990 }
 0x19b   :  { %3002 = vtanh.f32 %v1724_v59  ;;  %v2732_v30 = vpop.f32.mrf.mxu1  ;;  %2251 = vst [vmem:[%s3955_s3] sm:$0xff] %v2250_v3   ;;  %v1598_v59 = vadd.f32 %v2635_v17, %v3699_v47  ;;  %v3968_v3 = vld [vmem:[#allocation2_spill] sm:$0xff] }
 0x19c   :  { %3004 = vtanh.f32 %v1727_v11  ;;  %v1748_v2 = vadd.f32 %v2732_v30, %v1587_v46  ;;  %v2649_v51 = vpop.f32.mrf.mxu0  ;;  %v1611_v11 = vadd.f32 %v2644_v16, %v3968_v3  ;;  %v3969_v30 = vld [vmem:[#allocation5_spill] sm:$0xff] }
 0x19d   :  { %v1739_v15 = vpop.f32.mrf.mxu1  ;;  %v2650_v55 = vadd.f32 %v2649_v51, %v2648_v50 }
 0x19e   :  { %v2993_v56 = vpop.eup %2992  ;;  %v1740_v44 = vadd.f32 %v1739_v15, %v1579_v62  ;;  %v2651_v31 = vpop.f32.mrf.mxu0  ;;  %3006 = vtanh.f32 %v1748_v2 }
 0x19f   :  { %v2733_v8 = vpop.f32.mrf.mxu1  ;;  %v2995_v61 = vpop.eup %2994  ;;  %v2265_v41 = vpack.c.bf16 %v2993_v56, %v2991_v10  ;;  %v1619_v25 = vadd.f32 %v2650_v55, %v3967_v54  ;;  %v3970_v56 = vld [vmem:[#allocation3_spill] sm:$0xff] }
 0x1a0   :  { %v1751_v43 = vadd.f32 %v2733_v8, %v1590_v36  ;;  %v2997_v9 = vpop.eup %2996  ;;  %v2652_v42 = vpop.f32.mrf.mxu0  ;;  %v1614_v63 = vadd.f32 %v2647_v33, %v3970_v56 }
 0x1a1   :  { %v1742_v6 = vpop.f32.mrf.mxu1  ;;  %2329 = vst [vmem:[%s3955_s3 + $0x18] sm:$0xff] %v2265_v41   ;;  %v2260_v37 = vpack.c.bf16 %v2997_v9, %v2995_v61  ;;  %v2653_v4 = vadd.f32 %v2652_v42, %v2651_v31 }
 0x1a2   :  { %3008 = vtanh.f32 %v1751_v43  ;;  %v1743_v7 = vadd.f32 %v1742_v6, %v1582_v13  ;;  %v2654_v35 = vpop.f32.mrf.mxu0  ;;  %v2999_v14 = vpop.eup %2998 }
 0x1a3   :  { %3010 = vtanh.f32 %v1740_v44  ;;  %v2736_v23 = vpop.f32.mrf.mxu1  ;;  %2328 = vst [vmem:[%s3955_s3 + $0x10] sm:$0xff] %v2260_v37   ;;  %v1622_v58 = vadd.f32 %v2653_v4, %v3969_v30 }
 0x1a4   :  { %3012 = vtanh.f32 %v1743_v7  ;;  %v1764_v29 = vadd.f32 %v2736_v23, %v1603_v52  ;;  %v2655_v20 = vpop.f32.mrf.mxu0 }
 0x1a5   :  { %v1755_v19 = vpop.f32.mrf.mxu1  ;;  %v2656_v31 = vadd.f32 %v2655_v20, %v2654_v35  ;;  %v3972_v35 = vld [vmem:[#allocation6_spill] sm:$0xff] }
 0x1a6   :  { %v1756_v22 = vadd.f32 %v1755_v19, %v1595_v48  ;;  %v2657_v26 = vpop.f32.mrf.mxu0  ;;  %3014 = vtanh.f32 %v1764_v29  ;;  %v3973_v29 = vld [vmem:[#allocation9_spill] sm:$0xff] }
 0x1a7   :  { %v3001_v53 = vpop.eup %3000  ;;  %v2737_v45 = vpop.f32.mrf.mxu1  ;;  %v1627_v52 = vadd.f32 %v2656_v31, %v3972_v35 }
 0x1a8   :  { %v3003_v34 = vpop.eup %3002  ;;  %v2275_v57 = vpack.c.bf16 %v3001_v53, %v2999_v14  ;;  %v1767_v32 = vadd.f32 %v2737_v45, %v1606_v24  ;;  %v2658_v49 = vpop.f32.mrf.mxu0  ;;  %v3974_v45 = vld [vmem:[#allocation7_spill] sm:$0xff] }
 0x1a9   :  { %v3005_v27 = vpop.eup %3004  ;;  %v1758_v21 = vpop.f32.mrf.mxu1  ;;  %v2659_v40 = vadd.f32 %v2658_v49, %v2657_v26 }
 0x1aa   :  { %2331 = vst [vmem:[%s3955_s3 + $0x28] sm:$0xff] %v2275_v57   ;;  %v2270_v1 = vpack.c.bf16 %v3005_v27, %v3003_v34  ;;  %3016 = vtanh.f32 %v1767_v32  ;;  %v1759_v0 = vadd.f32 %v1758_v21, %v1598_v59  ;;  %v2660_v28 = vpop.f32.mrf.mxu0 }
 0x1ab   :  { %3018 = vtanh.f32 %v1756_v22  ;;  %v2740_v47 = vpop.f32.mrf.mxu1  ;;  %v3007_v46 = vpop.eup %3006  ;;  %v1630_v34 = vadd.f32 %v2659_v40, %v3974_v45 }
 0x1ac   :  { %2330 = vst [vmem:[%s3955_s3 + $0x20] sm:$0xff] %v2270_v1   ;;  %3020 = vtanh.f32 %v1759_v0  ;;  %v1780_v5 = vadd.f32 %v2740_v47, %v1619_v25  ;;  %v2661_v12 = vpop.f32.mrf.mxu0  ;;  %v3975_v25 = vld [vmem:[#allocation10_spill] sm:$0xff] }
 0x1ad   :  { %v1771_v50 = vpop.f32.mrf.mxu1  ;;  %v2662_v51 = vadd.f32 %v2661_v12, %v2660_v28 }
 0x1ae   :  { %v1772_v62 = vadd.f32 %v1771_v50, %v1611_v11  ;;  %v2663_v15 = vpop.f32.mrf.mxu0  ;;  %3022 = vtanh.f32 %v1780_v5  ;;  %v3976_v50 = vld [vmem:[#allocation12_spill] sm:$0xff] }
 0x1af   :  { %v3009_v2 = vpop.eup %3008  ;;  %v2741_v10 = vpop.f32.mrf.mxu1  ;;  %v1635_v42 = vadd.f32 %v2662_v51, %v3971_v38 }
 0x1b0   :  { %v3011_v36 = vpop.eup %3010  ;;  %v2285_v60 = vpack.c.bf16 %v3009_v2, %v3007_v46  ;;  %v1783_v39 = vadd.f32 %v2741_v10, %v1622_v58  ;;  %v2664_v8 = vpop.f32.mrf.mxu0  ;;  %v3977_v58 = vld [vmem:[#allocation11_spill] sm:$0xff] }
 0x1b1   :  { %v3013_v44 = vpop.eup %3012  ;;  %v1774_v61 = vpop.f32.mrf.mxu1  ;;  %v2665_v43 = vadd.f32 %v2664_v8, %v2663_v15 }
 0x1b2   :  { %2333 = vst [vmem:[%s3955_s3 + $0x38] sm:$0xff] %v2285_v60   ;;  %v2280_v41 = vpack.c.bf16 %v3013_v44, %v3011_v36  ;;  %3024 = vtanh.f32 %v1783_v39  ;;  %v1775_v13 = vadd.f32 %v1774_v61, %v1614_v63  ;;  %v2666_v9 = vpop.f32.mrf.mxu0 }
 0x1b3   :  { %3026 = vtanh.f32 %v1772_v62  ;;  %v2744_v6 = vpop.f32.mrf.mxu1  ;;  %v3015_v17 = vpop.eup %3014  ;;  %v1638_v20 = vadd.f32 %v2665_v43, %v3973_v29 }
 0x1b4   :  { %2332 = vst [vmem:[%s3955_s3 + $0x30] sm:$0xff] %v2280_v41   ;;  %3028 = vtanh.f32 %v1775_v13  ;;  %v1796_v37 = vadd.f32 %v2744_v6, %v1635_v42  ;;  %v2667_v7 = vpop.f32.mrf.mxu0 }
 0x1b5   :  { %v1787_v23 = vpop.f32.mrf.mxu1  ;;  %v2668_v27 = vadd.f32 %v2667_v7, %v2666_v9 }
 0x1b6   :  { %v1788_v19 = vadd.f32 %v1787_v23, %v1627_v52  ;;  %v2669_v14 = vpop.f32.mrf.mxu0  ;;  %3030 = vtanh.f32 %v1796_v37 }
 0x1b7   :  { %v3017_v48 = vpop.eup %3016  ;;  %v2745_v24 = vpop.f32.mrf.mxu1  ;;  %v1643_v47 = vadd.f32 %v2668_v27, %v3975_v25 }
 0x1b8   :  { %v3019_v53 = vpop.eup %3018  ;;  %v2295_v55 = vpack.c.bf16 %v3017_v48, %v3015_v17  ;;  %v1799_v22 = vadd.f32 %v2745_v24, %v1638_v20  ;;  %v2670_v26 = vpop.f32.mrf.mxu0 }
 0x1b9   :  { %v3021_v57 = vpop.eup %3020  ;;  %v1790_v32 = vpop.f32.mrf.mxu1  ;;  %v2671_v1 = vadd.f32 %v2670_v26, %v2669_v14 }
 0x1ba   :  { %2335 = vst [vmem:[%s3955_s3 + $0x48] sm:$0xff] %v2295_v55   ;;  %v2290_v59 = vpack.c.bf16 %v3021_v57, %v3019_v53  ;;  %3032 = vtanh.f32 %v1799_v22  ;;  %v1791_v16 = vadd.f32 %v1790_v32, %v1630_v34  ;;  %v2672_v49 = vpop.f32.mrf.mxu0 }
 0x1bb   :  { %3034 = vtanh.f32 %v1788_v19  ;;  %v2748_v21 = vpop.f32.mrf.mxu1  ;;  %v3023_v28 = vpop.eup %3022  ;;  %v1646_v2 = vadd.f32 %v2671_v1, %v3977_v58 }
 0x1bc   :  { %2334 = vst [vmem:[%s3955_s3 + $0x40] sm:$0xff] %v2290_v59   ;;  %3036 = vtanh.f32 %v1791_v16  ;;  %v2673_v4 = vpop.f32.mrf.mxu0 }
 0x1bd   :  { %v1803_v0 = vpop.f32.mrf.mxu1  ;;  %v2674_v54 = vadd.f32 %v2673_v4, %v2672_v49 }
 0x1be   :  { %v2675_v5 = vpop.f32.mrf.mxu0  ;;  %v1804_v30 = vadd.f32 %v1803_v0, %v1643_v47 }
 0x1bf   :  { %v3025_v33 = vpop.eup %3024  ;;  %v2749_v12 = vpop.f32.mrf.mxu1  ;;  %v1651_v46 = vadd.f32 %v2674_v54, %v3976_v50 }
 0x1c0   :  { %v3027_v3 = vpop.eup %3026  ;;  %v2305_v11 = vpack.c.bf16 %v3025_v33, %v3023_v28  ;;  %v2676_v62 = vpop.f32.mrf.mxu0  ;;  %3038 = vtanh.f32 %v1804_v30 }
 0x1c1   :  { %v3029_v51 = vpop.eup %3028  ;;  %v1806_v15 = vpop.f32.mrf.mxu1  ;;  %v2677_v36 = vadd.f32 %v2676_v62, %v2675_v5  ;;  %v1812_v39 = vadd.f32 %v2748_v21, %v1651_v46 }
 0x1c2   :  { %2337 = vst [vmem:[%s3955_s3 + $0x58] sm:$0xff] %v2305_v11   ;;  %v2300_v10 = vpack.c.bf16 %v3029_v51, %v3027_v3  ;;  %v1807_v60 = vadd.f32 %v1806_v15, %v1646_v2 }
 0x1c3   :  { %v1654_v56 = vadd.f32 %v2677_v36, %v3813_v18  ;;  %v3031_v63 = vpop.eup %3030 }
 0x1c4   :  { %2336 = vst [vmem:[%s3955_s3 + $0x50] sm:$0xff] %v2300_v10   ;;  %3040 = vtanh.f32 %v1807_v60 }
 0x1c5   :  { %v1815_v44 = vadd.f32 %v2749_v12, %v1654_v56  ;;  %3042 = vtanh.f32 %v1812_v39 }
 0x1c7   :  { %v3033_v31 = vpop.eup %3032  ;;  %3044 = vtanh.f32 %v1815_v44 }
 0x1c8   :  { %v3035_v8 = vpop.eup %3034  ;;  %v2315_v61 = vpack.c.bf16 %v3033_v31, %v3031_v63 }
 0x1c9   :  { %v3037_v41 = vpop.eup %3036 }
 0x1ca   :  { %2339 = vst [vmem:[%s3955_s3 + $0x68] sm:$0xff] %v2315_v61   ;;  %v2310_v43 = vpack.c.bf16 %v3037_v41, %v3035_v8 }
 0x1cc   :  { %2338 = vst [vmem:[%s3955_s3 + $0x60] sm:$0xff] %v2310_v43  }
 0x1cd   :  { %v3039_v13 = vpop.eup %3038 }
 0x1d1   :  { %v3041_v18 = vpop.eup %3040 }
 0x1d2   :  { %v2320_v9 = vpack.c.bf16 %v3041_v18, %v3039_v13  ;;  %v3043_v38 = vpop.eup %3042 }
 0x1d4   :  { %v3045_v42 = vpop.eup %3044  ;;  %2340 = vst [vmem:[%s3955_s3 + $0x70] sm:$0xff] %v2320_v9  }
 0x1d5   :  { %v2325_v6 = vpack.c.bf16 %v3045_v42, %v3043_v38 }
 0x1d7   :  { %2341 = vst [vmem:[%s3955_s3 + $0x78] sm:$0xff] %v2325_v6  }

// kernel: cvae_forward.12
= control target key start
LH: loop header
LB: loop body
LE: loop exit
PB: predicated region body
PF: predicated region fallthrough
CT: control target
= control target key end

     0   :  { %s2116_s12 = smov 0   ;;  %s2356_s0 = inlined_call_operand.vmem [shape: bf16[1280,512], index: 0, kind: input, shape index: {}]   ;;  %s2357_s1 = inlined_call_operand.vmem [shape: bf16[512,128], index: 1, kind: input, shape index: {}]   ;;  %s2358_s2 = inlined_call_operand.vmem [shape: f32[1,128], index: 2, kind: input, shape index: {}]   ;;  %s2359_s3 = inlined_call_operand.vmem [shape: bf16[1280,128], index: 3, kind: output, shape index: {}]  }
   0x1 LB: > { %s1395_s13 = sadd.s32 4294967295, %s2094_s12   ;;  %p1399_p0 = scmp.ge.s32.totalorder %s2094_s12, 1  ;;  %s2094_s12 = sphi %s2116_s12, %s13_s12  }
   0x2   : > { %p139_p1 = scmp.lt.s32.totalorder %s2094_s12, 6 }
   0x4   : > { %p140_p2 = pnand %p1399_p0, %p139_p1 }
   0x5   : > { %s1400_s21 = sshll.u32 (!%p140_p2), %s1395_s13, 5 }
   0x6   : > { %143 = sbr.rel (%p140_p2) target bundleno = 387 (0x183), region = 32  ;;  %p165_p3 = scmp.lt.s32.totalorder (!%p140_p2), %s1400_s21, 159 }
   0xb   : > { %v1896_v0 = vld [vmem:[%s2357_s1 + $0x78] sm:$0xff]   ;;  %v1900_v4 = vld [vmem:[%s2357_s1 + $0x70] sm:$0xff]   ;;  %v1904_v8 = vld [vmem:[%s2357_s1 + $0x68] sm:$0xff]   ;;  %s2361_s21 = smov (!%p165_p3, %s1400_s21), 159 }
   0xc   : > { %v1897_v1 = vld [vmem:[%s2357_s1 + $0xf8] sm:$0xff]   ;;  %1664 = vmatprep.subr.bf16.mxu0 %v1896_v0  ;;  %v1901_v5 = vld [vmem:[%s2357_s1 + $0xf0] sm:$0xff]   ;;  %v1905_v9 = vld [vmem:[%s2357_s1 + $0xe8] sm:$0xff]   ;;  %s1536_s18 = sshll.u32 %s2361_s21, 4  ;;  %s1404_s7 = sshll.u32 %s2361_s21, 2 }
   0xd   : > { %v1898_v2 = vld [vmem:[%s2357_s1 + $0x38] sm:$0xff]   ;;  %1776 = vmatprep.subr.bf16.mxu1 %v1897_v1  ;;  %v1902_v6 = vld [vmem:[%s2357_s1 + $0x30] sm:$0xff]   ;;  %v1906_v10 = vld [vmem:[%s2357_s1 + $0x28] sm:$0xff]   ;;  %s2222_s28 = scalar_lea.vmem %s2356_s0, %s1536_s18  ;;  %s2309_s10 = scalar_lea.vmem %s2359_s3, %s1404_s7 }
   0xe   : > { %v1899_v3 = vld [vmem:[%s2357_s1 + $0xb8] sm:$0xff]   ;;  %1665 = vmatpush3.bf16.msra.mxu0 %v1898_v2  ;;  %v1903_v7 = vld [vmem:[%s2357_s1 + $0xb0] sm:$0xff]   ;;  %v1907_v11 = vld [vmem:[%s2357_s1 + $0xa8] sm:$0xff]  }
   0xf   : > { %1777 = vmatpush3.bf16.msra.mxu1 %v1899_v3  ;;  %1666 = vmatprep.subr.bf16.mxu0 %v1900_v4  ;;  %v1908_v12 = vld [vmem:[%s2357_s1 + $0x60] sm:$0xff]   ;;  %v1912_v16 = vld [vmem:[%s2357_s1 + $0x58] sm:$0xff]   ;;  %v1916_v20 = vld [vmem:[%s2357_s1 + $0x50] sm:$0xff]  }
  0x10   : > { %1778 = vmatprep.subr.bf16.mxu1 %v1901_v5  ;;  %v1909_v13 = vld [vmem:[%s2357_s1 + $0xe0] sm:$0xff]   ;;  %v1913_v17 = vld [vmem:[%s2357_s1 + $0xd8] sm:$0xff]   ;;  %v1917_v21 = vld [vmem:[%s2357_s1 + $0xd0] sm:$0xff]  }
  0x11   : > { %v1910_v14 = vld [vmem:[%s2357_s1 + $0x20] sm:$0xff]   ;;  %v1914_v18 = vld [vmem:[%s2357_s1 + $0x18] sm:$0xff]   ;;  %v1918_v22 = vld [vmem:[%s2357_s1 + $0x10] sm:$0xff]  }
  0x12   : > { %1667 = vmatpush3.bf16.msra.mxu0 %v1902_v6  ;;  %v1911_v15 = vld [vmem:[%s2357_s1 + $0xa0] sm:$0xff]   ;;  %v1915_v19 = vld [vmem:[%s2357_s1 + $0x98] sm:$0xff]   ;;  %v1919_v23 = vld [vmem:[%s2357_s1 + $0x90] sm:$0xff]  }
  0x13   : > { %1779 = vmatpush3.bf16.msra.mxu1 %v1903_v7  ;;  %1668 = vmatprep.subr.bf16.mxu0 %v1904_v8  ;;  %v1920_v24 = vld [vmem:[%s2357_s1 + $0x48] sm:$0xff]   ;;  %v1924_v28 = vld [vmem:[%s2357_s1 + $0x40] sm:$0xff]  }
  0x14   : > { %1780 = vmatprep.subr.bf16.mxu1 %v1905_v9  ;;  %v1921_v25 = vld [vmem:[%s2357_s1 + $0xc8] sm:$0xff]   ;;  %v1925_v29 = vld [vmem:[%s2357_s1 + $0xc0] sm:$0xff]  }
  0x15   : > { %v1922_v26 = vld [vmem:[%s2357_s1 + $0x8] sm:$0xff]   ;;  %v1926_v30 = vld [vmem:[%s2357_s1] sm:$0xff]  }
  0x16   : > { %1669 = vmatpush3.bf16.msra.mxu0 %v1906_v10  ;;  %v1923_v27 = vld [vmem:[%s2357_s1 + $0x88] sm:$0xff]   ;;  %v1927_v31 = vld [vmem:[%s2357_s1 + $0x80] sm:$0xff]  }
  0x17   : > { %1781 = vmatpush3.bf16.msra.mxu1 %v1907_v11  ;;  %1670 = vmatprep.subr.bf16.mxu0 %v1908_v12  ;;  %v1928_v32 = vld [vmem:[%s2222_s28] ss:$16 sps:$4 sm:$0xff]   ;;  %v1930_v33 = vld [vmem:[%s2222_s28 + $0x4] ss:$16 sps:$4 sm:$0xff]   ;;  %v1931_v34 = vld [vmem:[%s2222_s28 + $0x8] ss:$16 sps:$4 sm:$0xff]  }
  0x18   : > { %1782 = vmatprep.subr.bf16.mxu1 %v1909_v13  ;;  %v1933_v35 = vld [vmem:[%s2222_s28 + $0xc] ss:$16 sps:$4 sm:$0xff]   ;;  %857 = vmatprep.mubr.bf16.mxu0 %v1930_v33  ;;  %v1934_v36 = vld [vmem:[%s2222_s28 + $0x24] ss:$16 sps:$4 sm:$0xff]   ;;  %v1938_v38 = vld [vmem:[%s2222_s28 + $0x20] ss:$16 sps:$4 sm:$0xff]  }
  0x19   : > { %1018 = vmatprep.mubr.bf16.mxu1 %v1933_v35  ;;  %v1936_v37 = vld [vmem:[%s2222_s28 + $0x2c] ss:$16 sps:$4 sm:$0xff]   ;;  %v1939_v39 = vld [vmem:[%s2222_s28 + $0x28] ss:$16 sps:$4 sm:$0xff]   ;;  %v1940_v40 = vld [vmem:[%s2222_s28 + $0x44] ss:$16 sps:$4 sm:$0xff]  }
  0x1a   : > { %1671 = vmatpush3.bf16.msra.mxu0 %v1910_v14  ;;  %v1942_v41 = vld [vmem:[%s2222_s28 + $0x4c] ss:$16 sps:$4 sm:$0xff]   ;;  %v1944_v42 = vld [vmem:[%s2222_s28 + $0x40] ss:$16 sps:$4 sm:$0xff]   ;;  %v1945_v43 = vld [vmem:[%s2222_s28 + $0x48] ss:$16 sps:$4 sm:$0xff]  }
  0x1b   : > { %1783 = vmatpush3.bf16.msra.mxu1 %v1911_v15  ;;  %1672 = vmatprep.subr.bf16.mxu0 %v1912_v16  ;;  %v1946_v44 = vld [vmem:[%s2222_s28 + $0x64] ss:$16 sps:$4 sm:$0xff]   ;;  %v1948_v45 = vld [vmem:[%s2222_s28 + $0x6c] ss:$16 sps:$4 sm:$0xff]   ;;  %v1950_v46 = vld [vmem:[%s2222_s28 + $0x60] ss:$16 sps:$4 sm:$0xff]  }
  0x1c   : > { %1784 = vmatprep.subr.bf16.mxu1 %v1913_v17  ;;  %v1951_v47 = vld [vmem:[%s2222_s28 + $0x68] ss:$16 sps:$4 sm:$0xff]   ;;  %v1952_v48 = vld [vmem:[%s2222_s28 + $0x84] ss:$16 sps:$4 sm:$0xff]   ;;  %v1954_v49 = vld [vmem:[%s2222_s28 + $0x8c] ss:$16 sps:$4 sm:$0xff]  }
  0x1d   : > { %v1956_v50 = vld [vmem:[%s2222_s28 + $0x80] ss:$16 sps:$4 sm:$0xff]   ;;  %v1957_v51 = vld [vmem:[%s2222_s28 + $0x88] ss:$16 sps:$4 sm:$0xff]   ;;  %v1958_v52 = vld [vmem:[%s2222_s28 + $0xa4] ss:$16 sps:$4 sm:$0xff]  }
  0x1e   : > { %1673 = vmatpush3.bf16.msra.mxu0 %v1914_v18  ;;  %v1960_v53 = vld [vmem:[%s2222_s28 + $0xac] ss:$16 sps:$4 sm:$0xff]   ;;  %v1962_v54 = vld [vmem:[%s2222_s28 + $0xa0] ss:$16 sps:$4 sm:$0xff]   ;;  %v1963_v55 = vld [vmem:[%s2222_s28 + $0xa8] ss:$16 sps:$4 sm:$0xff]  }
  0x1f   : > { %1785 = vmatpush3.bf16.msra.mxu1 %v1915_v19  ;;  %1674 = vmatprep.subr.bf16.mxu0 %v1916_v20  ;;  %v1964_v56 = vld [vmem:[%s2222_s28 + $0xc4] ss:$16 sps:$4 sm:$0xff]   ;;  %v1966_v57 = vld [vmem:[%s2222_s28 + $0xcc] ss:$16 sps:$4 sm:$0xff]   ;;  %v1968_v58 = vld [vmem:[%s2222_s28 + $0xc0] ss:$16 sps:$4 sm:$0xff]  }
  0x20   : > { %1786 = vmatprep.subr.bf16.mxu1 %v1917_v21  ;;  %v1969_v59 = vld [vmem:[%s2222_s28 + $0xc8] ss:$16 sps:$4 sm:$0xff]   ;;  %v1970_v60 = vld [vmem:[%s2222_s28 + $0xe4] ss:$16 sps:$4 sm:$0xff]   ;;  %v1972_v61 = vld [vmem:[%s2222_s28 + $0xec] ss:$16 sps:$4 sm:$0xff]  }
  0x21   : > { %v1974_v62 = vld [vmem:[%s2222_s28 + $0xe0] ss:$16 sps:$4 sm:$0xff]   ;;  %v1975_v63 = vld [vmem:[%s2222_s28 + $0xe8] ss:$16 sps:$4 sm:$0xff]   ;;  %v1976_v0 = vld [vmem:[%s2222_s28 + $0x104] ss:$16 sps:$4 sm:$0xff]  }
  0x22   : > { %1675 = vmatpush3.bf16.msra.mxu0 %v1918_v22  ;;  %v1978_v1 = vld [vmem:[%s2222_s28 + $0x10c] ss:$16 sps:$4 sm:$0xff]   ;;  %v1980_v2 = vld [vmem:[%s2222_s28 + $0x100] ss:$16 sps:$4 sm:$0xff]   ;;  %v1981_v3 = vld [vmem:[%s2222_s28 + $0x108] ss:$16 sps:$4 sm:$0xff]  }
  0x23   : > { %1787 = vmatpush3.bf16.msra.mxu1 %v1919_v23  ;;  %1676 = vmatprep.subr.bf16.mxu0 %v1920_v24  ;;  %v1982_v4 = vld [vmem:[%s2222_s28 + $0x124] ss:$16 sps:$4 sm:$0xff]   ;;  %v1984_v5 = vld [vmem:[%s2222_s28 + $0x12c] ss:$16 sps:$4 sm:$0xff]   ;;  %v1986_v6 = vld [vmem:[%s2222_s28 + $0x120] ss:$16 sps:$4 sm:$0xff]  }
  0x24   : > { %1788 = vmatprep.subr.bf16.mxu1 %v1921_v25  ;;  %v1987_v7 = vld [vmem:[%s2222_s28 + $0x128] ss:$16 sps:$4 sm:$0xff]   ;;  %v1988_v8 = vld [vmem:[%s2222_s28 + $0x144] ss:$16 sps:$4 sm:$0xff]   ;;  %v1990_v9 = vld [vmem:[%s2222_s28 + $0x14c] ss:$16 sps:$4 sm:$0xff]  }
  0x25   : > { %v1992_v10 = vld [vmem:[%s2222_s28 + $0x140] ss:$16 sps:$4 sm:$0xff]   ;;  %v1993_v11 = vld [vmem:[%s2222_s28 + $0x148] ss:$16 sps:$4 sm:$0xff]   ;;  %v1994_v12 = vld [vmem:[%s2222_s28 + $0x164] ss:$16 sps:$4 sm:$0xff]  }
  0x26   : > { %1677 = vmatpush3.bf16.msra.mxu0 %v1922_v26  ;;  %v1996_v13 = vld [vmem:[%s2222_s28 + $0x16c] ss:$16 sps:$4 sm:$0xff]   ;;  %v1998_v14 = vld [vmem:[%s2222_s28 + $0x160] ss:$16 sps:$4 sm:$0xff]   ;;  %v1999_v15 = vld [vmem:[%s2222_s28 + $0x168] ss:$16 sps:$4 sm:$0xff]  }
  0x27   : > { %1789 = vmatpush3.bf16.msra.mxu1 %v1923_v27  ;;  %1678 = vmatprep.subr.bf16.mxu0 %v1924_v28  ;;  %v2000_v16 = vld [vmem:[%s2222_s28 + $0x184] ss:$16 sps:$4 sm:$0xff]   ;;  %v2002_v17 = vld [vmem:[%s2222_s28 + $0x18c] ss:$16 sps:$4 sm:$0xff]   ;;  %v2004_v18 = vld [vmem:[%s2222_s28 + $0x180] ss:$16 sps:$4 sm:$0xff]  }
  0x28   : > { %1790 = vmatprep.subr.bf16.mxu1 %v1925_v29  ;;  %v2005_v19 = vld [vmem:[%s2222_s28 + $0x188] ss:$16 sps:$4 sm:$0xff]   ;;  %v2006_v20 = vld [vmem:[%s2222_s28 + $0x1a4] ss:$16 sps:$4 sm:$0xff]   ;;  %v2008_v21 = vld [vmem:[%s2222_s28 + $0x1ac] ss:$16 sps:$4 sm:$0xff]  }
  0x29   : > { %v2010_v22 = vld [vmem:[%s2222_s28 + $0x1a0] ss:$16 sps:$4 sm:$0xff]   ;;  %v2011_v23 = vld [vmem:[%s2222_s28 + $0x1a8] ss:$16 sps:$4 sm:$0xff]   ;;  %v2012_v24 = vld [vmem:[%s2222_s28 + $0x1c4] ss:$16 sps:$4 sm:$0xff]  }
  0x2a   : > { %1679 = vmatpush3.bf16.msra.mxu0 %v1926_v30  ;;  %v2014_v25 = vld [vmem:[%s2222_s28 + $0x1cc] ss:$16 sps:$4 sm:$0xff]   ;;  %v2016_v26 = vld [vmem:[%s2222_s28 + $0x1c0] ss:$16 sps:$4 sm:$0xff]   ;;  %v2017_v27 = vld [vmem:[%s2222_s28 + $0x1c8] ss:$16 sps:$4 sm:$0xff]  }
  0x2b   : > { %1791 = vmatpush3.bf16.msra.mxu1 %v1927_v31  ;;  %v2018_v28 = vld [vmem:[%s2222_s28 + $0x1e4] ss:$16 sps:$4 sm:$0xff]   ;;  %v2020_v29 = vld [vmem:[%s2222_s28 + $0x1ec] ss:$16 sps:$4 sm:$0xff]   ;;  %v2022_v30 = vld [vmem:[%s2222_s28 + $0x1e0] ss:$16 sps:$4 sm:$0xff]  }
  0x2c   : > { %v2023_v31 = vld [vmem:[%s2222_s28 + $0x1e8] ss:$16 sps:$4 sm:$0xff]  }
  0x2d   : > { %858 = vmatmul.mubr.bf16.vlgmr.msra.gmra.mxu0 %v1928_v32 }
  0x2e   : > { %1019 = vmatmul.mubr.bf16.vlgmr.msra.gmra.mxu1 %v1931_v34  ;;  %865 = vmatprep.mubr.bf16.mxu0 %v1934_v36  ;;  %v2297_v34 = vld [vmem:[%s2358_s2] ss:$0 sm:$0xff] }
  0x2f   : > { %1026 = vmatprep.mubr.bf16.mxu1 %v1936_v37 }
  0x35   : > { %866 = vmatmul.mubr.bf16.gmra.mxu0 %v1938_v38 }
  0x36   : > { %1027 = vmatmul.mubr.bf16.gmra.mxu1 %v1939_v39  ;;  %873 = vmatprep.mubr.bf16.mxu0 %v1940_v40 }
  0x37   : > { %1034 = vmatprep.mubr.bf16.mxu1 %v1942_v41 }
  0x3d   : > { %874 = vmatmul.mubr.bf16.gmra.mxu0 %v1944_v42 }
  0x3e   : > { %1035 = vmatmul.mubr.bf16.gmra.mxu1 %v1945_v43  ;;  %881 = vmatprep.mubr.bf16.mxu0 %v1946_v44 }
  0x3f   : > { %1042 = vmatprep.mubr.bf16.mxu1 %v1948_v45 }
  0x45   : > { %882 = vmatmul.mubr.bf16.gmra.mxu0 %v1950_v46 }
  0x46   : > { %1043 = vmatmul.mubr.bf16.gmra.mxu1 %v1951_v47  ;;  %889 = vmatprep.mubr.bf16.mxu0 %v1952_v48 }
  0x47   : > { %1050 = vmatprep.mubr.bf16.mxu1 %v1954_v49 }
  0x4d   : > { %890 = vmatmul.mubr.bf16.gmra.mxu0 %v1956_v50 }
  0x4e   : > { %1051 = vmatmul.mubr.bf16.gmra.mxu1 %v1957_v51  ;;  %897 = vmatprep.mubr.bf16.mxu0 %v1958_v52 }
  0x4f   : > { %1058 = vmatprep.mubr.bf16.mxu1 %v1960_v53 }
  0x55   : > { %898 = vmatmul.mubr.bf16.gmra.mxu0 %v1962_v54 }
  0x56   : > { %1059 = vmatmul.mubr.bf16.gmra.mxu1 %v1963_v55  ;;  %905 = vmatprep.mubr.bf16.mxu0 %v1964_v56 }
  0x57   : > { %1066 = vmatprep.mubr.bf16.mxu1 %v1966_v57 }
  0x5d   : > { %906 = vmatmul.mubr.bf16.gmra.mxu0 %v1968_v58 }
  0x5e   : > { %1067 = vmatmul.mubr.bf16.gmra.mxu1 %v1969_v59  ;;  %913 = vmatprep.mubr.bf16.mxu0 %v1970_v60 }
  0x5f   : > { %1074 = vmatprep.mubr.bf16.mxu1 %v1972_v61 }
  0x65   : > { %914 = vmatmul.mubr.bf16.gmra.mxu0 %v1974_v62 }
  0x66   : > { %1075 = vmatmul.mubr.bf16.gmra.mxu1 %v1975_v63  ;;  %921 = vmatprep.mubr.bf16.mxu0 %v1976_v0 }
  0x67   : > { %1082 = vmatprep.mubr.bf16.mxu1 %v1978_v1 }
  0x6d   : > { %922 = vmatmul.mubr.bf16.gmra.mxu0 %v1980_v2 }
  0x6e   : > { %1083 = vmatmul.mubr.bf16.gmra.mxu1 %v1981_v3  ;;  %929 = vmatprep.mubr.bf16.mxu0 %v1982_v4 }
  0x6f   : > { %1090 = vmatprep.mubr.bf16.mxu1 %v1984_v5 }
  0x75   : > { %930 = vmatmul.mubr.bf16.gmra.mxu0 %v1986_v6 }
  0x76   : > { %1091 = vmatmul.mubr.bf16.gmra.mxu1 %v1987_v7  ;;  %937 = vmatprep.mubr.bf16.mxu0 %v1988_v8 }
  0x77   : > { %1098 = vmatprep.mubr.bf16.mxu1 %v1990_v9 }
  0x7d   : > { %938 = vmatmul.mubr.bf16.gmra.mxu0 %v1992_v10 }
  0x7e   : > { %1099 = vmatmul.mubr.bf16.gmra.mxu1 %v1993_v11  ;;  %945 = vmatprep.mubr.bf16.mxu0 %v1994_v12 }
  0x7f   : > { %1106 = vmatprep.mubr.bf16.mxu1 %v1996_v13 }
  0x85   : > { %946 = vmatmul.mubr.bf16.gmra.mxu0 %v1998_v14 }
  0x86   : > { %1107 = vmatmul.mubr.bf16.gmra.mxu1 %v1999_v15  ;;  %953 = vmatprep.mubr.bf16.mxu0 %v2000_v16 }
  0x87   : > { %1114 = vmatprep.mubr.bf16.mxu1 %v2002_v17 }
  0x8d   : > { %954 = vmatmul.mubr.bf16.gmra.mxu0 %v2004_v18 }
  0x8e   : > { %1115 = vmatmul.mubr.bf16.gmra.mxu1 %v2005_v19  ;;  %961 = vmatprep.mubr.bf16.mxu0 %v2006_v20 }
  0x8f   : > { %1122 = vmatprep.mubr.bf16.mxu1 %v2008_v21 }
  0x95   : > { %962 = vmatmul.mubr.bf16.gmra.mxu0 %v2010_v22 }
  0x96   : > { %1123 = vmatmul.mubr.bf16.gmra.mxu1 %v2011_v23  ;;  %969 = vmatprep.mubr.bf16.mxu0 %v2012_v24 }
  0x97   : > { %1130 = vmatprep.mubr.bf16.mxu1 %v2014_v25 }
  0x9d   : > { %970 = vmatmul.mubr.bf16.gmra.mxu0 %v2016_v26 }
  0x9e   : > { %1131 = vmatmul.mubr.bf16.gmra.mxu1 %v2017_v27  ;;  %977 = vmatprep.mubr.bf16.mxu0 %v2018_v28 }
  0x9f   : > { %1138 = vmatprep.mubr.bf16.mxu1 %v2020_v29 }
  0xa5   : > { %978 = vmatmul.mubr.bf16.gmra.mxu0 %v2022_v30 }
  0xa6   : > { %1139 = vmatmul.mubr.bf16.gmra.mxu1 %v2023_v31 }
  0xed   : > { %v1680_v32 = vpop.f32.mrf.mxu0 }
  0xee   : > { %v1792_v33 = vpop.f32.mrf.mxu1 }
  0xef   : > { %v1681_v35 = vpop.f32.mrf.mxu0 }
  0xf0   : > { %v1682_v36 = vadd.f32 %v1681_v35, %v1680_v32  ;;  %v1793_v37 = vpop.f32.mrf.mxu1 }
  0xf1   : > { %v1683_v38 = vpop.f32.mrf.mxu0  ;;  %v1794_v41 = vadd.f32 %v1793_v37, %v1792_v33 }
  0xf2   : > { %v860_v39 = vadd.f32 %v1682_v36, %v2297_v34  ;;  %v1795_v40 = vpop.f32.mrf.mxu1 }
  0xf3   : > { %v1684_v42 = vpop.f32.mrf.mxu0 }
  0xf4   : > { %v1685_v43 = vadd.f32 %v1684_v42, %v1683_v38  ;;  %v1796_v44 = vpop.f32.mrf.mxu1  ;;  %v1021_v45 = vadd.f32 %v1794_v41, %v860_v39 }
  0xf5   : > { %v1686_v46 = vpop.f32.mrf.mxu0  ;;  %v1797_v48 = vadd.f32 %v1796_v44, %v1795_v40 }
  0xf6   : > { %v863_v47 = vadd.f32 %v1685_v43, %v2297_v34  ;;  %v1798_v49 = vpop.f32.mrf.mxu1  ;;  %2024 = vtanh.f32 %v1021_v45 }
  0xf7   : > { %v1687_v50 = vpop.f32.mrf.mxu0 }
  0xf8   : > { %v1024_v51 = vadd.f32 %v1797_v48, %v863_v47  ;;  %v1688_v52 = vadd.f32 %v1687_v50, %v1686_v46  ;;  %v1799_v53 = vpop.f32.mrf.mxu1 }
  0xf9   : > { %v1689_v54 = vpop.f32.mrf.mxu0  ;;  %v1800_v57 = vadd.f32 %v1799_v53, %v1798_v49 }
  0xfa   : > { %2026 = vtanh.f32 %v1024_v51  ;;  %v868_v55 = vadd.f32 %v1688_v52, %v2297_v34  ;;  %v1801_v56 = vpop.f32.mrf.mxu1 }
  0xfb   : > { %v1690_v58 = vpop.f32.mrf.mxu0 }
  0xfc   : > { %v1691_v59 = vadd.f32 %v1690_v58, %v1689_v54  ;;  %v1802_v60 = vpop.f32.mrf.mxu1  ;;  %v1029_v61 = vadd.f32 %v1800_v57, %v868_v55 }
  0xfd   : > { %v1692_v62 = vpop.f32.mrf.mxu0  ;;  %v1803_v0 = vadd.f32 %v1802_v60, %v1801_v56 }
  0xfe   : > { %v871_v63 = vadd.f32 %v1691_v59, %v2297_v34  ;;  %v1804_v1 = vpop.f32.mrf.mxu1  ;;  %2028 = vtanh.f32 %v1029_v61 }
  0xff   : > { %v1693_v2 = vpop.f32.mrf.mxu0 }
 0x100   : > { %v1032_v3 = vadd.f32 %v1803_v0, %v871_v63  ;;  %v1694_v4 = vadd.f32 %v1693_v2, %v1692_v62  ;;  %v1805_v5 = vpop.f32.mrf.mxu1 }
 0x101   : > { %v1695_v6 = vpop.f32.mrf.mxu0  ;;  %v1806_v9 = vadd.f32 %v1805_v5, %v1804_v1 }
 0x102   : > { %2030 = vtanh.f32 %v1032_v3  ;;  %v876_v7 = vadd.f32 %v1694_v4, %v2297_v34  ;;  %v1807_v8 = vpop.f32.mrf.mxu1 }
 0x103   : > { %v1696_v10 = vpop.f32.mrf.mxu0  ;;  %v2025_v15 = vpop.eup %2024 }
 0x104   : > { %v1697_v11 = vadd.f32 %v1696_v10, %v1695_v6  ;;  %v1808_v12 = vpop.f32.mrf.mxu1  ;;  %v1037_v13 = vadd.f32 %v1806_v9, %v876_v7 }
 0x105   : > { %v1698_v14 = vpop.f32.mrf.mxu0  ;;  %v1809_v17 = vadd.f32 %v1808_v12, %v1807_v8 }
 0x106   : > { %v879_v16 = vadd.f32 %v1697_v11, %v2297_v34  ;;  %v1810_v18 = vpop.f32.mrf.mxu1  ;;  %2032 = vtanh.f32 %v1037_v13 }
 0x107   : > { %v2027_v19 = vpop.eup %2026  ;;  %v1699_v20 = vpop.f32.mrf.mxu0 }
 0x108   : > { %v1572_v21 = vpack.c.bf16 %v2027_v19, %v2025_v15  ;;  %v1040_v22 = vadd.f32 %v1809_v17, %v879_v16  ;;  %v1700_v23 = vadd.f32 %v1699_v20, %v1698_v14  ;;  %v1811_v24 = vpop.f32.mrf.mxu1 }
 0x109   : > { %v1701_v25 = vpop.f32.mrf.mxu0  ;;  %v1812_v28 = vadd.f32 %v1811_v24, %v1810_v18 }
 0x10a   : > { %1573 = vst [vmem:[%s2309_s10] sm:$0xff] %v1572_v21   ;;  %2034 = vtanh.f32 %v1040_v22  ;;  %v884_v26 = vadd.f32 %v1700_v23, %v2297_v34  ;;  %v1813_v27 = vpop.f32.mrf.mxu1 }
 0x10b   : > { %v1702_v29 = vpop.f32.mrf.mxu0  ;;  %v2029_v35 = vpop.eup %2028 }
 0x10c   : > { %v1703_v30 = vadd.f32 %v1702_v29, %v1701_v25  ;;  %v1814_v31 = vpop.f32.mrf.mxu1  ;;  %v1045_v32 = vadd.f32 %v1812_v28, %v884_v26 }
 0x10d   : > { %v1704_v33 = vpop.f32.mrf.mxu0  ;;  %v1815_v37 = vadd.f32 %v1814_v31, %v1813_v27 }
 0x10e   : > { %v887_v36 = vadd.f32 %v1703_v30, %v2297_v34  ;;  %v1816_v38 = vpop.f32.mrf.mxu1  ;;  %2036 = vtanh.f32 %v1045_v32 }
 0x10f   : > { %v2031_v39 = vpop.eup %2030  ;;  %v1705_v40 = vpop.f32.mrf.mxu0 }
 0x110   : > { %v1577_v41 = vpack.c.bf16 %v2031_v39, %v2029_v35  ;;  %v1048_v42 = vadd.f32 %v1815_v37, %v887_v36  ;;  %v1706_v43 = vadd.f32 %v1705_v40, %v1704_v33  ;;  %v1817_v44 = vpop.f32.mrf.mxu1 }
 0x111   : > { %v1707_v45 = vpop.f32.mrf.mxu0  ;;  %v1818_v48 = vadd.f32 %v1817_v44, %v1816_v38 }
 0x112   : > { %1649 = vst [vmem:[%s2309_s10 + $0x8] sm:$0xff] %v1577_v41   ;;  %2038 = vtanh.f32 %v1048_v42  ;;  %v892_v46 = vadd.f32 %v1706_v43, %v2297_v34  ;;  %v1819_v47 = vpop.f32.mrf.mxu1 }
 0x113   : > { %v1708_v49 = vpop.f32.mrf.mxu0  ;;  %v2033_v54 = vpop.eup %2032 }
 0x114   : > { %v1709_v50 = vadd.f32 %v1708_v49, %v1707_v45  ;;  %v1820_v51 = vpop.f32.mrf.mxu1  ;;  %v1053_v52 = vadd.f32 %v1818_v48, %v892_v46 }
 0x115   : > { %v1710_v53 = vpop.f32.mrf.mxu0  ;;  %v1821_v56 = vadd.f32 %v1820_v51, %v1819_v47 }
 0x116   : > { %v895_v55 = vadd.f32 %v1709_v50, %v2297_v34  ;;  %v1822_v57 = vpop.f32.mrf.mxu1  ;;  %2040 = vtanh.f32 %v1053_v52 }
 0x117   : > { %v2035_v58 = vpop.eup %2034  ;;  %v1711_v59 = vpop.f32.mrf.mxu0 }
 0x118   : > { %v1582_v60 = vpack.c.bf16 %v2035_v58, %v2033_v54  ;;  %v1056_v61 = vadd.f32 %v1821_v56, %v895_v55  ;;  %v1712_v62 = vadd.f32 %v1711_v59, %v1710_v53  ;;  %v1823_v63 = vpop.f32.mrf.mxu1 }
 0x119   : > { %v1713_v0 = vpop.f32.mrf.mxu0  ;;  %v1824_v3 = vadd.f32 %v1823_v63, %v1822_v57 }
 0x11a   : > { %1650 = vst [vmem:[%s2309_s10 + $0x10] sm:$0xff] %v1582_v60   ;;  %2042 = vtanh.f32 %v1056_v61  ;;  %v900_v1 = vadd.f32 %v1712_v62, %v2297_v34  ;;  %v1825_v2 = vpop.f32.mrf.mxu1 }
 0x11b   : > { %v1714_v4 = vpop.f32.mrf.mxu0  ;;  %v2037_v9 = vpop.eup %2036 }
 0x11c   : > { %v1715_v5 = vadd.f32 %v1714_v4, %v1713_v0  ;;  %v1826_v6 = vpop.f32.mrf.mxu1  ;;  %v1061_v7 = vadd.f32 %v1824_v3, %v900_v1 }
 0x11d   : > { %v1716_v8 = vpop.f32.mrf.mxu0  ;;  %v1827_v11 = vadd.f32 %v1826_v6, %v1825_v2 }
 0x11e   : > { %v903_v10 = vadd.f32 %v1715_v5, %v2297_v34  ;;  %v1828_v12 = vpop.f32.mrf.mxu1  ;;  %2044 = vtanh.f32 %v1061_v7 }
 0x11f   : > { %v2039_v13 = vpop.eup %2038  ;;  %v1717_v14 = vpop.f32.mrf.mxu0 }
 0x120   : > { %v1587_v15 = vpack.c.bf16 %v2039_v13, %v2037_v9  ;;  %v1064_v16 = vadd.f32 %v1827_v11, %v903_v10  ;;  %v1718_v17 = vadd.f32 %v1717_v14, %v1716_v8  ;;  %v1829_v18 = vpop.f32.mrf.mxu1 }
 0x121   : > { %v1719_v19 = vpop.f32.mrf.mxu0  ;;  %v1830_v22 = vadd.f32 %v1829_v18, %v1828_v12 }
 0x122   : > { %1651 = vst [vmem:[%s2309_s10 + $0x18] sm:$0xff] %v1587_v15   ;;  %2046 = vtanh.f32 %v1064_v16  ;;  %v908_v20 = vadd.f32 %v1718_v17, %v2297_v34  ;;  %v1831_v21 = vpop.f32.mrf.mxu1 }
 0x123   : > { %v1720_v23 = vpop.f32.mrf.mxu0  ;;  %v2041_v28 = vpop.eup %2040 }
 0x124   : > { %v1721_v24 = vadd.f32 %v1720_v23, %v1719_v19  ;;  %v1832_v25 = vpop.f32.mrf.mxu1  ;;  %v1069_v26 = vadd.f32 %v1830_v22, %v908_v20 }
 0x125   : > { %v1722_v27 = vpop.f32.mrf.mxu0  ;;  %v1833_v30 = vadd.f32 %v1832_v25, %v1831_v21 }
 0x126   : > { %v911_v29 = vadd.f32 %v1721_v24, %v2297_v34  ;;  %v1834_v31 = vpop.f32.mrf.mxu1  ;;  %2048 = vtanh.f32 %v1069_v26 }
 0x127   : > { %v2043_v32 = vpop.eup %2042  ;;  %v1723_v33 = vpop.f32.mrf.mxu0 }
 0x128   : > { %v1592_v35 = vpack.c.bf16 %v2043_v32, %v2041_v28  ;;  %v1072_v36 = vadd.f32 %v1833_v30, %v911_v29  ;;  %v1724_v37 = vadd.f32 %v1723_v33, %v1722_v27  ;;  %v1835_v38 = vpop.f32.mrf.mxu1 }
 0x129   : > { %v1725_v39 = vpop.f32.mrf.mxu0  ;;  %v1836_v42 = vadd.f32 %v1835_v38, %v1834_v31 }
 0x12a   : > { %1652 = vst [vmem:[%s2309_s10 + $0x20] sm:$0xff] %v1592_v35   ;;  %2050 = vtanh.f32 %v1072_v36  ;;  %v916_v40 = vadd.f32 %v1724_v37, %v2297_v34  ;;  %v1837_v41 = vpop.f32.mrf.mxu1 }
 0x12b   : > { %v1726_v43 = vpop.f32.mrf.mxu0  ;;  %v2045_v48 = vpop.eup %2044 }
 0x12c   : > { %v1727_v44 = vadd.f32 %v1726_v43, %v1725_v39  ;;  %v1838_v45 = vpop.f32.mrf.mxu1  ;;  %v1077_v46 = vadd.f32 %v1836_v42, %v916_v40 }
 0x12d   : > { %v1728_v47 = vpop.f32.mrf.mxu0  ;;  %v1839_v50 = vadd.f32 %v1838_v45, %v1837_v41 }
 0x12e   : > { %v919_v49 = vadd.f32 %v1727_v44, %v2297_v34  ;;  %v1840_v51 = vpop.f32.mrf.mxu1  ;;  %2052 = vtanh.f32 %v1077_v46 }
 0x12f   : > { %v2047_v52 = vpop.eup %2046  ;;  %v1729_v53 = vpop.f32.mrf.mxu0 }
 0x130   : > { %v1597_v54 = vpack.c.bf16 %v2047_v52, %v2045_v48  ;;  %v1080_v55 = vadd.f32 %v1839_v50, %v919_v49  ;;  %v1730_v56 = vadd.f32 %v1729_v53, %v1728_v47  ;;  %v1841_v57 = vpop.f32.mrf.mxu1 }
 0x131   : > { %v1731_v58 = vpop.f32.mrf.mxu0  ;;  %v1842_v61 = vadd.f32 %v1841_v57, %v1840_v51 }
 0x132   : > { %1653 = vst [vmem:[%s2309_s10 + $0x28] sm:$0xff] %v1597_v54   ;;  %2054 = vtanh.f32 %v1080_v55  ;;  %v924_v59 = vadd.f32 %v1730_v56, %v2297_v34  ;;  %v1843_v60 = vpop.f32.mrf.mxu1 }
 0x133   : > { %v1732_v62 = vpop.f32.mrf.mxu0  ;;  %v2049_v3 = vpop.eup %2048 }
 0x134   : > { %v1733_v63 = vadd.f32 %v1732_v62, %v1731_v58  ;;  %v1844_v0 = vpop.f32.mrf.mxu1  ;;  %v1085_v1 = vadd.f32 %v1842_v61, %v924_v59 }
 0x135   : > { %v1734_v2 = vpop.f32.mrf.mxu0  ;;  %v1845_v5 = vadd.f32 %v1844_v0, %v1843_v60 }
 0x136   : > { %v927_v4 = vadd.f32 %v1733_v63, %v2297_v34  ;;  %v1846_v6 = vpop.f32.mrf.mxu1  ;;  %2056 = vtanh.f32 %v1085_v1 }
 0x137   : > { %v2051_v7 = vpop.eup %2050  ;;  %v1735_v8 = vpop.f32.mrf.mxu0 }
 0x138   : > { %v1602_v9 = vpack.c.bf16 %v2051_v7, %v2049_v3  ;;  %v1088_v10 = vadd.f32 %v1845_v5, %v927_v4  ;;  %v1736_v11 = vadd.f32 %v1735_v8, %v1734_v2  ;;  %v1847_v12 = vpop.f32.mrf.mxu1 }
 0x139   : > { %v1737_v13 = vpop.f32.mrf.mxu0  ;;  %v1848_v16 = vadd.f32 %v1847_v12, %v1846_v6 }
 0x13a   : > { %1654 = vst [vmem:[%s2309_s10 + $0x30] sm:$0xff] %v1602_v9   ;;  %2058 = vtanh.f32 %v1088_v10  ;;  %v932_v14 = vadd.f32 %v1736_v11, %v2297_v34  ;;  %v1849_v15 = vpop.f32.mrf.mxu1 }
 0x13b   : > { %v1738_v17 = vpop.f32.mrf.mxu0  ;;  %v2053_v22 = vpop.eup %2052 }
 0x13c   : > { %v1739_v18 = vadd.f32 %v1738_v17, %v1737_v13  ;;  %v1850_v19 = vpop.f32.mrf.mxu1  ;;  %v1093_v20 = vadd.f32 %v1848_v16, %v932_v14 }
 0x13d   : > { %v1740_v21 = vpop.f32.mrf.mxu0  ;;  %v1851_v24 = vadd.f32 %v1850_v19, %v1849_v15 }
 0x13e   : > { %v935_v23 = vadd.f32 %v1739_v18, %v2297_v34  ;;  %v1852_v25 = vpop.f32.mrf.mxu1  ;;  %2060 = vtanh.f32 %v1093_v20 }
 0x13f   : > { %v2055_v26 = vpop.eup %2054  ;;  %v1741_v27 = vpop.f32.mrf.mxu0 }
 0x140   : > { %v1607_v28 = vpack.c.bf16 %v2055_v26, %v2053_v22  ;;  %v1096_v29 = vadd.f32 %v1851_v24, %v935_v23  ;;  %v1742_v30 = vadd.f32 %v1741_v27, %v1740_v21  ;;  %v1853_v31 = vpop.f32.mrf.mxu1 }
 0x141   : > { %v1743_v32 = vpop.f32.mrf.mxu0  ;;  %v1854_v36 = vadd.f32 %v1853_v31, %v1852_v25 }
 0x142   : > { %1655 = vst [vmem:[%s2309_s10 + $0x38] sm:$0xff] %v1607_v28   ;;  %2062 = vtanh.f32 %v1096_v29  ;;  %v940_v33 = vadd.f32 %v1742_v30, %v2297_v34  ;;  %v1855_v35 = vpop.f32.mrf.mxu1 }
 0x143   : > { %v1744_v37 = vpop.f32.mrf.mxu0  ;;  %v2057_v42 = vpop.eup %2056 }
 0x144   : > { %v1745_v38 = vadd.f32 %v1744_v37, %v1743_v32  ;;  %v1856_v39 = vpop.f32.mrf.mxu1  ;;  %v1101_v40 = vadd.f32 %v1854_v36, %v940_v33 }
 0x145   : > { %v1746_v41 = vpop.f32.mrf.mxu0  ;;  %v1857_v44 = vadd.f32 %v1856_v39, %v1855_v35 }
 0x146   : > { %v943_v43 = vadd.f32 %v1745_v38, %v2297_v34  ;;  %v1858_v45 = vpop.f32.mrf.mxu1  ;;  %2064 = vtanh.f32 %v1101_v40 }
 0x147   : > { %v2059_v46 = vpop.eup %2058  ;;  %v1747_v47 = vpop.f32.mrf.mxu0 }
 0x148   : > { %v1612_v48 = vpack.c.bf16 %v2059_v46, %v2057_v42  ;;  %v1104_v49 = vadd.f32 %v1857_v44, %v943_v43  ;;  %v1748_v50 = vadd.f32 %v1747_v47, %v1746_v41  ;;  %v1859_v51 = vpop.f32.mrf.mxu1 }
 0x149   : > { %v1749_v52 = vpop.f32.mrf.mxu0  ;;  %v1860_v55 = vadd.f32 %v1859_v51, %v1858_v45 }
 0x14a   : > { %1656 = vst [vmem:[%s2309_s10 + $0x40] sm:$0xff] %v1612_v48   ;;  %2066 = vtanh.f32 %v1104_v49  ;;  %v948_v53 = vadd.f32 %v1748_v50, %v2297_v34  ;;  %v1861_v54 = vpop.f32.mrf.mxu1 }
 0x14b   : > { %v1750_v56 = vpop.f32.mrf.mxu0  ;;  %v2061_v61 = vpop.eup %2060 }
 0x14c   : > { %v1751_v57 = vadd.f32 %v1750_v56, %v1749_v52  ;;  %v1862_v58 = vpop.f32.mrf.mxu1  ;;  %v1109_v59 = vadd.f32 %v1860_v55, %v948_v53 }
 0x14d   : > { %v1752_v60 = vpop.f32.mrf.mxu0  ;;  %v1863_v63 = vadd.f32 %v1862_v58, %v1861_v54 }
 0x14e   : > { %v951_v62 = vadd.f32 %v1751_v57, %v2297_v34  ;;  %v1864_v0 = vpop.f32.mrf.mxu1  ;;  %2068 = vtanh.f32 %v1109_v59 }
 0x14f   : > { %v2063_v1 = vpop.eup %2062  ;;  %v1753_v2 = vpop.f32.mrf.mxu0 }
 0x150   : > { %v1617_v3 = vpack.c.bf16 %v2063_v1, %v2061_v61  ;;  %v1112_v4 = vadd.f32 %v1863_v63, %v951_v62  ;;  %v1754_v5 = vadd.f32 %v1753_v2, %v1752_v60  ;;  %v1865_v6 = vpop.f32.mrf.mxu1 }
 0x151   : > { %v1755_v7 = vpop.f32.mrf.mxu0  ;;  %v1866_v10 = vadd.f32 %v1865_v6, %v1864_v0 }
 0x152   : > { %1657 = vst [vmem:[%s2309_s10 + $0x48] sm:$0xff] %v1617_v3   ;;  %2070 = vtanh.f32 %v1112_v4  ;;  %v956_v8 = vadd.f32 %v1754_v5, %v2297_v34  ;;  %v1867_v9 = vpop.f32.mrf.mxu1 }
 0x153   : > { %v1756_v11 = vpop.f32.mrf.mxu0  ;;  %v2065_v16 = vpop.eup %2064 }
 0x154   : > { %v1757_v12 = vadd.f32 %v1756_v11, %v1755_v7  ;;  %v1868_v13 = vpop.f32.mrf.mxu1  ;;  %v1117_v14 = vadd.f32 %v1866_v10, %v956_v8 }
 0x155   : > { %v1758_v15 = vpop.f32.mrf.mxu0  ;;  %v1869_v18 = vadd.f32 %v1868_v13, %v1867_v9 }
 0x156   : > { %v959_v17 = vadd.f32 %v1757_v12, %v2297_v34  ;;  %v1870_v19 = vpop.f32.mrf.mxu1  ;;  %2072 = vtanh.f32 %v1117_v14 }
 0x157   : > { %v2067_v20 = vpop.eup %2066  ;;  %v1759_v21 = vpop.f32.mrf.mxu0 }
 0x158   : > { %v1622_v22 = vpack.c.bf16 %v2067_v20, %v2065_v16  ;;  %v1120_v23 = vadd.f32 %v1869_v18, %v959_v17  ;;  %v1760_v24 = vadd.f32 %v1759_v21, %v1758_v15  ;;  %v1871_v25 = vpop.f32.mrf.mxu1 }
 0x159   : > { %v1761_v26 = vpop.f32.mrf.mxu0  ;;  %v1872_v29 = vadd.f32 %v1871_v25, %v1870_v19 }
 0x15a   : > { %1658 = vst [vmem:[%s2309_s10 + $0x50] sm:$0xff] %v1622_v22   ;;  %2074 = vtanh.f32 %v1120_v23  ;;  %v964_v27 = vadd.f32 %v1760_v24, %v2297_v34  ;;  %v1873_v28 = vpop.f32.mrf.mxu1 }
 0x15b   : > { %v1762_v30 = vpop.f32.mrf.mxu0  ;;  %v2069_v36 = vpop.eup %2068 }
 0x15c   : > { %v1763_v31 = vadd.f32 %v1762_v30, %v1761_v26  ;;  %v1874_v32 = vpop.f32.mrf.mxu1  ;;  %v1125_v33 = vadd.f32 %v1872_v29, %v964_v27 }
 0x15d   : > { %v1764_v35 = vpop.f32.mrf.mxu0  ;;  %v1875_v38 = vadd.f32 %v1874_v32, %v1873_v28 }
 0x15e   : > { %v967_v37 = vadd.f32 %v1763_v31, %v2297_v34  ;;  %v1876_v39 = vpop.f32.mrf.mxu1  ;;  %2076 = vtanh.f32 %v1125_v33 }
 0x15f   : > { %v2071_v40 = vpop.eup %2070  ;;  %v1765_v41 = vpop.f32.mrf.mxu0 }
 0x160   : > { %v1627_v42 = vpack.c.bf16 %v2071_v40, %v2069_v36  ;;  %v1128_v43 = vadd.f32 %v1875_v38, %v967_v37  ;;  %v1766_v44 = vadd.f32 %v1765_v41, %v1764_v35  ;;  %v1877_v45 = vpop.f32.mrf.mxu1 }
 0x161   : > { %v1767_v46 = vpop.f32.mrf.mxu0  ;;  %v1878_v49 = vadd.f32 %v1877_v45, %v1876_v39 }
 0x162   : > { %1659 = vst [vmem:[%s2309_s10 + $0x58] sm:$0xff] %v1627_v42   ;;  %2078 = vtanh.f32 %v1128_v43  ;;  %v972_v47 = vadd.f32 %v1766_v44, %v2297_v34  ;;  %v1879_v48 = vpop.f32.mrf.mxu1 }
 0x163   : > { %v1768_v50 = vpop.f32.mrf.mxu0  ;;  %v2073_v55 = vpop.eup %2072 }
 0x164   : > { %v1769_v51 = vadd.f32 %v1768_v50, %v1767_v46  ;;  %v1880_v52 = vpop.f32.mrf.mxu1  ;;  %v1133_v53 = vadd.f32 %v1878_v49, %v972_v47 }
 0x165   : > { %v1770_v54 = vpop.f32.mrf.mxu0  ;;  %v1881_v57 = vadd.f32 %v1880_v52, %v1879_v48 }
 0x166   : > { %v975_v56 = vadd.f32 %v1769_v51, %v2297_v34  ;;  %v1882_v58 = vpop.f32.mrf.mxu1  ;;  %2080 = vtanh.f32 %v1133_v53 }
 0x167   : > { %v2075_v59 = vpop.eup %2074  ;;  %v1771_v60 = vpop.f32.mrf.mxu0 }
 0x168   : > { %v1632_v61 = vpack.c.bf16 %v2075_v59, %v2073_v55  ;;  %v1136_v62 = vadd.f32 %v1881_v57, %v975_v56  ;;  %v1772_v63 = vadd.f32 %v1771_v60, %v1770_v54  ;;  %v1883_v0 = vpop.f32.mrf.mxu1 }
 0x169   : > { %v1773_v1 = vpop.f32.mrf.mxu0  ;;  %v1884_v4 = vadd.f32 %v1883_v0, %v1882_v58 }
 0x16a   : > { %1660 = vst [vmem:[%s2309_s10 + $0x60] sm:$0xff] %v1632_v61   ;;  %2082 = vtanh.f32 %v1136_v62  ;;  %v980_v2 = vadd.f32 %v1772_v63, %v2297_v34  ;;  %v1885_v3 = vpop.f32.mrf.mxu1 }
 0x16b   : > { %v1774_v5 = vpop.f32.mrf.mxu0  ;;  %v2077_v9 = vpop.eup %2076 }
 0x16c   : > { %v1775_v6 = vadd.f32 %v1774_v5, %v1773_v1  ;;  %v1886_v7 = vpop.f32.mrf.mxu1  ;;  %v1141_v8 = vadd.f32 %v1884_v4, %v980_v2 }
 0x16d   : > { %v1887_v11 = vadd.f32 %v1886_v7, %v1885_v3 }
 0x16e   : > { %v983_v10 = vadd.f32 %v1775_v6, %v2297_v34  ;;  %2084 = vtanh.f32 %v1141_v8 }
 0x16f   : > { %v2079_v12 = vpop.eup %2078 }
 0x170   : > { %v1637_v13 = vpack.c.bf16 %v2079_v12, %v2077_v9  ;;  %v1144_v14 = vadd.f32 %v1887_v11, %v983_v10 }
 0x172   : > { %1661 = vst [vmem:[%s2309_s10 + $0x68] sm:$0xff] %v1637_v13   ;;  %2086 = vtanh.f32 %v1144_v14 }
 0x173   : > { %v2081_v15 = vpop.eup %2080 }
 0x177   : > { %v2083_v16 = vpop.eup %2082 }
 0x178   : > { %v1642_v17 = vpack.c.bf16 %v2083_v16, %v2081_v15 }
 0x17a   : > { %1662 = vst [vmem:[%s2309_s10 + $0x70] sm:$0xff] %v1642_v17  }
 0x17b   : > { %v2085_v18 = vpop.eup %2084 }
 0x17f   : > { %v2087_v19 = vpop.eup %2086 }
 0x180   : > { %v1647_v20 = vpack.c.bf16 %v2087_v19, %v2085_v18 }
 0x182   : > { %1663 = vst [vmem:[%s2309_s10 + $0x78] sm:$0xff] %v1647_v20  }
 0x183 PF: > { %s13_s12 = sadd.s32 1, %s2094_s12  }
 0x184   : > { %p10_p4 = scmp.ge.s32.totalorder %s13_s12, 7  }
 0x186   :  { %12 = sbr.rel (!%p10_p4) target bundleno = 1 (0x1), region = 62 }

// kernel: cvae_forward.13
= control target key start
LH: loop header
LB: loop body
LE: loop exit
PB: predicated region body
PF: predicated region fallthrough
CT: control target
= control target key end

     0   :  { %s1159_s12 = smov 0   ;;  %s1293_s0 = inlined_call_operand.vmem [shape: bf16[1792,128], index: 0, kind: input, shape index: {}]   ;;  %s1294_s1 = inlined_call_operand.vmem [shape: bf16[128,128], index: 1, kind: input, shape index: {}]   ;;  %s1295_s2 = inlined_call_operand.vmem [shape: f32[1,128], index: 2, kind: input, shape index: {}]   ;;  %s1296_s3 = inlined_call_operand.vmem [shape: f32[1792,128], index: 3, kind: output, shape index: {}]  }
   0x1 LB: > { %s815_s13 = sadd.s32 4294967295, %s1137_s12   ;;  %p819_p0 = scmp.ge.s32.totalorder %s1137_s12, 1  ;;  %s1137_s12 = sphi %s1159_s12, %s13_s12  }
   0x2   : > { %p138_p1 = scmp.lt.s32.totalorder %s1137_s12, 8 }
   0x4   : > { %p139_p2 = pnand %p819_p0, %p138_p1 }
   0x5   : > { %s820_s16 = sshll.u32 (!%p139_p2), %s815_s13, 5 }
   0x6   : > { %142 = sbr.rel (%p139_p2) target bundleno = 319 (0x13f), region = 32  ;;  %p163_p3 = scmp.lt.s32.totalorder (!%p139_p2), %s820_s16, 223 }
   0xb   : > { %v979_v0 = vld [vmem:[%s1294_s1 + $0x38] sm:$0xff]   ;;  %v980_v1 = vld [vmem:[%s1294_s1 + $0x30] sm:$0xff]   ;;  %s1298_s16 = smov (!%p163_p3, %s820_s16), 223  ;;  %v981_v2 = vld [vmem:[%s1294_s1 + $0x28] sm:$0xff]  }
   0xc   : > { %907 = vmatprep.subr.bf16.mxu0 %v979_v0  ;;  %955 = vmatprep.subr.bf16.mxu1 %v979_v0  ;;  %s821_s21 = sshll.u32 %s1298_s16, 2  ;;  %v982_v3 = vld [vmem:[%s1294_s1 + $0x20] sm:$0xff]   ;;  %v983_v6 = vld [vmem:[%s1294_s1 + $0x18] sm:$0xff]   ;;  %v984_v7 = vld [vmem:[%s1294_s1 + $0x10] sm:$0xff]   ;;  %s823_s10 = sshll.u32 %s1298_s16, 3 }
   0xd   : > { %908 = vmatpush3.bf16.msra.mxu0 %v979_v0  ;;  %963 = vmatpush3.bf16.msra.mxu1 %v979_v0  ;;  %s1182_s24 = scalar_lea.vmem %s1293_s0, %s821_s21  ;;  %v985_v8 = vld [vmem:[%s1294_s1 + $0x8] sm:$0xff]   ;;  %v986_v9 = vld [vmem:[%s1294_s1] sm:$0xff]   ;;  %s1243_s14 = scalar_lea.vmem %s1296_s3, %s823_s10 }
   0xe   : > { %909 = vmatprep.subr.bf16.mxu0 %v980_v1  ;;  %956 = vmatprep.subr.bf16.mxu1 %v980_v1  ;;  %v987_v4 = vld [vmem:[%s1182_s24] sm:$0xff]   ;;  %v989_v10 = vld [vmem:[%s1182_s24 + $0x8] sm:$0xff]   ;;  %v991_v12 = vld [vmem:[%s1182_s24 + $0x10] sm:$0xff]  }
   0xf   : > { %v988_v5 = vld [vmem:[%s1182_s24 + $0x40] sm:$0xff]   ;;  %923 = vmatprep.mubr.bf16.mxu0 %v987_v4  ;;  %v990_v11 = vld [vmem:[%s1182_s24 + $0x48] sm:$0xff]   ;;  %v992_v13 = vld [vmem:[%s1182_s24 + $0x50] sm:$0xff]  }
  0x10   : > { %939 = vmatprep.mubr.bf16.mxu1 %v988_v5  ;;  %v993_v14 = vld [vmem:[%s1182_s24 + $0x18] sm:$0xff]   ;;  %v995_v16 = vld [vmem:[%s1182_s24 + $0x20] sm:$0xff]   ;;  %v997_v18 = vld [vmem:[%s1182_s24 + $0x28] sm:$0xff]  }
  0x11   : > { %910 = vmatpush3.bf16.msra.mxu0 %v980_v1  ;;  %964 = vmatpush3.bf16.msra.mxu1 %v980_v1  ;;  %v994_v15 = vld [vmem:[%s1182_s24 + $0x58] sm:$0xff]   ;;  %v996_v17 = vld [vmem:[%s1182_s24 + $0x60] sm:$0xff]   ;;  %v998_v19 = vld [vmem:[%s1182_s24 + $0x68] sm:$0xff]  }
  0x12   : > { %911 = vmatprep.subr.bf16.mxu0 %v981_v2  ;;  %957 = vmatprep.subr.bf16.mxu1 %v981_v2  ;;  %v999_v20 = vld [vmem:[%s1182_s24 + $0x30] sm:$0xff]   ;;  %v1001_v22 = vld [vmem:[%s1182_s24 + $0x38] sm:$0xff]   ;;  %v1218_v24 = vld [vmem:[%s1295_s2] ss:$0 sm:$0xff] }
  0x13   : > { %v1000_v21 = vld [vmem:[%s1182_s24 + $0x70] sm:$0xff]   ;;  %v1002_v23 = vld [vmem:[%s1182_s24 + $0x78] sm:$0xff]  }
  0x15   : > { %912 = vmatpush3.bf16.msra.mxu0 %v981_v2  ;;  %965 = vmatpush3.bf16.msra.mxu1 %v981_v2 }
  0x16   : > { %913 = vmatprep.subr.bf16.mxu0 %v982_v3  ;;  %958 = vmatprep.subr.bf16.mxu1 %v982_v3 }
  0x19   : > { %914 = vmatpush3.bf16.msra.mxu0 %v982_v3  ;;  %966 = vmatpush3.bf16.msra.mxu1 %v982_v3 }
  0x1a   : > { %915 = vmatprep.subr.bf16.mxu0 %v983_v6  ;;  %959 = vmatprep.subr.bf16.mxu1 %v983_v6 }
  0x1d   : > { %916 = vmatpush3.bf16.msra.mxu0 %v983_v6  ;;  %967 = vmatpush3.bf16.msra.mxu1 %v983_v6 }
  0x1e   : > { %917 = vmatprep.subr.bf16.mxu0 %v984_v7  ;;  %960 = vmatprep.subr.bf16.mxu1 %v984_v7 }
  0x21   : > { %918 = vmatpush3.bf16.msra.mxu0 %v984_v7  ;;  %968 = vmatpush3.bf16.msra.mxu1 %v984_v7 }
  0x22   : > { %919 = vmatprep.subr.bf16.mxu0 %v985_v8  ;;  %961 = vmatprep.subr.bf16.mxu1 %v985_v8 }
  0x25   : > { %920 = vmatpush3.bf16.msra.mxu0 %v985_v8  ;;  %969 = vmatpush3.bf16.msra.mxu1 %v985_v8 }
  0x26   : > { %921 = vmatprep.subr.bf16.mxu0 %v986_v9  ;;  %962 = vmatprep.subr.bf16.mxu1 %v986_v9 }
  0x29   : > { %922 = vmatpush3.bf16.msra.mxu0 %v986_v9  ;;  %970 = vmatpush3.bf16.msra.mxu1 %v986_v9 }
  0x2c   : > { %924 = vmatmul.mubr.bf16.vlgmr.msra.gmra.mxu0 %v989_v10  ;;  %940 = vmatmul.mubr.bf16.vlgmr.msra.gmra.mxu1 %v990_v11 }
  0x2d   : > { %927 = vmatprep.mubr.bf16.mxu0 %v991_v12  ;;  %943 = vmatprep.mubr.bf16.mxu1 %v992_v13 }
  0x34   : > { %928 = vmatmul.mubr.bf16.gmra.mxu0 %v993_v14  ;;  %944 = vmatmul.mubr.bf16.gmra.mxu1 %v994_v15 }
  0x35   : > { %931 = vmatprep.mubr.bf16.mxu0 %v995_v16  ;;  %947 = vmatprep.mubr.bf16.mxu1 %v996_v17 }
  0x3c   : > { %932 = vmatmul.mubr.bf16.gmra.mxu0 %v997_v18  ;;  %948 = vmatmul.mubr.bf16.gmra.mxu1 %v998_v19 }
  0x3d   : > { %935 = vmatprep.mubr.bf16.mxu0 %v999_v20  ;;  %951 = vmatprep.mubr.bf16.mxu1 %v1000_v21 }
  0x44   : > { %936 = vmatmul.mubr.bf16.gmra.mxu0 %v1001_v22  ;;  %952 = vmatmul.mubr.bf16.gmra.mxu1 %v1002_v23 }
  0xec   : > { %v925_v25 = vpop.f32.mrf.mxu0  ;;  %v941_v26 = vpop.f32.mrf.mxu1 }
  0xed   : > { %v417_v27 = vadd.f32 %v925_v25, %v1218_v24  ;;  %v481_v28 = vadd.f32 %v941_v26, %v1218_v24 }
  0xee   : > { %v408_v29 = vpop.f32.mrf.mxu0  ;;  %v472_v30 = vpop.f32.mrf.mxu1 }
  0xef   : > { %v851_v31 = vmul.f32 -1.442695, %v417_v27  ;;  %v867_v32 = vmul.f32 -1.442695, %v481_v28  ;;  %v409_v33 = vadd.f32 %v1218_v24, %v408_v29  ;;  %v473_v34 = vadd.f32 %v1218_v24, %v472_v30 }
  0xf0   : > { %v926_v35 = vpop.f32.mrf.mxu0  ;;  %v942_v36 = vpop.f32.mrf.mxu1 }
  0xf1   : > { %1003 = vpow2.f32 %v851_v31  ;;  %v849_v37 = vmul.f32 -1.442695, %v409_v33  ;;  %v865_v38 = vmul.f32 -1.442695, %v473_v34  ;;  %v420_v39 = vadd.f32 %v926_v35, %v1218_v24 }
  0xf2   : > { %1005 = vpow2.f32 %v867_v32  ;;  %v484_v40 = vadd.f32 %v942_v36, %v1218_v24  ;;  %v411_v41 = vpop.f32.mrf.mxu0  ;;  %v475_v42 = vpop.f32.mrf.mxu1 }
  0xf3   : > { %1007 = vpow2.f32 %v849_v37  ;;  %v852_v43 = vmul.f32 -1.442695, %v420_v39  ;;  %v412_v44 = vadd.f32 %v1218_v24, %v411_v41  ;;  %v476_v45 = vadd.f32 %v1218_v24, %v475_v42 }
  0xf4   : > { %1009 = vpow2.f32 %v865_v38  ;;  %v868_v46 = vmul.f32 -1.442695, %v484_v40  ;;  %v929_v47 = vpop.f32.mrf.mxu0  ;;  %v945_v48 = vpop.f32.mrf.mxu1 }
  0xf5   : > { %1011 = vpow2.f32 %v852_v43  ;;  %v850_v49 = vmul.f32 -1.442695, %v412_v44  ;;  %v866_v50 = vmul.f32 -1.442695, %v476_v45  ;;  %v433_v51 = vadd.f32 %v929_v47, %v1218_v24 }
  0xf6   : > { %1013 = vpow2.f32 %v868_v46  ;;  %v497_v52 = vadd.f32 %v945_v48, %v1218_v24  ;;  %v424_v53 = vpop.f32.mrf.mxu0  ;;  %v488_v54 = vpop.f32.mrf.mxu1 }
  0xf7   : > { %1015 = vpow2.f32 %v850_v49  ;;  %v855_v55 = vmul.f32 -1.442695, %v433_v51  ;;  %v425_v56 = vadd.f32 %v1218_v24, %v424_v53  ;;  %v489_v57 = vadd.f32 %v1218_v24, %v488_v54 }
  0xf8   : > { %1017 = vpow2.f32 %v866_v50  ;;  %v871_v58 = vmul.f32 -1.442695, %v497_v52  ;;  %v930_v59 = vpop.f32.mrf.mxu0  ;;  %v946_v60 = vpop.f32.mrf.mxu1 }
  0xf9   : > { %1019 = vpow2.f32 %v855_v55  ;;  %v853_v61 = vmul.f32 -1.442695, %v425_v56  ;;  %v869_v62 = vmul.f32 -1.442695, %v489_v57  ;;  %v436_v63 = vadd.f32 %v930_v59, %v1218_v24 }
  0xfa   : > { %1021 = vpow2.f32 %v871_v58  ;;  %v500_v0 = vadd.f32 %v946_v60, %v1218_v24  ;;  %v427_v1 = vpop.f32.mrf.mxu0  ;;  %v491_v2 = vpop.f32.mrf.mxu1 }
  0xfb   : > { %1023 = vpow2.f32 %v853_v61  ;;  %v856_v3 = vmul.f32 -1.442695, %v436_v63  ;;  %v428_v4 = vadd.f32 %v1218_v24, %v427_v1  ;;  %v492_v5 = vadd.f32 %v1218_v24, %v491_v2 }
  0xfc   : > { %1025 = vpow2.f32 %v869_v62  ;;  %v872_v6 = vmul.f32 -1.442695, %v500_v0  ;;  %v933_v7 = vpop.f32.mrf.mxu0  ;;  %v949_v8 = vpop.f32.mrf.mxu1 }
  0xfd   : > { %1027 = vpow2.f32 %v856_v3  ;;  %v854_v9 = vmul.f32 -1.442695, %v428_v4  ;;  %v870_v10 = vmul.f32 -1.442695, %v492_v5  ;;  %v449_v42 = vadd.f32 %v933_v7, %v1218_v24 }
  0xfe   : > { %v1004_v11 = vpop.eup %1003  ;;  %1029 = vpow2.f32 %v872_v6  ;;  %v440_v12 = vpop.f32.mrf.mxu0  ;;  %v513_v46 = vadd.f32 %v949_v8, %v1218_v24 }
  0xff   : > { %v504_v13 = vpop.f32.mrf.mxu1  ;;  %v1006_v14 = vpop.eup %1005  ;;  %v633_v15 = vadd.f32 1.0, %v1004_v11  ;;  %1031 = vpow2.f32 %v854_v9  ;;  %v441_v49 = vadd.f32 %v1218_v24, %v440_v12  ;;  %v859_v56 = vmul.f32 -1.442695, %v449_v42 }
 0x100   : > { %v1008_v16 = vpop.eup %1007  ;;  %v649_v17 = vadd.f32 1.0, %v1006_v14  ;;  %1033 = vpow2.f32 %v870_v10  ;;  %v934_v18 = vpop.f32.mrf.mxu0  ;;  %v505_v52 = vadd.f32 %v1218_v24, %v504_v13  ;;  %v875_v61 = vmul.f32 -1.442695, %v513_v46 }
 0x101   : > { %v1010_v19 = vpop.eup %1009  ;;  %1035 = vrcp.f32 %v633_v15  ;;  %v631_v20 = vadd.f32 1.0, %v1008_v16  ;;  %v950_v21 = vpop.f32.mrf.mxu1  ;;  %v452_v57 = vadd.f32 %v934_v18, %v1218_v24  ;;  %v857_v0 = vmul.f32 -1.442695, %v441_v49 }
 0x102   : > { %v1012_v22 = vpop.eup %1011  ;;  %1037 = vrcp.f32 %v649_v17  ;;  %v647_v23 = vadd.f32 1.0, %v1010_v19  ;;  %v443_v29 = vpop.f32.mrf.mxu0  ;;  %v516_v62 = vadd.f32 %v950_v21, %v1218_v24  ;;  %v873_v3 = vmul.f32 -1.442695, %v505_v52 }
 0x103   : > { %v1014_v25 = vpop.eup %1013  ;;  %1039 = vrcp.f32 %v631_v20  ;;  %v634_v26 = vadd.f32 1.0, %v1012_v22  ;;  %v507_v32 = vpop.f32.mrf.mxu1  ;;  %v444_v1 = vadd.f32 %v1218_v24, %v443_v29  ;;  %v860_v7 = vmul.f32 -1.442695, %v452_v57 }
 0x104   : > { %v1016_v27 = vpop.eup %1015  ;;  %1041 = vrcp.f32 %v647_v23  ;;  %v650_v28 = vadd.f32 1.0, %v1014_v25  ;;  %v937_v39 = vpop.f32.mrf.mxu0  ;;  %v508_v4 = vadd.f32 %v1218_v24, %v507_v32  ;;  %v876_v11 = vmul.f32 -1.442695, %v516_v62 }
 0x105   : > { %v1018_v30 = vpop.eup %1017  ;;  %1043 = vrcp.f32 %v634_v26  ;;  %v632_v31 = vadd.f32 1.0, %v1016_v27  ;;  %v953_v43 = vpop.f32.mrf.mxu1  ;;  %v465_v8 = vadd.f32 %v937_v39, %v1218_v24  ;;  %v858_v14 = vmul.f32 -1.442695, %v444_v1 }
 0x106   : > { %v1020_v33 = vpop.eup %1019  ;;  %1045 = vrcp.f32 %v650_v28  ;;  %v648_v34 = vadd.f32 1.0, %v1018_v30  ;;  %v456_v53 = vpop.f32.mrf.mxu0  ;;  %v529_v12 = vadd.f32 %v953_v43, %v1218_v24  ;;  %v874_v17 = vmul.f32 -1.442695, %v508_v4 }
 0x107   : > { %v1022_v35 = vpop.eup %1021  ;;  %1047 = vrcp.f32 %v632_v31  ;;  %v637_v36 = vadd.f32 1.0, %v1020_v33  ;;  %v520_v58 = vpop.f32.mrf.mxu1  ;;  %v457_v15 = vadd.f32 %v1218_v24, %v456_v53  ;;  %v863_v21 = vmul.f32 -1.442695, %v465_v8 }
 0x108   : > { %v1024_v37 = vpop.eup %1023  ;;  %1049 = vrcp.f32 %v648_v34  ;;  %v653_v38 = vadd.f32 1.0, %v1022_v35  ;;  %v938_v5 = vpop.f32.mrf.mxu0  ;;  %v521_v18 = vadd.f32 %v1218_v24, %v520_v58  ;;  %v879_v26 = vmul.f32 -1.442695, %v529_v12 }
 0x109   : > { %v1026_v40 = vpop.eup %1025  ;;  %1051 = vrcp.f32 %v637_v36  ;;  %v635_v41 = vadd.f32 1.0, %v1024_v37  ;;  %v954_v9 = vpop.f32.mrf.mxu1  ;;  %v468_v22 = vadd.f32 %v938_v5, %v1218_v24  ;;  %v861_v29 = vmul.f32 -1.442695, %v457_v15 }
 0x10a   : > { %v1028_v44 = vpop.eup %1027  ;;  %1053 = vrcp.f32 %v653_v38  ;;  %v651_v45 = vadd.f32 1.0, %v1026_v40  ;;  %v459_v19 = vpop.f32.mrf.mxu0  ;;  %v532_v27 = vadd.f32 %v954_v9, %v1218_v24  ;;  %v877_v32 = vmul.f32 -1.442695, %v521_v18 }
 0x10b   : > { %v1030_v47 = vpop.eup %1029  ;;  %1055 = vrcp.f32 %v635_v41  ;;  %v638_v48 = vadd.f32 1.0, %v1028_v44  ;;  %v523_v23 = vpop.f32.mrf.mxu1  ;;  %v460_v30 = vadd.f32 %v1218_v24, %v459_v19  ;;  %v864_v35 = vmul.f32 -1.442695, %v468_v22 }
 0x10c   : > { %v1032_v50 = vpop.eup %1031  ;;  %1057 = vrcp.f32 %v651_v45  ;;  %v654_v51 = vadd.f32 1.0, %v1030_v47  ;;  %v524_v33 = vadd.f32 %v1218_v24, %v523_v23  ;;  %v880_v37 = vmul.f32 -1.442695, %v532_v27 }
 0x10d   : > { %v1034_v54 = vpop.eup %1033  ;;  %1059 = vrcp.f32 %v638_v48  ;;  %v636_v55 = vadd.f32 1.0, %v1032_v50  ;;  %v862_v39 = vmul.f32 -1.442695, %v460_v30 }
 0x10e   : > { %v1036_v59 = vpop.eup %1035  ;;  %1061 = vrcp.f32 %v654_v51  ;;  %v652_v60 = vadd.f32 1.0, %v1034_v54  ;;  %v878_v41 = vmul.f32 -1.442695, %v524_v33 }
 0x10f   : > { %v1038_v63 = vpop.eup %1037  ;;  %729 = vst [vmem:[%s1243_s14 + $0x10] sm:$0xff] %v1036_v59  ;;  %1063 = vrcp.f32 %v636_v55 }
 0x110   : > { %v1040_v2 = vpop.eup %1039  ;;  %745 = vst [vmem:[%s1243_s14 + $0x90] sm:$0xff] %v1038_v63  ;;  %1065 = vrcp.f32 %v652_v60 }
 0x111   : > { %v1042_v6 = vpop.eup %1041  ;;  %727 = vst [vmem:[%s1243_s14] sm:$0xff] %v1040_v2  ;;  %1067 = vpow2.f32 %v859_v56 }
 0x112   : > { %v1044_v10 = vpop.eup %1043  ;;  %743 = vst [vmem:[%s1243_s14 + $0x80] sm:$0xff] %v1042_v6  ;;  %1069 = vpow2.f32 %v875_v61 }
 0x113   : > { %v1046_v13 = vpop.eup %1045  ;;  %730 = vst [vmem:[%s1243_s14 + $0x18] sm:$0xff] %v1044_v10  ;;  %1071 = vpow2.f32 %v857_v0 }
 0x114   : > { %v1048_v16 = vpop.eup %1047  ;;  %746 = vst [vmem:[%s1243_s14 + $0x98] sm:$0xff] %v1046_v13  ;;  %1073 = vpow2.f32 %v873_v3 }
 0x115   : > { %v1050_v20 = vpop.eup %1049  ;;  %728 = vst [vmem:[%s1243_s14 + $0x8] sm:$0xff] %v1048_v16  ;;  %1075 = vpow2.f32 %v860_v7 }
 0x116   : > { %v1052_v25 = vpop.eup %1051  ;;  %744 = vst [vmem:[%s1243_s14 + $0x88] sm:$0xff] %v1050_v20  ;;  %1077 = vpow2.f32 %v876_v11 }
 0x117   : > { %v1054_v28 = vpop.eup %1053  ;;  %733 = vst [vmem:[%s1243_s14 + $0x30] sm:$0xff] %v1052_v25  ;;  %1079 = vpow2.f32 %v858_v14 }
 0x118   : > { %v1056_v31 = vpop.eup %1055  ;;  %749 = vst [vmem:[%s1243_s14 + $0xb0] sm:$0xff] %v1054_v28  ;;  %1081 = vpow2.f32 %v874_v17 }
 0x119   : > { %v1058_v34 = vpop.eup %1057  ;;  %731 = vst [vmem:[%s1243_s14 + $0x20] sm:$0xff] %v1056_v31  ;;  %1083 = vpow2.f32 %v863_v21 }
 0x11a   : > { %v1060_v36 = vpop.eup %1059  ;;  %747 = vst [vmem:[%s1243_s14 + $0xa0] sm:$0xff] %v1058_v34  ;;  %1085 = vpow2.f32 %v879_v26 }
 0x11b   : > { %v1062_v38 = vpop.eup %1061  ;;  %734 = vst [vmem:[%s1243_s14 + $0x38] sm:$0xff] %v1060_v36  ;;  %1087 = vpow2.f32 %v861_v29 }
 0x11c   : > { %v1064_v40 = vpop.eup %1063  ;;  %750 = vst [vmem:[%s1243_s14 + $0xb8] sm:$0xff] %v1062_v38  ;;  %1089 = vpow2.f32 %v877_v32 }
 0x11d   : > { %v1066_v42 = vpop.eup %1065  ;;  %732 = vst [vmem:[%s1243_s14 + $0x28] sm:$0xff] %v1064_v40  ;;  %1091 = vpow2.f32 %v864_v35 }
 0x11e   : > { %v1068_v24 = vpop.eup %1067  ;;  %748 = vst [vmem:[%s1243_s14 + $0xa8] sm:$0xff] %v1066_v42  ;;  %1093 = vpow2.f32 %v880_v37 }
 0x11f   : > { %v1070_v43 = vpop.eup %1069  ;;  %v641_v44 = vadd.f32 1.0, %v1068_v24  ;;  %1095 = vpow2.f32 %v862_v39 }
 0x120   : > { %v1072_v45 = vpop.eup %1071  ;;  %v657_v46 = vadd.f32 1.0, %v1070_v43  ;;  %1097 = vpow2.f32 %v878_v41 }
 0x121   : > { %v1074_v47 = vpop.eup %1073  ;;  %1099 = vrcp.f32 %v641_v44  ;;  %v639_v48 = vadd.f32 1.0, %v1072_v45 }
 0x122   : > { %v1076_v49 = vpop.eup %1075  ;;  %1101 = vrcp.f32 %v657_v46  ;;  %v655_v50 = vadd.f32 1.0, %v1074_v47 }
 0x123   : > { %v1078_v51 = vpop.eup %1077  ;;  %1103 = vrcp.f32 %v639_v48  ;;  %v642_v52 = vadd.f32 1.0, %v1076_v49 }
 0x124   : > { %v1080_v53 = vpop.eup %1079  ;;  %1105 = vrcp.f32 %v655_v50  ;;  %v658_v54 = vadd.f32 1.0, %v1078_v51 }
 0x125   : > { %v1082_v55 = vpop.eup %1081  ;;  %1107 = vrcp.f32 %v642_v52  ;;  %v640_v56 = vadd.f32 1.0, %v1080_v53 }
 0x126   : > { %v1084_v57 = vpop.eup %1083  ;;  %1109 = vrcp.f32 %v658_v54  ;;  %v656_v58 = vadd.f32 1.0, %v1082_v55 }
 0x127   : > { %v1086_v59 = vpop.eup %1085  ;;  %1111 = vrcp.f32 %v640_v56  ;;  %v645_v60 = vadd.f32 1.0, %v1084_v57 }
 0x128   : > { %v1088_v61 = vpop.eup %1087  ;;  %1113 = vrcp.f32 %v656_v58  ;;  %v661_v62 = vadd.f32 1.0, %v1086_v59 }
 0x129   : > { %v1090_v63 = vpop.eup %1089  ;;  %1115 = vrcp.f32 %v645_v60  ;;  %v643_v0 = vadd.f32 1.0, %v1088_v61 }
 0x12a   : > { %v1092_v1 = vpop.eup %1091  ;;  %1117 = vrcp.f32 %v661_v62  ;;  %v659_v2 = vadd.f32 1.0, %v1090_v63 }
 0x12b   : > { %v1094_v3 = vpop.eup %1093  ;;  %1119 = vrcp.f32 %v643_v0  ;;  %v646_v4 = vadd.f32 1.0, %v1092_v1 }
 0x12c   : > { %v1096_v5 = vpop.eup %1095  ;;  %1121 = vrcp.f32 %v659_v2  ;;  %v662_v6 = vadd.f32 1.0, %v1094_v3 }
 0x12d   : > { %v1098_v7 = vpop.eup %1097  ;;  %1123 = vrcp.f32 %v646_v4  ;;  %v644_v8 = vadd.f32 1.0, %v1096_v5 }
 0x12e   : > { %v1100_v9 = vpop.eup %1099  ;;  %1125 = vrcp.f32 %v662_v6  ;;  %v660_v10 = vadd.f32 1.0, %v1098_v7 }
 0x12f   : > { %v1102_v11 = vpop.eup %1101  ;;  %737 = vst [vmem:[%s1243_s14 + $0x50] sm:$0xff] %v1100_v9  ;;  %1127 = vrcp.f32 %v644_v8 }
 0x130   : > { %v1104_v12 = vpop.eup %1103  ;;  %753 = vst [vmem:[%s1243_s14 + $0xd0] sm:$0xff] %v1102_v11  ;;  %1129 = vrcp.f32 %v660_v10 }
 0x131   : > { %v1106_v13 = vpop.eup %1105  ;;  %735 = vst [vmem:[%s1243_s14 + $0x40] sm:$0xff] %v1104_v12 }
 0x132   : > { %v1108_v14 = vpop.eup %1107  ;;  %751 = vst [vmem:[%s1243_s14 + $0xc0] sm:$0xff] %v1106_v13 }
 0x133   : > { %v1110_v15 = vpop.eup %1109  ;;  %738 = vst [vmem:[%s1243_s14 + $0x58] sm:$0xff] %v1108_v14 }
 0x134   : > { %v1112_v16 = vpop.eup %1111  ;;  %754 = vst [vmem:[%s1243_s14 + $0xd8] sm:$0xff] %v1110_v15 }
 0x135   : > { %v1114_v17 = vpop.eup %1113  ;;  %736 = vst [vmem:[%s1243_s14 + $0x48] sm:$0xff] %v1112_v16 }
 0x136   : > { %v1116_v18 = vpop.eup %1115  ;;  %752 = vst [vmem:[%s1243_s14 + $0xc8] sm:$0xff] %v1114_v17 }
 0x137   : > { %v1118_v19 = vpop.eup %1117  ;;  %741 = vst [vmem:[%s1243_s14 + $0x70] sm:$0xff] %v1116_v18 }
 0x138   : > { %v1120_v20 = vpop.eup %1119  ;;  %757 = vst [vmem:[%s1243_s14 + $0xf0] sm:$0xff] %v1118_v19 }
 0x139   : > { %v1122_v21 = vpop.eup %1121  ;;  %739 = vst [vmem:[%s1243_s14 + $0x60] sm:$0xff] %v1120_v20 }
 0x13a   : > { %v1124_v22 = vpop.eup %1123  ;;  %755 = vst [vmem:[%s1243_s14 + $0xe0] sm:$0xff] %v1122_v21 }
 0x13b   : > { %v1126_v23 = vpop.eup %1125  ;;  %742 = vst [vmem:[%s1243_s14 + $0x78] sm:$0xff] %v1124_v22 }
 0x13c   : > { %v1128_v25 = vpop.eup %1127  ;;  %758 = vst [vmem:[%s1243_s14 + $0xf8] sm:$0xff] %v1126_v23 }
 0x13d   : > { %v1130_v26 = vpop.eup %1129  ;;  %740 = vst [vmem:[%s1243_s14 + $0x68] sm:$0xff] %v1128_v25 }
 0x13e   : > { %756 = vst [vmem:[%s1243_s14 + $0xe8] sm:$0xff] %v1130_v26 }
 0x13f PF: > { %s13_s12 = sadd.s32 1, %s1137_s12  }
 0x140   : > { %p10_p4 = scmp.ge.s32.totalorder %s13_s12, 9  }
 0x142   :  { %12 = sbr.rel (!%p10_p4) target bundleno = 1 (0x1), region = 62 }

</bundles_post_ra>
